<compile_context>
chip_gen: v7x
topology: tpu7x:2x2x1
jax: 0.10.0
libtpu: 0.0.40
codegen_flags: <defaults>
</compile_context>

<pallas_src>
import functools

import jax
import jax.numpy as jnp
from jax import lax
from jax.experimental import pallas as pl
from jax.experimental.pallas import tpu as pltpu


def _round_up(x, m):
    return ((x + m - 1) // m) * m


def _vq_kernel(x_ref, wt_ref, w_ref, w2_ref, *out_refs,
               n_valid, use_bf16_scores, emit_encodings):
    """One row-tile of VQ: nearest code, one-hot, quantized rows, partial stats."""
    if emit_encodings:
        q_ref, enc_ref, idx_ref, sqerr_ref, counts_ref = out_refs
    else:
        q_ref, idx_ref, sqerr_ref, counts_ref = out_refs
        enc_ref = None

    i = pl.program_id(0)
    x = x_ref[...]                                    # (TN, D) f32
    TN = x.shape[0]
    Kp = wt_ref.shape[1]

    # score[n, k] = ||w_k||^2 - 2 <x_n, w_k>.
    #  * the -2 is folded into wt in the wrapper (wt = -2 * W^T): no in-kernel
    #    (TN, Kp) scale pass;
    #  * the per-row ||x_n||^2 term is constant per row and dropped (cannot
    #    change the argmin);
    #  * padded codebook columns carry a +1e30 bias in w2 so they never win.
    if use_bf16_scores:
        xw = jnp.dot(x.astype(jnp.bfloat16), wt_ref[...],   # wt already bf16
                     preferred_element_type=jnp.float32)
    else:
        xw = jnp.dot(x, wt_ref[...], preferred_element_type=jnp.float32,
                     precision=lax.Precision.HIGHEST)
    dist = xw + w2_ref[...]                           # (TN, Kp)

    # Deterministic first-minimal-index argmin (matches torch.argmin).
    min_d = jnp.min(dist, axis=1, keepdims=True)      # (TN, 1)
    col = lax.broadcasted_iota(jnp.int32, (TN, Kp), 1)
    idx = jnp.min(jnp.where(dist == min_d, col, Kp), axis=1, keepdims=True)

    onehot = (col == idx).astype(jnp.float32)         # (TN, Kp), exact 0/1
    # quantized rows == embeddings[idx]; HIGHEST keeps the gather bit-exact.
    quant = jnp.dot(onehot, w_ref[...], preferred_element_type=jnp.float32,
                    precision=lax.Precision.HIGHEST)  # (TN, D)

    q_ref[...] = quant.astype(q_ref.dtype)
    idx_ref[...] = idx
    if enc_ref is not None:
        k_out = enc_ref.shape[1]                      # un-padded K
        enc_ref[...] = onehot[:, :k_out].astype(enc_ref.dtype)

    diff = quant - x

    # Per-tile partial statistics (summed in the wrapper -> grid is parallel).
    # The row-valid mask is only needed on the final ragged tile (OOB rows of
    # the last input block hold stale data); gate it behind pl.when so every
    # other tile skips the extra (TN,Kp)/(TN,D) VPU passes.
    is_ragged = (i + 1) * TN > n_valid

    @pl.when(jnp.logical_not(is_ragged))
    def _():
        sqerr_ref[...] = jnp.sum(diff * diff).reshape(1, 1)
        counts_ref[...] = jnp.sum(onehot, axis=0, keepdims=True)

    @pl.when(is_ragged)
    def _():
        row_ok = (i * TN + lax.broadcasted_iota(jnp.int32, (TN, 1), 0)) < n_valid
        dm = jnp.where(row_ok, diff, 0.0)             # where(): NaN-safe vs stale rows
        sqerr_ref[...] = jnp.sum(dm * dm).reshape(1, 1)
        counts_ref[...] = jnp.sum(jnp.where(row_ok, onehot, 0.0),
                                  axis=0, keepdims=True)


def vector_quantize(inputs, embeddings, commitment_cost, *,
                    tile_n=512, k_align=128,
                    encodings_dtype=jnp.bfloat16, use_bf16_scores=False):
    """Pallas implementation of VectorQuantizer.forward (forward values only).

    inputs:          [..., D] (e.g. [B, H, W, D] or [B, D]).
    embeddings:      [K, D] codebook.
    tile_n:          rows per grid step. 512-1024 on v5e/v6e; on v7x keep
                     roughly (5 * tile_n * K_pad * 4B + codebook) under ~48 MiB
                     (e.g. 512 for K_pad<=2048, 256 for 4096, 128 for 8192) and
                     keep num_tiles >= 2 so both TensorCores get work.
    k_align:         codebook-lane alignment. 128 on v5e; use 256 on v6e/v7x
                     to fill the 2x256 MXU.
    encodings_dtype: dtype of the one-hot `encodings` output (0/1 is exact in
                     bfloat16/int8). None drops the output entirely (biggest
                     HBM saving). Use jnp.float32 for exact module parity.
    use_bf16_scores: bf16 distance matmul (faster, especially on v5e); may
                     flip the nearest code for near-tied distances, so opt-in.
    """
    K, D = embeddings.shape
    assert inputs.shape[-1] == D
    input_shape = inputs.shape
    flat = inputs.reshape(-1, D).astype(jnp.float32)
    N = flat.shape[0]

    # Row tile: multiple of 8 sublanes; no wrapper-side padding of N — the
    # kernel masks the ragged last tile instead.
    tile_n = max(8, _round_up(min(tile_n, _round_up(N, 8)), 8))
    num_tiles = pl.cdiv(N, tile_n)

    # Pad the codebook axis to k_align lanes; sentinel codes get a huge bias.
    k_pad = _round_up(K, k_align)
    w = embeddings.astype(jnp.float32)
    w_p = jnp.pad(w, ((0, k_pad - K), (0, 0))) if k_pad != K else w
    wt = -2.0 * w_p.T                                # (D, Kp): one-time transpose+scale
    if use_bf16_scores:
        wt = wt.astype(jnp.bfloat16)                 # resident bf16 copy, cast once
    w2 = jnp.sum(w * w, axis=1)                      # hoisted ||w||^2
    if k_pad != K:
        w2 = jnp.concatenate([w2, jnp.full((k_pad - K,), 1e30, jnp.float32)])
    w2 = w2.reshape(1, k_pad)

    emit_encodings = encodings_dtype is not None
    kernel = functools.partial(_vq_kernel, n_valid=N,
                               use_bf16_scores=use_bf16_scores,
                               emit_encodings=emit_encodings)

    out_shapes = [jax.ShapeDtypeStruct((N, D), inputs.dtype)]          # quantized
    out_specs = [pl.BlockSpec((tile_n, D), lambda i: (i, 0))]
    if emit_encodings:
        out_shapes.append(jax.ShapeDtypeStruct((N, K), encodings_dtype))
        out_specs.append(pl.BlockSpec((tile_n, K), lambda i: (i, 0)))
    out_shapes += [jax.ShapeDtypeStruct((N, 1), jnp.int32),            # indices
                   jax.ShapeDtypeStruct((num_tiles, 1), jnp.float32),  # partial sqerr
                   jax.ShapeDtypeStruct((num_tiles, k_pad), jnp.float32)]  # partial counts
    out_specs += [pl.BlockSpec((tile_n, 1), lambda i: (i, 0)),
                  pl.BlockSpec((1, 1), lambda i: (i, 0)),
                  pl.BlockSpec((1, k_pad), lambda i: (i, 0))]

    # Explicit scoped-VMEM budget: double-buffered streamed tiles + resident
    # codebook + (TN, Kp) temporaries, with headroom, clamped to chip VMEM.
    enc_bytes = jnp.dtype(encodings_dtype).itemsize if emit_encodings else 0
    est = 2 * tile_n * D * 4 * 2                       # x in + quantized out
    est += 2 * tile_n * _round_up(K, 128) * enc_bytes  # encodings out
    est += 2 * tile_n * 128 * 4                        # idx out (lane-padded)
    est += 2 * (8 * k_pad + 8 * 128) * 4               # counts + sqerr out
    est += 2 * (2 * D * k_pad + 8 * k_pad) * 4         # wt + w + w2 (worst case 2 bufs)
    est += 8 * tile_n * k_pad * 4                      # dist / one-hot temporaries
    est += 4 * tile_n * _round_up(D, 128) * 4
    vmem_limit = max(32 << 20, int(est * 1.25) + (4 << 20))
    try:
        vmem_cap = int(pltpu.get_tpu_info().vmem_capacity_bytes)
    except Exception:
        vmem_cap = 64 << 20                            # v7x worst case
    vmem_limit = min(vmem_limit, int(vmem_cap * 0.9))

    params = pltpu.CompilerParams(dimension_semantics=("parallel",),
                                  vmem_limit_bytes=vmem_limit)

    def _run(single_buffer_codebook):
        extra = ({"pipeline_mode": pl.Buffered(1)} if single_buffer_codebook else {})
        in_specs = [
            pl.BlockSpec((tile_n, D), lambda i: (i, 0)),              # streamed x tile
            pl.BlockSpec((D, k_pad), lambda i: (0, 0), **extra),      # -2*W^T (resident)
            pl.BlockSpec((k_pad, D), lambda i: (0, 0), **extra),      # W      (resident)
            pl.BlockSpec((1, k_pad), lambda i: (0, 0), **extra),      # ||w||^2(resident)
        ]
        return pl.pallas_call(
            kernel,
            grid=(num_tiles,),
            in_specs=in_specs,
            out_specs=tuple(out_specs),
            out_shape=tuple(out_shapes),
            compiler_params=params,
        )(flat, wt, w_p, w2)

    try:
        outs = _run(True)     # single-buffer the grid-invariant codebook inputs
    except Exception:         # pipeline_mode / Buffered(1) unsupported -> default buffering
        outs = _run(False)

    if emit_encodings:
        quant_p, enc_p, idx_p, sqerr_p, counts_p = outs
    else:
        quant_p, idx_p, sqerr_p, counts_p = outs
        enc_p = None

    # --- scalar finishing (plain JAX glue, all tiny) ---
    mse = jnp.sum(sqerr_p) / jnp.float32(N * D)
    # forward values of q_latent_loss and e_latent_loss are identical (== mse)
    loss = mse + commitment_cost * mse

    counts = jnp.sum(counts_p, axis=0)                 # (k_pad,), padded cols are 0
    avg_probs = counts / jnp.float32(N)
    perplexity = jnp.exp(-jnp.sum(avg_probs * jnp.log(jnp.clip(avg_probs, 1e-10))))

    # TODO(synk): forward-only — the straight-through estimator and the two
    # detached loss terms require a custom_vjp for training gradients.
    return {
        "quantize": quant_p.reshape(input_shape),      # forward value of STE output
        "loss": loss,
        "perplexity": perplexity,
        "encodings": enc_p,                            # (N, K) in encodings_dtype, or None
        "encoding_indices": idx_p.reshape(input_shape[:-1]),
    }


if __name__ == "__main__":
    # Small deterministic config.
    embedding_dim = 32
    num_embeddings = 64
    commitment_cost = 0.25
    B, H, W = 2, 8, 8   # N = B*H*W = 128 flat vectors

    key = jax.random.PRNGKey(0)
    k_in, k_emb = jax.random.split(key)

    x = jax.random.normal(k_in, (B, H, W, embedding_dim), dtype=jnp.float32)

    # Codebook init: uniform(-1/D, 1/D), matching nn.init.uniform_ in __init__.
    bound = 1.0 / embedding_dim
    embeddings = jax.random.uniform(
        k_emb, (num_embeddings, embedding_dim),
        minval=-bound, maxval=bound, dtype=jnp.float32)

    out = vector_quantize(x, embeddings, commitment_cost, tile_n=128)
    jax.block_until_ready(out)

    # Pure-JAX reference (HIGHEST precision so the argmin is exact).
    flat = x.reshape(-1, embedding_dim)
    d_ref = (jnp.sum(flat ** 2, 1, keepdims=True)
             - 2.0 * jnp.dot(flat, embeddings.T, precision=lax.Precision.HIGHEST)
             + jnp.sum(embeddings ** 2, 1))
    idx_ref = jnp.argmin(d_ref, axis=1)
    q_ref = embeddings[idx_ref].reshape(x.shape)
    mse_ref = jnp.mean((q_ref - x) ** 2)
    counts_ref = jnp.sum(jax.nn.one_hot(idx_ref, num_embeddings), axis=0)
    probs_ref = counts_ref / flat.shape[0]
    ppl_ref = jnp.exp(-jnp.sum(probs_ref * jnp.log(jnp.clip(probs_ref, 1e-10))))

    assert jnp.array_equal(out["encoding_indices"].reshape(-1), idx_ref)
    assert jnp.allclose(out["quantize"], q_ref, atol=1e-6)
    assert jnp.allclose(out["loss"], (1.0 + commitment_cost) * mse_ref, rtol=1e-5)
    assert jnp.allclose(out["perplexity"], ppl_ref, rtol=1e-5)
    assert jnp.allclose(jnp.sum(out["encodings"].astype(jnp.float32), axis=0),
                        counts_ref)

    # Second call exercises the ragged last tile (tile_n does not divide N)
    # and the "no encodings output" fast path.
    out2 = vector_quantize(x, embeddings, commitment_cost,
                           tile_n=96, encodings_dtype=None)
    jax.block_until_ready(out2["quantize"])
    assert out2["encodings"] is None
    assert jnp.array_equal(out2["encoding_indices"].reshape(-1), idx_ref)
    assert jnp.allclose(out2["loss"], out["loss"], rtol=1e-6)
    assert jnp.allclose(out2["perplexity"], out["perplexity"], rtol=1e-6)

    print("KERNEL_OK")
</pallas_src>

<mosaic_0001>
module attributes {stable_mosaic.version = 11 : i64} {
  func.func @_vq_kernel(%arg0: i32, %arg1: memref<128x32xf32, #tpu.memory_space<vmem>>, %arg2: memref<32x128xf32, #tpu.memory_space<vmem>>, %arg3: memref<128x32xf32, #tpu.memory_space<vmem>>, %arg4: memref<1x128xf32, #tpu.memory_space<vmem>>, %arg5: memref<128x32xf32, #tpu.memory_space<vmem>>, %arg6: memref<128x64xbf16, #tpu.memory_space<vmem>>, %arg7: memref<128x1xi32, #tpu.memory_space<vmem>>, %arg8: memref<1x1xf32, #tpu.memory_space<vmem>>, %arg9: memref<1x128xf32, #tpu.memory_space<vmem>>) attributes {dimension_semantics = [#tpu.dimension_semantics<parallel>], iteration_bounds = array<i64: 1>, scalar_prefetch = 0 : i64, scratch_operands = 0 : i64, tpu.core_type = #tpu.core_type<tc>, window_params = [{transform_indices = @transform_0, window_bounds = array<i64: 128, 32>}, {pipeline_mode = #tpu.pipeline_mode<synchronous>, transform_indices = @transform_1, window_bounds = array<i64: 32, 128>}, {pipeline_mode = #tpu.pipeline_mode<synchronous>, transform_indices = @transform_2, window_bounds = array<i64: 128, 32>}, {pipeline_mode = #tpu.pipeline_mode<synchronous>, transform_indices = @transform_3, window_bounds = array<i64: 1, 128>}, {transform_indices = @transform_4, window_bounds = array<i64: 128, 32>}, {transform_indices = @transform_5, window_bounds = array<i64: 128, 64>}, {transform_indices = @transform_6, window_bounds = array<i64: 128, 1>}, {transform_indices = @transform_7, window_bounds = array<i64: 1, 1>}, {transform_indices = @transform_8, window_bounds = array<i64: 1, 128>}]} {
    %c0 = arith.constant 0 : index
    %c0_0 = arith.constant 0 : index
    %0 = vector.load %arg1[%c0, %c0_0] : memref<128x32xf32, #tpu.memory_space<vmem>>, vector<128x32xf32>
    %c0_1 = arith.constant 0 : index
    %c0_2 = arith.constant 0 : index
    %1 = vector.load %arg2[%c0_1, %c0_2] : memref<32x128xf32, #tpu.memory_space<vmem>>, vector<32x128xf32>
    %cst = arith.constant dense<0.000000e+00> : vector<128x128xf32>
    %2 = tpu.matmul %0, %1, %cst {dimension_numbers = #tpu.dot_dimension_numbers<[1], [0], [0], [1], [0, 0, 1, 1], [], []>, precision = #tpu.contract_precision<fp32>} : vector<128x32xf32>, vector<32x128xf32>, vector<128x128xf32> -> vector<128x128xf32>
    %c0_3 = arith.constant 0 : index
    %c0_4 = arith.constant 0 : index
    %3 = vector.load %arg4[%c0_3, %c0_4] : memref<1x128xf32, #tpu.memory_space<vmem>>, vector<1x128xf32>
    %4 = vector.broadcast %3 : vector<1x128xf32> to vector<128x128xf32>
    %5 = arith.addf %2, %4 : vector<128x128xf32>
    %cst_5 = arith.constant dense<0x7F800000> : vector<128xf32>
    %6 = vector.multi_reduction <minimumf>, %5, %cst_5 [1] : vector<128x128xf32> to vector<128xf32>
    %7 = vector.shape_cast %6 : vector<128xf32> to vector<128x1xf32>
    %8 = tpu.iota {dimensions = array<i32: 1>} : vector<128x128xi32>
    %9 = vector.broadcast %7 : vector<128x1xf32> to vector<128x128xf32>
    %10 = arith.cmpf oeq, %5, %9 : vector<128x128xf32>
    %c128_i32 = arith.constant 128 : i32
    %11 = vector.broadcast %c128_i32 : i32 to vector<128x128xi32>
    %12 = arith.select %10, %8, %11 : vector<128x128xi1>, vector<128x128xi32>
    %cst_6 = arith.constant dense<2147483647> : vector<128xi32>
    %13 = vector.multi_reduction <minsi>, %12, %cst_6 [1] : vector<128x128xi32> to vector<128xi32>
    %14 = vector.shape_cast %13 : vector<128xi32> to vector<128x1xi32>
    %15 = vector.broadcast %14 : vector<128x1xi32> to vector<128x128xi32>
    %16 = arith.cmpi eq, %8, %15 : vector<128x128xi32>
    %17 = arith.extui %16 : vector<128x128xi1> to vector<128x128xi32>
    %18 = arith.sitofp %17 : vector<128x128xi32> to vector<128x128xf32>
    %c0_7 = arith.constant 0 : index
    %c0_8 = arith.constant 0 : index
    %19 = vector.load %arg3[%c0_7, %c0_8] : memref<128x32xf32, #tpu.memory_space<vmem>>, vector<128x32xf32>
    %cst_9 = arith.constant dense<0.000000e+00> : vector<128x32xf32>
    %20 = tpu.matmul %18, %19, %cst_9 {dimension_numbers = #tpu.dot_dimension_numbers<[1], [0], [0], [1], [0, 0, 1, 1], [], []>, precision = #tpu.contract_precision<fp32>} : vector<128x128xf32>, vector<128x32xf32>, vector<128x32xf32> -> vector<128x32xf32>
    %c0_10 = arith.constant 0 : index
    %c0_11 = arith.constant 0 : index
    %21 = vector.load %arg5[%c0_10, %c0_11] : memref<128x32xf32, #tpu.memory_space<vmem>>, vector<128x32xf32>
    tpu.vector_store %arg5[%c0_10, %c0_11], %20 {strides = array<i32>} : memref<128x32xf32, #tpu.memory_space<vmem>>, vector<128x32xf32>,
    %c0_12 = arith.constant 0 : index
    %c0_13 = arith.constant 0 : index
    %22 = vector.load %arg7[%c0_12, %c0_13] : memref<128x1xi32, #tpu.memory_space<vmem>>, vector<128x1xi32>
    tpu.vector_store %arg7[%c0_12, %c0_13], %14 {strides = array<i32>} : memref<128x1xi32, #tpu.memory_space<vmem>>, vector<128x1xi32>,
    %23 = vector.extract_strided_slice %18 {offsets = [0, 0], sizes = [128, 64], strides = [1, 1]} : vector<128x128xf32> to vector<128x64xf32>
    %24 = arith.truncf %23 : vector<128x64xf32> to vector<128x64xbf16>
    %c0_14 = arith.constant 0 : index
    %c0_15 = arith.constant 0 : index
    %25 = vector.load %arg6[%c0_14, %c0_15] : memref<128x64xbf16, #tpu.memory_space<vmem>>, vector<128x64xbf16>
    tpu.vector_store %arg6[%c0_14, %c0_15], %24 {strides = array<i32>} : memref<128x64xbf16, #tpu.memory_space<vmem>>, vector<128x64xbf16>,
    %26 = arith.subf %20, %0 : vector<128x32xf32>
    %c1_i32 = arith.constant 1 : i32
    %27 = arith.addi %arg0, %c1_i32 : i32
    %c128_i32_16 = arith.constant 128 : i32
    %28 = arith.muli %27, %c128_i32_16 : i32
    %c128_i32_17 = arith.constant 128 : i32
    %29 = arith.cmpi sgt, %28, %c128_i32_17 : i32
    %true = arith.constant true
    %30 = arith.xori %29, %true : i1
    %31 = arith.extui %30 : i1 to i32
    %c0_i32 = arith.constant 0 : i32
    %32 = arith.cmpi ne, %31, %c0_i32 : i32
    scf.if %32 {
      %35 = arith.mulf %26, %26 : vector<128x32xf32>
      %36 = vector.shape_cast %35 : vector<128x32xf32> to vector<1x128x32xf32>
      %cst_19 = arith.constant dense<0.000000e+00> : vector<1xf32>
      %37 = vector.multi_reduction <add>, %36, %cst_19 [1, 2] : vector<1x128x32xf32> to vector<1xf32>
      %38 = vector.shape_cast %37 : vector<1xf32> to vector<1x1x1xf32>
      %39 = vector.extract %38[0, 0, 0] : f32 from vector<1x1x1xf32>
      %40 = vector.broadcast %39 : f32 to vector<1x1xf32>
      %c0_20 = arith.constant 0 : index
      %c0_21 = arith.constant 0 : index
      %41 = vector.load %arg8[%c0_20, %c0_21] : memref<1x1xf32, #tpu.memory_space<vmem>>, vector<1x1xf32>
      tpu.vector_store %arg8[%c0_20, %c0_21], %40 {strides = array<i32>} : memref<1x1xf32, #tpu.memory_space<vmem>>, vector<1x1xf32>,
      %cst_22 = arith.constant dense<0.000000e+00> : vector<128xf32>
      %42 = vector.multi_reduction <add>, %18, %cst_22 [0] : vector<128x128xf32> to vector<128xf32>
      %43 = vector.shape_cast %42 : vector<128xf32> to vector<1x128xf32>
      %c0_23 = arith.constant 0 : index
      %c0_24 = arith.constant 0 : index
      %44 = vector.load %arg9[%c0_23, %c0_24] : memref<1x128xf32, #tpu.memory_space<vmem>>, vector<1x128xf32>
      tpu.vector_store %arg9[%c0_23, %c0_24], %43 {strides = array<i32>} : memref<1x128xf32, #tpu.memory_space<vmem>>, vector<1x128xf32>,
    } else {
    }
    %33 = arith.extui %29 : i1 to i32
    %c0_i32_18 = arith.constant 0 : i32
    %34 = arith.cmpi ne, %33, %c0_i32_18 : i32
    scf.if %34 {
      %c128_i32_19 = arith.constant 128 : i32
      %35 = arith.muli %arg0, %c128_i32_19 : i32
      %36 = tpu.iota {dimensions = array<i32: 0>} : vector<128x1xi32>
      %37 = vector.broadcast %35 : i32 to vector<128x1xi32>
      %38 = arith.addi %37, %36 : vector<128x1xi32>
      %c128_i32_20 = arith.constant 128 : i32
      %39 = vector.broadcast %c128_i32_20 : i32 to vector<128x1xi32>
      %40 = arith.cmpi slt, %38, %39 : vector<128x1xi32>
      %cst_21 = arith.constant 0.000000e+00 : f32
      %41 = vector.shape_cast %40 : vector<128x1xi1> to vector<128x1xi1>
      %42 = vector.broadcast %41 : vector<128x1xi1> to vector<128x32xi1>
      %43 = vector.broadcast %cst_21 : f32 to vector<128x32xf32>
      %44 = arith.select %42, %26, %43 : vector<128x32xi1>, vector<128x32xf32>
      %45 = arith.mulf %44, %44 : vector<128x32xf32>
      %46 = vector.shape_cast %45 : vector<128x32xf32> to vector<1x128x32xf32>
      %cst_22 = arith.constant dense<0.000000e+00> : vector<1xf32>
      %47 = vector.multi_reduction <add>, %46, %cst_22 [1, 2] : vector<1x128x32xf32> to vector<1xf32>
      %48 = vector.shape_cast %47 : vector<1xf32> to vector<1x1x1xf32>
      %49 = vector.extract %48[0, 0, 0] : f32 from vector<1x1x1xf32>
      %50 = vector.broadcast %49 : f32 to vector<1x1xf32>
      %c0_23 = arith.constant 0 : index
      %c0_24 = arith.constant 0 : index
      %51 = vector.load %arg8[%c0_23, %c0_24] : memref<1x1xf32, #tpu.memory_space<vmem>>, vector<1x1xf32>
      tpu.vector_store %arg8[%c0_23, %c0_24], %50 {strides = array<i32>} : memref<1x1xf32, #tpu.memory_space<vmem>>, vector<1x1xf32>,
      %cst_25 = arith.constant 0.000000e+00 : f32
      %52 = vector.shape_cast %40 : vector<128x1xi1> to vector<128x1xi1>
      %53 = vector.broadcast %52 : vector<128x1xi1> to vector<128x128xi1>
      %54 = vector.broadcast %cst_25 : f32 to vector<128x128xf32>
      %55 = arith.select %53, %18, %54 : vector<128x128xi1>, vector<128x128xf32>
      %cst_26 = arith.constant dense<0.000000e+00> : vector<128xf32>
      %56 = vector.multi_reduction <add>, %55, %cst_26 [0] : vector<128x128xf32> to vector<128xf32>
      %57 = vector.shape_cast %56 : vector<128xf32> to vector<1x128xf32>
      %c0_27 = arith.constant 0 : index
      %c0_28 = arith.constant 0 : index
      %58 = vector.load %arg9[%c0_27, %c0_28] : memref<1x128xf32, #tpu.memory_space<vmem>>, vector<1x128xf32>
      tpu.vector_store %arg9[%c0_27, %c0_28], %57 {strides = array<i32>} : memref<1x128xf32, #tpu.memory_space<vmem>>, vector<1x128xf32>,
    } else {
    }
    return
  }
  func.func @transform_0(%arg0: i32) -> (i32, i32) {
    %c0_i32 = arith.constant 0 : i32
    %c0_i32_0 = arith.constant 0 : i32
    return %arg0, %c0_i32 : i32, i32
  }
  func.func @transform_1(%arg0: i32) -> (i32, i32) {
    %c0_i32 = arith.constant 0 : i32
    %c0_i32_0 = arith.constant 0 : i32
    %c0_i32_1 = arith.constant 0 : i32
    return %c0_i32, %c0_i32_0 : i32, i32
  }
  func.func @transform_2(%arg0: i32) -> (i32, i32) {
    %c0_i32 = arith.constant 0 : i32
    %c0_i32_0 = arith.constant 0 : i32
    %c0_i32_1 = arith.constant 0 : i32
    return %c0_i32, %c0_i32_0 : i32, i32
  }
  func.func @transform_3(%arg0: i32) -> (i32, i32) {
    %c0_i32 = arith.constant 0 : i32
    %c0_i32_0 = arith.constant 0 : i32
    %c0_i32_1 = arith.constant 0 : i32
    return %c0_i32, %c0_i32_0 : i32, i32
  }
  func.func @transform_4(%arg0: i32) -> (i32, i32) {
    %c0_i32 = arith.constant 0 : i32
    %c0_i32_0 = arith.constant 0 : i32
    return %arg0, %c0_i32 : i32, i32
  }
  func.func @transform_5(%arg0: i32) -> (i32, i32) {
    %c0_i32 = arith.constant 0 : i32
    %c0_i32_0 = arith.constant 0 : i32
    return %arg0, %c0_i32 : i32, i32
  }
  func.func @transform_6(%arg0: i32) -> (i32, i32) {
    %c0_i32 = arith.constant 0 : i32
    %c0_i32_0 = arith.constant 0 : i32
    return %arg0, %c0_i32 : i32, i32
  }
  func.func @transform_7(%arg0: i32) -> (i32, i32) {
    %c0_i32 = arith.constant 0 : i32
    %c0_i32_0 = arith.constant 0 : i32
    return %arg0, %c0_i32 : i32, i32
  }
  func.func @transform_8(%arg0: i32) -> (i32, i32) {
    %c0_i32 = arith.constant 0 : i32
    %c0_i32_0 = arith.constant 0 : i32
    return %arg0, %c0_i32 : i32, i32
  }
}

module attributes {stable_mosaic.version = 11 : i64} {
  func.func @_vq_kernel(%arg0: i32, %arg1: memref<128x32xf32, #tpu.memory_space<vmem>>, %arg2: memref<32x128xf32, #tpu.memory_space<vmem>>, %arg3: memref<128x32xf32, #tpu.memory_space<vmem>>, %arg4: memref<1x128xf32, #tpu.memory_space<vmem>>, %arg5: memref<128x32xf32, #tpu.memory_space<vmem>>, %arg6: memref<128x64xbf16, #tpu.memory_space<vmem>>, %arg7: memref<128x1xi32, #tpu.memory_space<vmem>>, %arg8: memref<1x1xf32, #tpu.memory_space<vmem>>, %arg9: memref<1x128xf32, #tpu.memory_space<vmem>>) attributes {dimension_semantics = [#tpu.dimension_semantics<parallel>], iteration_bounds = array<i64: 1>, scalar_prefetch = 0 : i64, scratch_operands = 0 : i64, tpu.core_type = #tpu.core_type<tc>, window_params = [{transform_indices = @transform_0, window_bounds = array<i64: 128, 32>}, {pipeline_mode = #tpu.pipeline_mode<synchronous>, transform_indices = @transform_1, window_bounds = array<i64: 32, 128>}, {pipeline_mode = #tpu.pipeline_mode<synchronous>, transform_indices = @transform_2, window_bounds = array<i64: 128, 32>}, {pipeline_mode = #tpu.pipeline_mode<synchronous>, transform_indices = @transform_3, window_bounds = array<i64: 1, 128>}, {transform_indices = @transform_4, window_bounds = array<i64: 128, 32>}, {transform_indices = @transform_5, window_bounds = array<i64: 128, 64>}, {transform_indices = @transform_6, window_bounds = array<i64: 128, 1>}, {transform_indices = @transform_7, window_bounds = array<i64: 1, 1>}, {transform_indices = @transform_8, window_bounds = array<i64: 1, 128>}]} {
    %c0 = arith.constant 0 : index
    %c0_0 = arith.constant 0 : index
    %0 = vector.load %arg1[%c0, %c0_0] : memref<128x32xf32, #tpu.memory_space<vmem>>, vector<128x32xf32>
    %c0_1 = arith.constant 0 : index
    %c0_2 = arith.constant 0 : index
    %1 = vector.load %arg2[%c0_1, %c0_2] : memref<32x128xf32, #tpu.memory_space<vmem>>, vector<32x128xf32>
    %cst = arith.constant dense<0.000000e+00> : vector<128x128xf32>
    %2 = tpu.matmul %0, %1, %cst {dimension_numbers = #tpu.dot_dimension_numbers<[1], [0], [0], [1], [0, 0, 1, 1], [], []>, precision = #tpu.contract_precision<fp32>} : vector<128x32xf32>, vector<32x128xf32>, vector<128x128xf32> -> vector<128x128xf32>
    %c0_3 = arith.constant 0 : index
    %c0_4 = arith.constant 0 : index
    %3 = vector.load %arg4[%c0_3, %c0_4] : memref<1x128xf32, #tpu.memory_space<vmem>>, vector<1x128xf32>
    %4 = vector.broadcast %3 : vector<1x128xf32> to vector<128x128xf32>
    %5 = arith.addf %2, %4 : vector<128x128xf32>
    %cst_5 = arith.constant dense<0x7F800000> : vector<128xf32>
    %6 = vector.multi_reduction <minimumf>, %5, %cst_5 [1] : vector<128x128xf32> to vector<128xf32>
    %7 = vector.shape_cast %6 : vector<128xf32> to vector<128x1xf32>
    %8 = tpu.iota {dimensions = array<i32: 1>} : vector<128x128xi32>
    %9 = vector.broadcast %7 : vector<128x1xf32> to vector<128x128xf32>
    %10 = arith.cmpf oeq, %5, %9 : vector<128x128xf32>
    %c128_i32 = arith.constant 128 : i32
    %11 = vector.broadcast %c128_i32 : i32 to vector<128x128xi32>
    %12 = arith.select %10, %8, %11 : vector<128x128xi1>, vector<128x128xi32>
    %cst_6 = arith.constant dense<2147483647> : vector<128xi32>
    %13 = vector.multi_reduction <minsi>, %12, %cst_6 [1] : vector<128x128xi32> to vector<128xi32>
    %14 = vector.shape_cast %13 : vector<128xi32> to vector<128x1xi32>
    %15 = vector.broadcast %14 : vector<128x1xi32> to vector<128x128xi32>
    %16 = arith.cmpi eq, %8, %15 : vector<128x128xi32>
    %17 = arith.extui %16 : vector<128x128xi1> to vector<128x128xi32>
    %18 = arith.sitofp %17 : vector<128x128xi32> to vector<128x128xf32>
    %c0_7 = arith.constant 0 : index
    %c0_8 = arith.constant 0 : index
    %19 = vector.load %arg3[%c0_7, %c0_8] : memref<128x32xf32, #tpu.memory_space<vmem>>, vector<128x32xf32>
    %cst_9 = arith.constant dense<0.000000e+00> : vector<128x32xf32>
    %20 = tpu.matmul %18, %19, %cst_9 {dimension_numbers = #tpu.dot_dimension_numbers<[1], [0], [0], [1], [0, 0, 1, 1], [], []>, precision = #tpu.contract_precision<fp32>} : vector<128x128xf32>, vector<128x32xf32>, vector<128x32xf32> -> vector<128x32xf32>
    %c0_10 = arith.constant 0 : index
    %c0_11 = arith.constant 0 : index
    %21 = vector.load %arg5[%c0_10, %c0_11] : memref<128x32xf32, #tpu.memory_space<vmem>>, vector<128x32xf32>
    tpu.vector_store %arg5[%c0_10, %c0_11], %20 {strides = array<i32>} : memref<128x32xf32, #tpu.memory_space<vmem>>, vector<128x32xf32>,
    %c0_12 = arith.constant 0 : index
    %c0_13 = arith.constant 0 : index
    %22 = vector.load %arg7[%c0_12, %c0_13] : memref<128x1xi32, #tpu.memory_space<vmem>>, vector<128x1xi32>
    tpu.vector_store %arg7[%c0_12, %c0_13], %14 {strides = array<i32>} : memref<128x1xi32, #tpu.memory_space<vmem>>, vector<128x1xi32>,
    %23 = vector.extract_strided_slice %18 {offsets = [0, 0], sizes = [128, 64], strides = [1, 1]} : vector<128x128xf32> to vector<128x64xf32>
    %24 = arith.truncf %23 : vector<128x64xf32> to vector<128x64xbf16>
    %c0_14 = arith.constant 0 : index
    %c0_15 = arith.constant 0 : index
    %25 = vector.load %arg6[%c0_14, %c0_15] : memref<128x64xbf16, #tpu.memory_space<vmem>>, vector<128x64xbf16>
    tpu.vector_store %arg6[%c0_14, %c0_15], %24 {strides = array<i32>} : memref<128x64xbf16, #tpu.memory_space<vmem>>, vector<128x64xbf16>,
    %26 = arith.subf %20, %0 : vector<128x32xf32>
    %c1_i32 = arith.constant 1 : i32
    %27 = arith.addi %arg0, %c1_i32 : i32
    %c128_i32_16 = arith.constant 128 : i32
    %28 = arith.muli %27, %c128_i32_16 : i32
    %c128_i32_17 = arith.constant 128 : i32
    %29 = arith.cmpi sgt, %28, %c128_i32_17 : i32
    %true = arith.constant true
    %30 = arith.xori %29, %true : i1
    %31 = arith.extui %30 : i1 to i32
    %c0_i32 = arith.constant 0 : i32
    %32 = arith.cmpi ne, %31, %c0_i32 : i32
    scf.if %32 {
      %35 = arith.mulf %26, %26 : vector<128x32xf32>
      %36 = vector.shape_cast %35 : vector<128x32xf32> to vector<1x128x32xf32>
      %cst_19 = arith.constant dense<0.000000e+00> : vector<1xf32>
      %37 = vector.multi_reduction <add>, %36, %cst_19 [1, 2] : vector<1x128x32xf32> to vector<1xf32>
      %38 = vector.shape_cast %37 : vector<1xf32> to vector<1x1x1xf32>
      %39 = vector.extract %38[0, 0, 0] : f32 from vector<1x1x1xf32>
      %40 = vector.broadcast %39 : f32 to vector<1x1xf32>
      %c0_20 = arith.constant 0 : index
      %c0_21 = arith.constant 0 : index
      %41 = vector.load %arg8[%c0_20, %c0_21] : memref<1x1xf32, #tpu.memory_space<vmem>>, vector<1x1xf32>
      tpu.vector_store %arg8[%c0_20, %c0_21], %40 {strides = array<i32>} : memref<1x1xf32, #tpu.memory_space<vmem>>, vector<1x1xf32>,
      %cst_22 = arith.constant dense<0.000000e+00> : vector<128xf32>
      %42 = vector.multi_reduction <add>, %18, %cst_22 [0] : vector<128x128xf32> to vector<128xf32>
      %43 = vector.shape_cast %42 : vector<128xf32> to vector<1x128xf32>
      %c0_23 = arith.constant 0 : index
      %c0_24 = arith.constant 0 : index
      %44 = vector.load %arg9[%c0_23, %c0_24] : memref<1x128xf32, #tpu.memory_space<vmem>>, vector<1x128xf32>
      tpu.vector_store %arg9[%c0_23, %c0_24], %43 {strides = array<i32>} : memref<1x128xf32, #tpu.memory_space<vmem>>, vector<1x128xf32>,
    } else {
    }
    %33 = arith.extui %29 : i1 to i32
    %c0_i32_18 = arith.constant 0 : i32
    %34 = arith.cmpi ne, %33, %c0_i32_18 : i32
    scf.if %34 {
      %c128_i32_19 = arith.constant 128 : i32
      %35 = arith.muli %arg0, %c128_i32_19 : i32
      %36 = tpu.iota {dimensions = array<i32: 0>} : vector<128x1xi32>
      %37 = vector.broadcast %35 : i32 to vector<128x1xi32>
      %38 = arith.addi %37, %36 : vector<128x1xi32>
      %c128_i32_20 = arith.constant 128 : i32
      %39 = vector.broadcast %c128_i32_20 : i32 to vector<128x1xi32>
      %40 = arith.cmpi slt, %38, %39 : vector<128x1xi32>
      %cst_21 = arith.constant 0.000000e+00 : f32
      %41 = vector.shape_cast %40 : vector<128x1xi1> to vector<128x1xi1>
      %42 = vector.broadcast %41 : vector<128x1xi1> to vector<128x32xi1>
      %43 = vector.broadcast %cst_21 : f32 to vector<128x32xf32>
      %44 = arith.select %42, %26, %43 : vector<128x32xi1>, vector<128x32xf32>
      %45 = arith.mulf %44, %44 : vector<128x32xf32>
      %46 = vector.shape_cast %45 : vector<128x32xf32> to vector<1x128x32xf32>
      %cst_22 = arith.constant dense<0.000000e+00> : vector<1xf32>
      %47 = vector.multi_reduction <add>, %46, %cst_22 [1, 2] : vector<1x128x32xf32> to vector<1xf32>
      %48 = vector.shape_cast %47 : vector<1xf32> to vector<1x1x1xf32>
      %49 = vector.extract %48[0, 0, 0] : f32 from vector<1x1x1xf32>
      %50 = vector.broadcast %49 : f32 to vector<1x1xf32>
      %c0_23 = arith.constant 0 : index
      %c0_24 = arith.constant 0 : index
      %51 = vector.load %arg8[%c0_23, %c0_24] : memref<1x1xf32, #tpu.memory_space<vmem>>, vector<1x1xf32>
      tpu.vector_store %arg8[%c0_23, %c0_24], %50 {strides = array<i32>} : memref<1x1xf32, #tpu.memory_space<vmem>>, vector<1x1xf32>,
      %cst_25 = arith.constant 0.000000e+00 : f32
      %52 = vector.shape_cast %40 : vector<128x1xi1> to vector<128x1xi1>
      %53 = vector.broadcast %52 : vector<128x1xi1> to vector<128x128xi1>
      %54 = vector.broadcast %cst_25 : f32 to vector<128x128xf32>
      %55 = arith.select %53, %18, %54 : vector<128x128xi1>, vector<128x128xf32>
      %cst_26 = arith.constant dense<0.000000e+00> : vector<128xf32>
      %56 = vector.multi_reduction <add>, %55, %cst_26 [0] : vector<128x128xf32> to vector<128xf32>
      %57 = vector.shape_cast %56 : vector<128xf32> to vector<1x128xf32>
      %c0_27 = arith.constant 0 : index
      %c0_28 = arith.constant 0 : index
      %58 = vector.load %arg9[%c0_27, %c0_28] : memref<1x128xf32, #tpu.memory_space<vmem>>, vector<1x128xf32>
      tpu.vector_store %arg9[%c0_27, %c0_28], %57 {strides = array<i32>} : memref<1x128xf32, #tpu.memory_space<vmem>>, vector<1x128xf32>,
    } else {
    }
    return
  }
  func.func @transform_0(%arg0: i32) -> (i32, i32) {
    %c0_i32 = arith.constant 0 : i32
    %c0_i32_0 = arith.constant 0 : i32
    return %arg0, %c0_i32 : i32, i32
  }
  func.func @transform_1(%arg0: i32) -> (i32, i32) {
    %c0_i32 = arith.constant 0 : i32
    %c0_i32_0 = arith.constant 0 : i32
    %c0_i32_1 = arith.constant 0 : i32
    return %c0_i32, %c0_i32_0 : i32, i32
  }
  func.func @transform_2(%arg0: i32) -> (i32, i32) {
    %c0_i32 = arith.constant 0 : i32
    %c0_i32_0 = arith.constant 0 : i32
    %c0_i32_1 = arith.constant 0 : i32
    return %c0_i32, %c0_i32_0 : i32, i32
  }
  func.func @transform_3(%arg0: i32) -> (i32, i32) {
    %c0_i32 = arith.constant 0 : i32
    %c0_i32_0 = arith.constant 0 : i32
    %c0_i32_1 = arith.constant 0 : i32
    return %c0_i32, %c0_i32_0 : i32, i32
  }
  func.func @transform_4(%arg0: i32) -> (i32, i32) {
    %c0_i32 = arith.constant 0 : i32
    %c0_i32_0 = arith.constant 0 : i32
    return %arg0, %c0_i32 : i32, i32
  }
  func.func @transform_5(%arg0: i32) -> (i32, i32) {
    %c0_i32 = arith.constant 0 : i32
    %c0_i32_0 = arith.constant 0 : i32
    return %arg0, %c0_i32 : i32, i32
  }
  func.func @transform_6(%arg0: i32) -> (i32, i32) {
    %c0_i32 = arith.constant 0 : i32
    %c0_i32_0 = arith.constant 0 : i32
    return %arg0, %c0_i32 : i32, i32
  }
  func.func @transform_7(%arg0: i32) -> (i32, i32) {
    %c0_i32 = arith.constant 0 : i32
    %c0_i32_0 = arith.constant 0 : i32
    return %arg0, %c0_i32 : i32, i32
  }
  func.func @transform_8(%arg0: i32) -> (i32, i32) {
    %c0_i32 = arith.constant 0 : i32
    %c0_i32_0 = arith.constant 0 : i32
    return %arg0, %c0_i32 : i32, i32
  }
}

</mosaic_0001>

<bundles_post_ra>
// kernel: tpu_custom_call.1
= control target key start
LH: loop header
LB: loop body
LE: loop exit
PB: predicated region body
PF: predicated region fallthrough
CT: control target
= control target key end

     0   :  { %14 = vsyncpa [#allocation3], 0  ;;  %vm6798_vm0 = vcmask 261120   ;;  %s6731_s0 = inlined_call_operand.vmem [shape: f32[128,32], index: 0, kind: input, shape index: {}]   ;;  %s6732_s1 = inlined_call_operand.vmem [shape: f32[32,128], index: 1, kind: input, shape index: {}]   ;;  %s6733_s2 = inlined_call_operand.vmem [shape: f32[128,32], index: 2, kind: input, shape index: {}]   ;;  %s6734_s3 = inlined_call_operand.vmem [shape: f32[1,128], index: 3, kind: input, shape index: {}]   ;;  %s6735_s4 = inlined_call_operand.vmem [shape: f32[128,32], index: 4, kind: output, shape index: {0}]   ;;  %s6736_s5 = inlined_call_operand.vmem [shape: bf16[128,64], index: 5, kind: output, shape index: {1}]   ;;  %s6737_s6 = inlined_call_operand.vmem [shape: s32[128,1], index: 6, kind: output, shape index: {2}]   ;;  %s6738_s7 = inlined_call_operand.hbm [shape: f32[1,1], index: 7, kind: output, shape index: {3}]   ;;  %s6739_s8 = inlined_call_operand.hbm [shape: f32[1,128], index: 8, kind: output, shape index: {4}]  }
   0x1   :  { %v40_v0 = vld [vmem:[%s6732_s1] sm:$0xff]  ;;  %v41_v1 = vld [vmem:[%s6732_s1 + $0x8] sm:$0xff]  ;;  %v4824_v2 = vld [vmem:[%s6732_s1 + $0x10] sm:$0xff] }
   0x2   :  { %v101_v3 = vand.u32 4294901760, %v40_v0  ;;  %v104_v4 = vand.u32 4294901760, %v41_v1  ;;  %v4829_v5 = vld [vmem:[%s6732_s1 + $0x18] sm:$0xff]  ;;  %v107_v6 = vand.u32 4294901760, %v4824_v2  ;;  %v24_v7 = vld [vmem:[%s6731_s0] sm:$0xff]  ;;  %v25_v8 = vld [vmem:[%s6731_s0 + $0x8] sm:$0xff] }
   0x3   :  { %v110_v9 = vand.u32 4294901760, %v4829_v5  ;;  %v53_v10 = vsel %vm6798_vm0, %v24_v7, 0  ;;  %v56_v11 = vsel %vm6798_vm0, %v25_v8, 0  ;;  %v26_v12 = vld [vmem:[%s6731_s0 + $0x10] sm:$0xff]  ;;  %v27_v13 = vld [vmem:[%s6731_s0 + $0x18] sm:$0xff]  ;;  %v28_v18 = vld [vmem:[%s6731_s0 + $0x20] sm:$0xff] }
   0x4   :  { %v4847_v14 = vpack.c.bf16 %v104_v4, %v101_v3  ;;  %v4849_v15 = vand.u32 4294901760, %v53_v10  ;;  %v4851_v16 = vand.u32 4294901760, %v56_v11  ;;  %v4853_v17 = vsub.f32 %v40_v0, %v101_v3  ;;  %v29_v19 = vld [vmem:[%s6731_s0 + $0x28] sm:$0xff] }
   0x5   :  { %v4865_v20 = vpack.c.bf16 %v110_v9, %v107_v6  ;;  %v4867_v21 = vsub.f32 %v41_v1, %v104_v4  ;;  %v59_v22 = vsel %vm6798_vm0, %v26_v12, 0  ;;  %v62_v23 = vsel %vm6798_vm0, %v27_v13, 0 }
   0x6   :  { %4265 = vmatprep.subr.bf16.mxu0 %v4847_v14  ;;  %v4873_v24 = vsub.f32 %v53_v10, %v4849_v15  ;;  %v4876_v25 = vsub.f32 %v56_v11, %v4851_v16  ;;  %v332_v26 = vand.u32 4294901760, %v4853_v17  ;;  %v4879_v27 = vand.u32 4294901760, %v59_v22 }
   0x7   :  { %4267 = vmatpush3.bf16.msra.mxu0 %v4847_v14  ;;  %v339_v28 = vand.u32 4294901760, %v4867_v21  ;;  %v4883_v29 = vand.u32 4294901760, %v62_v23  ;;  %v65_v30 = vsel %vm6798_vm0, %v28_v18, 0  ;;  %v68_v31 = vsel %vm6798_vm0, %v29_v19, 0 }
   0x8   :  { %4269 = vmatprep.subr.bf16.mxu0 %v4865_v20  ;;  %v171_v32 = vand.u32 4294901760, %v4873_v24  ;;  %v181_v33 = vand.u32 4294901760, %v4876_v25  ;;  %v333_v34 = vsub.f32 %v4853_v17, %v332_v26  ;;  %v4894_v35 = vsub.f32 %v59_v22, %v4879_v27 }
   0x9   :  { %15 = vsyncpa [#allocation5], 0  ;;  %v340_v36 = vsub.f32 %v4867_v21, %v339_v28  ;;  %v4900_v37 = vsub.f32 %v62_v23, %v4883_v29  ;;  %v4902_v38 = vand.u32 4294901760, %v65_v30  ;;  %v4904_v39 = vand.u32 4294901760, %v68_v31  ;;  %v30_v40 = vld [vmem:[%s6731_s0 + $0x30] sm:$0xff]  ;;  %v31_v49 = vld [vmem:[%s6731_s0 + $0x38] sm:$0xff] }
   0xa   :  { %v172_v41 = vsub.f32 %v4873_v24, %v171_v32  ;;  %v182_v42 = vsub.f32 %v4876_v25, %v181_v33  ;;  %v334_v43 = vand.u32 4294901760, %v333_v34  ;;  %v191_v44 = vand.u32 4294901760, %v4894_v35  ;;  %v32_v50 = vld [vmem:[%s6731_s0 + $0x40] sm:$0xff]  ;;  %v33_v59 = vld [vmem:[%s6731_s0 + $0x48] sm:$0xff]  ;;  %v34_v12 = vld [vmem:[%s6731_s0 + $0x50] sm:$0xff]  ;;  %s4768_s27 = smov [#allocation4]  }
   0xb   :  { %4271 = vmatpush3.bf16.msra.mxu0 %v4865_v20  ;;  %v341_v45 = vand.u32 4294901760, %v340_v36  ;;  %v201_v46 = vand.u32 4294901760, %v4900_v37  ;;  %v4919_v47 = vsub.f32 %v65_v30, %v4902_v38  ;;  %v4922_v48 = vsub.f32 %v68_v31, %v4904_v39  ;;  %v35_v13 = vld [vmem:[%s6731_s0 + $0x58] sm:$0xff] }
   0xc   :  { %v173_v51 = vand.u32 4294901760, %v172_v41  ;;  %v183_v52 = vand.u32 4294901760, %v182_v42  ;;  %v192_v53 = vsub.f32 %v4894_v35, %v191_v44  ;;  %v71_v54 = vsel %vm6798_vm0, %v30_v40, 0 }
   0xd   :  { %v4272_v55 = vpack.c.bf16 %v341_v45, %v334_v43  ;;  %v202_v56 = vsub.f32 %v4900_v37, %v201_v46  ;;  %v211_v57 = vand.u32 4294901760, %v4919_v47  ;;  %v221_v58 = vand.u32 4294901760, %v4922_v48 }
   0xe   :  { %3744 = vmatprep.mubr.f32.mxu0 %v173_v51  ;;  %v193_v60 = vand.u32 4294901760, %v192_v53  ;;  %v4942_v61 = vand.u32 4294901760, %v71_v54  ;;  %v74_v62 = vsel %vm6798_vm0, %v31_v49, 0  ;;  %v77_v63 = vsel %vm6798_vm0, %v32_v50, 0  ;;  %v37_v53 = vld [vmem:[%s6731_s0 + $0x68] sm:$0xff] }
   0xf   :  { %3745 = vmatmul.mubr.f32.vlgmr.msra.gmra.mrb[0].mxu0 %v183_v52  ;;  %4273 = vmatprep.subr.bf16.mxu0 %v4272_v55  ;;  %v203_v0 = vand.u32 4294901760, %v202_v56  ;;  %v212_v1 = vsub.f32 %v4919_v47, %v211_v57  ;;  %v222_v3 = vsub.f32 %v4922_v48, %v221_v58  ;;  %v4952_v4 = vand.u32 4294901760, %v74_v62  ;;  %v36_v52 = vld [vmem:[%s6731_s0 + $0x60] sm:$0xff] }
  0x10   :  { %4275 = vmatpush3.bf16.msra.mxu0 %v4272_v55  ;;  %3747 = vmatprep.mubr.f32.mxu0 %v193_v60  ;;  %v4955_v7 = vsub.f32 %v71_v54, %v4942_v61  ;;  %v4957_v8 = vand.u32 4294901760, %v77_v63  ;;  %v80_v10 = vsel %vm6798_vm0, %v33_v59, 0  ;;  %v4963_v11 = vsub.f32 %v4824_v2, %v107_v6 }
  0x11   :  { %v213_v18 = vand.u32 4294901760, %v212_v1  ;;  %v223_v19 = vand.u32 4294901760, %v222_v3  ;;  %v4972_v22 = vsub.f32 %v74_v62, %v4952_v4  ;;  %v4974_v23 = vand.u32 4294901760, %v80_v10  ;;  %v38_v1 = vld [vmem:[%s6731_s0 + $0x70] sm:$0xff]  ;;  %v39_v3 = vld [vmem:[%s6731_s0 + $0x78] sm:$0xff] }
  0x12   :  { %v231_v30 = vand.u32 4294901760, %v4955_v7  ;;  %v4978_v2 = vsub.f32 %v77_v63, %v4957_v8  ;;  %v346_v6 = vand.u32 4294901760, %v4963_v11  ;;  %v4984_v31 = vsub.f32 %v4829_v5, %v110_v9 }
  0x13   :  { %3748 = vmatmul.mubr.f32.gmra.mrb[2].mxu0 %v203_v0  ;;  %v241_v34 = vand.u32 4294901760, %v4972_v22  ;;  %v4988_v36 = vsub.f32 %v80_v10, %v4974_v23  ;;  %v83_v40 = vsel %vm6798_vm0, %v34_v12, 0  ;;  %v86_v41 = vsel %vm6798_vm0, %v35_v13, 0 }
  0x14   :  { %3750 = vmatprep.mubr.f32.mxu0 %v213_v18  ;;  %v232_v42 = vsub.f32 %v4955_v7, %v231_v30  ;;  %v251_v43 = vand.u32 4294901760, %v4978_v2  ;;  %v347_v5 = vsub.f32 %v4963_v11, %v346_v6  ;;  %v353_v9 = vand.u32 4294901760, %v4984_v31 }
  0x15   :  { %v242_v45 = vsub.f32 %v4972_v22, %v241_v34  ;;  %v6740_v49 = vand.u32 4294901760, %v4988_v36  ;;  %v5002_v50 = vand.u32 4294901760, %v83_v40  ;;  %v5004_v51 = vand.u32 4294901760, %v86_v41 }
  0x16   :  { %v233_v54 = vand.u32 4294901760, %v232_v42  ;;  %v252_v55 = vsub.f32 %v4978_v2, %v251_v43  ;;  %v348_v56 = vand.u32 4294901760, %v347_v5  ;;  %v354_v59 = vsub.f32 %v4984_v31, %v353_v9 }
  0x17   :  { %3751 = vmatmul.mubr.f32.gmra.mrb[4].mxu0 %v223_v19  ;;  %v243_v60 = vand.u32 4294901760, %v242_v45  ;;  %v262_v62 = vsub.f32 %v4988_v36, %v6740_v49  ;;  %v5020_v63 = vsub.f32 %v83_v40, %v5002_v50  ;;  %v5023_v0 = vsub.f32 %v86_v41, %v5004_v51 }
  0x18   :  { %3753 = vmatprep.mubr.f32.mxu0 %v233_v54  ;;  %v253_v10 = vand.u32 4294901760, %v252_v55  ;;  %v355_v12 = vand.u32 4294901760, %v354_v59  ;;  %v89_v13 = vsel %vm6798_vm0, %v36_v52, 0  ;;  %v92_v18 = vsel %vm6798_vm0, %v37_v53, 0 }
  0x19   :  { %v263_v19 = vand.u32 4294901760, %v262_v62  ;;  %v6742_v40 = vand.u32 4294901760, %v5020_v63  ;;  %v6741_v41 = vand.u32 4294901760, %v5023_v0  ;;  %v5035_v42 = vand.u32 4294901760, %v89_v13 }
  0x1a   :  { %v4276_v5 = vpack.c.bf16 %v355_v12, %v348_v56  ;;  %v5037_v45 = vand.u32 4294901760, %v92_v18  ;;  %v95_v49 = vsel %vm6798_vm0, %v38_v1, 0  ;;  %v98_v54 = vsel %vm6798_vm0, %v39_v3, 0 }
  0x1b   :  { %3754 = vmatmul.mubr.f32.gmra.mrb[6].mxu0 %v243_v60  ;;  %v272_v52 = vsub.f32 %v5020_v63, %v6742_v40  ;;  %v282_v53 = vsub.f32 %v5023_v0, %v6741_v41  ;;  %v5048_v55 = vsub.f32 %v89_v13, %v5035_v42  ;;  %v5050_v59 = vand.u32 4294901760, %v95_v49 }
  0x1c   :  { %3756 = vmatprep.mubr.f32.mxu0 %v253_v10  ;;  %4277 = vmatprep.subr.bf16.mxu0 %v4276_v5  ;;  %v5053_v56 = vsub.f32 %v92_v18, %v5037_v45  ;;  %v5055_v62 = vand.u32 4294901760, %v98_v54  ;;  %v4280_v60 = vpack.c.bf16 %v4867_v21, %v4853_v17  ;;  %v4296_v18 = vpack.c.bf16 %v339_v28, %v332_v26 }
  0x1d   :  { %4279 = vmatpush3.bf16.msra.mxu0 %v4276_v5  ;;  %v273_v1 = vand.u32 4294901760, %v272_v52  ;;  %v291_v3 = vand.u32 4294901760, %v5048_v55  ;;  %v5061_v12 = vsub.f32 %v95_v49, %v5050_v59  ;;  %v5071_v41 = vpack.c.bf16 %v353_v9, %v346_v6 }
  0x1e   :  { %v301_v13 = vand.u32 4294901760, %v5053_v56  ;;  %v5065_v10 = vsub.f32 %v98_v54, %v5055_v62  ;;  %4281 = vmatprep.subr.bf16.mxu0 %v4280_v60  ;;  %v283_v5 = vand.u32 4294901760, %v282_v53 }
  0x1f   :  { %3757 = vmatmul.mubr.f32.gmra.mrb[8].mxu0 %v263_v19  ;;  %v292_v49 = vsub.f32 %v5048_v55, %v291_v3  ;;  %v311_v52 = vand.u32 4294901760, %v5061_v12  ;;  %v4284_v19 = vpack.c.bf16 %v4984_v31, %v4963_v11 }
  0x20   :  { %3759 = vmatprep.mubr.f32.mxu0 %v273_v1  ;;  %v302_v54 = vsub.f32 %v5053_v56, %v301_v13  ;;  %v321_v17 = vand.u32 4294901760, %v5065_v10 }
  0x21   :  { %v293_v40 = vand.u32 4294901760, %v292_v49  ;;  %v312_v21 = vsub.f32 %v5061_v12, %v311_v52 }
  0x22   :  { %v303_v26 = vand.u32 4294901760, %v302_v54  ;;  %v322_v28 = vsub.f32 %v5065_v10, %v321_v17 }
  0x23   :  { %3760 = vmatmul.mubr.f32.gmra.mrb[10].mxu0 %v283_v5  ;;  %v313_v6 = vand.u32 4294901760, %v312_v21 }
  0x24   :  { %3762 = vmatprep.mubr.f32.mxu0 %v293_v40  ;;  %v323_v9 = vand.u32 4294901760, %v322_v28 }
  0x27   :  { %3763 = vmatmul.mubr.f32.gmra.mrb[12].mxu0 %v303_v26 }
  0x28   :  { %3765 = vmatprep.mubr.f32.mxu0 %v313_v6 }
  0x2b   :  { %3766 = vmatmul.mubr.f32.gmra.mrb[14].mxu0 %v323_v9 }
  0x2c   :  { %3776 = vmatprep.mubr.f32.mxu0 %v4849_v15 }
  0x2f   :  { %3777 = vmatmul.mubr.f32.vlgmr.msra.gmra.mrb[0].mxu0 %v4851_v16 }
  0x30   :  { %4283 = vmatpush3.bf16.msra.mxu0 %v4280_v60  ;;  %3779 = vmatprep.mubr.f32.mxu0 %v4879_v27 }
  0x31   :  { %4285 = vmatprep.subr.bf16.mxu0 %v4284_v19 }
  0x33   :  { %3780 = vmatmul.mubr.f32.gmra.mrb[2].mxu0 %v4883_v29 }
  0x34   :  { %3782 = vmatprep.mubr.f32.mxu0 %v4902_v38  ;;  %4287 = vmatpush3.bf16.msra.mxu0 %v4284_v19 }
  0x35   :  { %4289 = vmatprep.subr.bf16.mxu0 %v4847_v14 }
  0x37   :  { %3783 = vmatmul.mubr.f32.gmra.mrb[4].mxu0 %v4904_v39 }
  0x38   :  { %3785 = vmatprep.mubr.f32.mxu0 %v4942_v61 }
  0x3b   :  { %3786 = vmatmul.mubr.f32.gmra.mrb[6].mxu0 %v4952_v4 }
  0x3c   :  { %3788 = vmatprep.mubr.f32.mxu0 %v4957_v8 }
  0x3f   :  { %3789 = vmatmul.mubr.f32.gmra.mrb[8].mxu0 %v4974_v23 }
  0x40   :  { %3791 = vmatprep.mubr.f32.mxu0 %v5002_v50 }
  0x43   :  { %3792 = vmatmul.mubr.f32.gmra.mrb[10].mxu0 %v5004_v51 }
  0x44   :  { %3794 = vmatprep.mubr.f32.mxu0 %v5035_v42 }
  0x47   :  { %3795 = vmatmul.mubr.f32.gmra.mrb[12].mxu0 %v5037_v45 }
  0x48   :  { %3797 = vmatprep.mubr.f32.mxu0 %v5050_v59 }
  0x4b   :  { %3798 = vmatmul.mubr.f32.gmra.mrb[14].mxu0 %v5055_v62 }
  0x4c   :  { %3808 = vmatprep.mubr.f32.mxu0 %v4873_v24  ;;  %v6814_v24 = vand.u32 4294901760, %v4988_v36 }
  0x4f   :  { %3809 = vmatmul.mubr.f32.vlgmr.msra.gmra.mrb[0].mxu0 %v4876_v25  ;;  %v6815_v25 = vand.u32 4294901760, %v5020_v63 }
  0x50   :  { %4291 = vmatpush3.bf16.msra.mxu0 %v4847_v14  ;;  %3811 = vmatprep.mubr.f32.mxu0 %v4894_v35 }
  0x51   :  { %4293 = vmatprep.subr.bf16.mxu0 %v4865_v20 }
  0x53   :  { %3812 = vmatmul.mubr.f32.gmra.mrb[2].mxu0 %v4900_v37 }
  0x54   :  { %3814 = vmatprep.mubr.f32.mxu0 %v4919_v47  ;;  %4295 = vmatpush3.bf16.msra.mxu0 %v4865_v20 }
  0x55   :  { %4297 = vmatprep.subr.bf16.mxu0 %v4296_v18 }
  0x57   :  { %3815 = vmatmul.mubr.f32.gmra.mrb[4].mxu0 %v4922_v48 }
  0x58   :  { %3817 = vmatprep.mubr.f32.mxu0 %v4955_v7 }
  0x5b   :  { %3818 = vmatmul.mubr.f32.gmra.mrb[6].mxu0 %v4972_v22 }
  0x5c   :  { %3820 = vmatprep.mubr.f32.mxu0 %v4978_v2 }
  0x5f   :  { %3821 = vmatmul.mubr.f32.gmra.mrb[8].mxu0 %v4988_v36 }
  0x60   :  { %3823 = vmatprep.mubr.f32.mxu0 %v5020_v63 }
  0x63   :  { %3824 = vmatmul.mubr.f32.gmra.mrb[10].mxu0 %v5023_v0 }
  0x64   :  { %3826 = vmatprep.mubr.f32.mxu0 %v5048_v55 }
  0x67   :  { %3827 = vmatmul.mubr.f32.gmra.mrb[12].mxu0 %v5053_v56 }
  0x68   :  { %3829 = vmatprep.mubr.f32.mxu0 %v5061_v12 }
  0x6b   :  { %3830 = vmatmul.mubr.f32.gmra.mrb[14].mxu0 %v5065_v10 }
  0x6c   :  { %3840 = vmatprep.mubr.f32.mxu0 %v171_v32  ;;  %v6816_v32 = vand.u32 4294901760, %v5023_v0  ;;  %v1262_v0 = vlaneseq }
  0x6e   :  { %v5231_v40 = vand.u32 127, %v1262_v0 }
  0x6f   :  { %3841 = vmatmul.mubr.f32.vlgmr.msra.gmra.mrb[0].mxu0 %v181_v33 }
  0x70   :  { %4299 = vmatpush3.bf16.msra.mxu0 %v4296_v18  ;;  %3843 = vmatprep.mubr.f32.mxu0 %v191_v44 }
  0x71   :  { %4301 = vmatprep.subr.bf16.mxu0 %v5071_v41 }
  0x73   :  { %3844 = vmatmul.mubr.f32.gmra.mrb[2].mxu0 %v201_v46 }
  0x74   :  { %3846 = vmatprep.mubr.f32.mxu0 %v211_v57  ;;  %4303 = vmatpush3.bf16.msra.mxu0 %v5071_v41 }
  0x75   :  { %4305 = vmatprep.subr.bf16.mxu0 %v4847_v14 }
  0x77   :  { %3847 = vmatmul.mubr.f32.gmra.mrb[4].mxu0 %v221_v58 }
  0x78   :  { %3849 = vmatprep.mubr.f32.mxu0 %v231_v30 }
  0x7b   :  { %3850 = vmatmul.mubr.f32.gmra.mrb[6].mxu0 %v241_v34 }
  0x7c   :  { %3852 = vmatprep.mubr.f32.mxu0 %v251_v43 }
  0x7f   :  { %3853 = vmatmul.mubr.f32.gmra.mrb[8].mxu0 %v6814_v24 }
  0x80   :  { %3855 = vmatprep.mubr.f32.mxu0 %v6815_v25 }
  0x83   :  { %3856 = vmatmul.mubr.f32.gmra.mrb[10].mxu0 %v6816_v32 }
  0x84   :  { %3858 = vmatprep.mubr.f32.mxu0 %v291_v3 }
  0x87   :  { %3859 = vmatmul.mubr.f32.gmra.mrb[12].mxu0 %v301_v13 }
  0x88   :  { %3861 = vmatprep.mubr.f32.mxu0 %v311_v52 }
  0x8b   :  { %3862 = vmatmul.mubr.f32.gmra.mrb[14].mxu0 %v321_v17 }
  0x8c   :  { %3872 = vmatprep.mubr.f32.mxu0 %v4849_v15 }
  0x8f   :  { %3873 = vmatmul.mubr.f32.vlgmr.msra.gmra.mrb[0].mxu0 %v4851_v16 }
  0x90   :  { %4307 = vmatpush3.bf16.msra.mxu0 %v4847_v14  ;;  %3875 = vmatprep.mubr.f32.mxu0 %v4879_v27  ;;  %v3327_v14 = vld [vmem:[%s6734_s3] ss:$0 sm:$0xff] }
  0x91   :  { %4309 = vmatprep.subr.bf16.mxu0 %v4865_v20 }
  0x93   :  { %3876 = vmatmul.mubr.f32.gmra.mrb[2].mxu0 %v4883_v29 }
  0x94   :  { %3878 = vmatprep.mubr.f32.mxu0 %v4902_v38  ;;  %4311 = vmatpush3.bf16.msra.mxu0 %v4865_v20 }
  0x97   :  { %3879 = vmatmul.mubr.f32.gmra.mrb[4].mxu0 %v4904_v39 }
  0x98   :  { %3881 = vmatprep.mubr.f32.mxu0 %v4942_v61 }
  0x9b   :  { %3882 = vmatmul.mubr.f32.gmra.mrb[6].mxu0 %v4952_v4 }
  0x9c   :  { %3884 = vmatprep.mubr.f32.mxu0 %v4957_v8 }
  0x9f   :  { %3885 = vmatmul.mubr.f32.gmra.mrb[8].mxu0 %v4974_v23 }
  0xa0   :  { %3887 = vmatprep.mubr.f32.mxu0 %v5002_v50 }
  0xa3   :  { %3888 = vmatmul.mubr.f32.gmra.mrb[10].mxu0 %v5004_v51 }
  0xa4   :  { %3890 = vmatprep.mubr.f32.mxu0 %v5035_v42 }
  0xa7   :  { %3891 = vmatmul.mubr.f32.gmra.mrb[12].mxu0 %v5037_v45 }
  0xa8   :  { %3893 = vmatprep.mubr.f32.mxu0 %v5050_v59 }
  0xab   :  { %3894 = vmatmul.mubr.f32.gmra.mrb[14].mxu0 %v5055_v62 }
  0xac   :  { %3904 = vmatprep.mubr.f32.mxu0 %v4849_v15 }
  0xaf   :  { %3905 = vmatmul.mubr.f32.vlgmr.msra.gmra.mrb[0].mxu0 %v4851_v16 }
  0xb0   :  { %3907 = vmatprep.mubr.f32.mxu0 %v4879_v27 }
  0xb3   :  { %3908 = vmatmul.mubr.f32.gmra.mrb[2].mxu0 %v4883_v29 }
  0xb4   :  { %3910 = vmatprep.mubr.f32.mxu0 %v4902_v38 }
  0xb7   :  { %3911 = vmatmul.mubr.f32.gmra.mrb[4].mxu0 %v4904_v39 }
  0xb8   :  { %3913 = vmatprep.mubr.f32.mxu0 %v4942_v61 }
  0xbb   :  { %3914 = vmatmul.mubr.f32.gmra.mrb[6].mxu0 %v4952_v4 }
  0xbc   :  { %3916 = vmatprep.mubr.f32.mxu0 %v4957_v8 }
  0xbf   :  { %3917 = vmatmul.mubr.f32.gmra.mrb[8].mxu0 %v4974_v23 }
  0xc0   :  { %3919 = vmatprep.mubr.f32.mxu0 %v5002_v50 }
  0xc3   :  { %3920 = vmatmul.mubr.f32.gmra.mrb[10].mxu0 %v5004_v51 }
  0xc4   :  { %3922 = vmatprep.mubr.f32.mxu0 %v5035_v42 }
  0xc7   :  { %3923 = vmatmul.mubr.f32.gmra.mrb[12].mxu0 %v5037_v45 }
  0xc8   :  { %3925 = vmatprep.mubr.f32.mxu0 %v5050_v59 }
  0xcb   :  { %3926 = vmatmul.mubr.f32.gmra.mrb[14].mxu0 %v5055_v62 }
 0x182   :  { %v3906_v15 = vpop.f32.mrb[0].mxu0 }
 0x183   :  { %v1136_v16 = vpop.f32.mrb[1].mxu0  ;;  %v4520_v33 = vadd.f32 %v3906_v15, %v3327_v14 }
 0x184   :  { %v4521_v20 = vadd.f32 %v3327_v14, %v1136_v16 }
 0x186   :  { %v3909_v27 = vpop.f32.mrb[2].mxu0  ;;  %1230 = vmin.xlane.f32.xlu0 %v4521_v20 }
 0x187   :  { %v1148_v29 = vpop.f32.mrb[3].mxu0  ;;  %v4522_v39 = vadd.f32 %v3909_v27, %v3327_v14 }
 0x188   :  { %v4523_v35 = vadd.f32 %v3327_v14, %v1148_v29 }
 0x18a   :  { %v3912_v37 = vpop.f32.mrb[4].mxu0  ;;  %1234 = vmin.xlane.f32.xlu1 %v4523_v35  ;;  %1232 = vmin.xlane.f32.xlu0 %v4520_v33 }
 0x18b   :  { %v1160_v38 = vpop.f32.mrb[5].mxu0  ;;  %v5198_v48 = vadd.f32 %v3912_v37, %v3327_v14 }
 0x18c   :  { %v4525_v44 = vadd.f32 %v3327_v14, %v1160_v38 }
 0x18e   :  { %v3915_v46 = vpop.f32.mrb[6].mxu0  ;;  %1236 = vmin.xlane.f32.xlu1 %v4522_v39  ;;  %1238 = vmin.xlane.f32.xlu0 %v4525_v44 }
 0x18f   :  { %v1172_v47 = vpop.f32.mrb[7].mxu0  ;;  %v5204_v4 = vadd.f32 %v3915_v46, %v3327_v14 }
 0x190   :  { %v5200_v57 = vadd.f32 %v3327_v14, %v1172_v47 }
 0x192   :  { %v3918_v58 = vpop.f32.mrb[8].mxu0  ;;  %1240 = vmin.xlane.f32.xlu1 %v5198_v48  ;;  %1242 = vmin.xlane.f32.xlu0 %v5200_v57 }
 0x193   :  { %v1184_v61 = vpop.f32.mrb[9].mxu0  ;;  %v5210_v22 = vadd.f32 %v3918_v58, %v3327_v14 }
 0x194   :  { %v5206_v7 = vadd.f32 %v3327_v14, %v1184_v61 }
 0x196   :  { %v3921_v8 = vpop.f32.mrb[10].mxu0  ;;  %1244 = vmin.xlane.f32.xlu1 %v5204_v4  ;;  %1246 = vmin.xlane.f32.xlu0 %v5206_v7 }
 0x197   :  { %v1196_v11 = vpop.f32.mrb[11].mxu0  ;;  %v5216_v31 = vadd.f32 %v3921_v8, %v3327_v14 }
 0x198   :  { %v5212_v23 = vadd.f32 %v3327_v14, %v1196_v11 }
 0x19a   :  { %v3924_v30 = vpop.f32.mrb[12].mxu0  ;;  %1248 = vmin.xlane.f32.xlu1 %v5210_v22  ;;  %1250 = vmin.xlane.f32.xlu0 %v5212_v23 }
 0x19b   :  { %v1208_v2 = vpop.f32.mrb[13].mxu0  ;;  %v5222_v50 = vadd.f32 %v3924_v30, %v3327_v14 }
 0x19c   :  { %v5218_v34 = vadd.f32 %v3327_v14, %v1208_v2 }
 0x19e   :  { %v3927_v36 = vpop.f32.mrb[14].mxu0  ;;  %1252 = vmin.xlane.f32.xlu1 %v5216_v31  ;;  %1254 = vmin.xlane.f32.xlu0 %v5218_v34 }
 0x19f   :  { %v1220_v43 = vpop.f32.mrb[15].mxu0  ;;  %v5228_v63 = vadd.f32 %v3927_v36, %v3327_v14 }
 0x1a0   :  { %v5224_v51 = vadd.f32 %v3327_v14, %v1220_v43 }
 0x1a2   :  { %1256 = vmin.xlane.f32.xlu1 %v5222_v50  ;;  %1258 = vmin.xlane.f32.xlu0 %v5224_v51 }
 0x1a6   :  { %1260 = vmin.xlane.f32.xlu1 %v5228_v63 }
 0x213   :  { %v1231_v41 = vpop.xlane.xlu0 %1230 }
 0x214   :  { %vm1264_vm1 = vcmp.eq.f32.partialorder %v4521_v20, %v1231_v41 }
 0x215   :  { %v5234_v42 = vsel %vm1264_vm1, %v5231_v40, 128 }
 0x216   :  { %v1297_v45 = vshra.s32 %v5234_v42, 16 }
 0x217   :  { %v1235_v53 = vpop.xlane.xlu1 %1234  ;;  %v1233_v55 = vpop.xlane.xlu0 %1232 }
 0x218   :  { %vm1266_vm2 = vcmp.eq.f32.partialorder %v4523_v35, %v1235_v53  ;;  %vm1265_vm3 = vcmp.eq.f32.partialorder %v4520_v33, %v1233_v55  ;;  %v5237_v59 = vcvt.s32.f32 %v1297_v45  ;;  %v5364_v53 = vld [vmem:[%s6733_s2 + $0x8] sm:$0xff]  ;;  %v5369_v55 = vld [vmem:[%s6733_s2 + $0x10] sm:$0xff] }
 0x219   :  { %v5240_v56 = vsel %vm1266_vm2, %v5231_v40, 128  ;;  %v5243_v62 = vsel %vm1265_vm3, %v5231_v40, 128 }
 0x21a   :  { %1300 = vmin.xlane.f32.xlu0 %v5237_v59  ;;  %v1325_v60 = vshra.s32 %v5240_v56, 16  ;;  %v1311_v1 = vshra.s32 %v5243_v62, 16 }
 0x21b   :  { %v1237_v3 = vpop.xlane.xlu1 %1236  ;;  %v1239_v12 = vpop.xlane.xlu0 %1238 }
 0x21c   :  { %vm1267_vm4 = vcmp.eq.f32.partialorder %v4522_v39, %v1237_v3  ;;  %vm1268_vm5 = vcmp.eq.f32.partialorder %v4525_v44, %v1239_v12  ;;  %v5248_v13 = vcvt.s32.f32 %v1325_v60  ;;  %v5250_v10 = vcvt.s32.f32 %v1311_v1  ;;  %v5376_v3 = vld [vmem:[%s6733_s2 + $0x18] sm:$0xff] }
 0x21d   :  { %v5253_v18 = vsel %vm1267_vm4, %v5231_v40, 128  ;;  %v5256_v5 = vsel %vm1268_vm5, %v5231_v40, 128  ;;  %v1588_v1 = vand.u32 4294901760, %v5364_v53  ;;  %v1591_v12 = vand.u32 4294901760, %v5369_v55 }
 0x21e   :  { %1328 = vmin.xlane.f32.xlu0 %v5248_v13  ;;  %1314 = vmin.xlane.f32.xlu1 %v5250_v10  ;;  %v1339_v49 = vshra.s32 %v5253_v18, 16  ;;  %v1353_v52 = vshra.s32 %v5256_v5, 16 }
 0x21f   :  { %v1241_v54 = vpop.xlane.xlu1 %1240  ;;  %v1243_v17 = vpop.xlane.xlu0 %1242 }
 0x220   :  { %vm1269_vm6 = vcmp.eq.f32.partialorder %v5198_v48, %v1241_v54  ;;  %vm1270_vm7 = vcmp.eq.f32.partialorder %v5200_v57, %v1243_v17  ;;  %v5264_v21 = vcvt.s32.f32 %v1339_v49  ;;  %v5266_v26 = vcvt.s32.f32 %v1353_v52  ;;  %v5382_v49 = vld [vmem:[%s6733_s2 + $0x20] sm:$0xff]  ;;  %v5387_v52 = vld [vmem:[%s6733_s2 + $0x28] sm:$0xff] }
 0x221   :  { %v5269_v28 = vsel %vm1269_vm6, %v5231_v40, 128  ;;  %v5272_v6 = vsel %vm1270_vm7, %v5231_v40, 128  ;;  %v6751_v54 = vand.u32 4294901760, %v5376_v3 }
 0x222   :  { %1342 = vmin.xlane.f32.xlu1 %v5264_v21  ;;  %1356 = vmin.xlane.f32.xlu0 %v5266_v26  ;;  %v1367_v9 = vshra.s32 %v5269_v28, 16  ;;  %v1381_v19 = vshra.s32 %v5272_v6, 16 }
 0x223   :  { %v1245_v24 = vpop.xlane.xlu1 %1244  ;;  %v1247_v25 = vpop.xlane.xlu0 %1246 }
 0x224   :  { %vm1271_vm8 = vcmp.eq.f32.partialorder %v5204_v4, %v1245_v24  ;;  %vm1272_vm9 = vcmp.eq.f32.partialorder %v5206_v7, %v1247_v25  ;;  %v5280_v32 = vcvt.s32.f32 %v1367_v9  ;;  %v5282_v14 = vcvt.s32.f32 %v1381_v19  ;;  %v5407_v25 = vld [vmem:[%s6733_s2 + $0x30] sm:$0xff] }
 0x225   :  { %v5285_v15 = vsel %vm1271_vm8, %v5231_v40, 128  ;;  %v5288_v16 = vsel %vm1272_vm9, %v5231_v40, 128  ;;  %v6750_v9 = vand.u32 4294901760, %v5382_v49  ;;  %v6749_v19 = vand.u32 4294901760, %v5387_v52 }
 0x226   :  { %1370 = vmin.xlane.f32.xlu1 %v5280_v32  ;;  %1384 = vmin.xlane.f32.xlu0 %v5282_v14  ;;  %v1395_v20 = vshra.s32 %v5285_v15, 16  ;;  %v1409_v27 = vshra.s32 %v5288_v16, 16  ;;  %v5402_v24 = vpack.c.bf16 %v6751_v54, %v1591_v12 }
 0x227   :  { %v1249_v29 = vpop.xlane.xlu1 %1248  ;;  %v1251_v33 = vpop.xlane.xlu0 %1250 }
 0x228   :  { %vm1273_vm10 = vcmp.eq.f32.partialorder %v5210_v22, %v1249_v29  ;;  %vm1274_vm11 = vcmp.eq.f32.partialorder %v5212_v23, %v1251_v33  ;;  %v5296_v35 = vcvt.s32.f32 %v1395_v20  ;;  %v5298_v37 = vcvt.s32.f32 %v1409_v27  ;;  %6817 = vst [vmem:[#allocation8_spill] sm:$0xff] %v5402_v24  ;;  %v5412_v20 = vld [vmem:[%s6733_s2 + $0x38] sm:$0xff] }
 0x229   :  { %v5301_v38 = vsel %vm1273_vm10, %v5231_v40, 128  ;;  %v5304_v39 = vsel %vm1274_vm11, %v5231_v40, 128  ;;  %v5423_v27 = vpack.c.bf16 %v6749_v19, %v6750_v9  ;;  %v6748_v29 = vand.u32 4294901760, %v5407_v25 }
 0x22a   :  { %1398 = vmin.xlane.f32.xlu1 %v5296_v35  ;;  %1412 = vmin.xlane.f32.xlu0 %v5298_v37  ;;  %v1423_v44 = vshra.s32 %v5301_v38, 16  ;;  %v1437_v46 = vshra.s32 %v5304_v39, 16  ;;  %v6747_v33 = vand.u32 4294901760, %v5412_v20  ;;  %v1352_v19 = vand.u32 65535, %v5256_v5 }
 0x22b   :  { %v1253_v47 = vpop.xlane.xlu1 %1252  ;;  %v1255_v48 = vpop.xlane.xlu0 %1254  ;;  %6818 = vst [vmem:[#allocation9_spill] sm:$0xff] %v5423_v27  ;;  %v1380_v5 = vand.u32 65535, %v5272_v6  ;;  %v1408_v6 = vand.u32 65535, %v5288_v16  ;;  %v5533_v16 = vld [vmem:[%s6733_s2 + $0x68] sm:$0xff] }
 0x22c   :  { %vm1275_vm12 = vcmp.eq.f32.partialorder %v5216_v31, %v1253_v47  ;;  %vm1276_vm13 = vcmp.eq.f32.partialorder %v5218_v34, %v1255_v48  ;;  %v5312_v57 = vcvt.s32.f32 %v1423_v44  ;;  %v5314_v58 = vcvt.s32.f32 %v1437_v46  ;;  %v5431_v44 = vld [vmem:[%s6733_s2 + $0x40] sm:$0xff]  ;;  %v5436_v46 = vld [vmem:[%s6733_s2 + $0x48] sm:$0xff] }
 0x22d   :  { %v5317_v61 = vsel %vm1275_vm12, %v5231_v40, 128  ;;  %v5320_v4 = vsel %vm1276_vm13, %v5231_v40, 128  ;;  %v5445_v47 = vpack.c.bf16 %v6747_v33, %v6748_v29  ;;  %v6746_v48 = vand.u32 4294901760, %v5431_v44 }
 0x22e   :  { %1426 = vmin.xlane.f32.xlu1 %v5312_v57  ;;  %1440 = vmin.xlane.f32.xlu0 %v5314_v58  ;;  %v1451_v7 = vshra.s32 %v5317_v61, 16  ;;  %v1465_v8 = vshra.s32 %v5320_v4, 16  ;;  %v1338_v29 = vand.u32 65535, %v5253_v18  ;;  %v1366_v18 = vand.u32 65535, %v5269_v28 }
 0x22f   :  { %v1257_v11 = vpop.xlane.xlu1 %1256  ;;  %v1259_v22 = vpop.xlane.xlu0 %1258  ;;  %6819 = vst [vmem:[#allocation10_spill] sm:$0xff] %v5445_v47  ;;  %v1394_v28 = vand.u32 65535, %v5285_v15  ;;  %v5528_v15 = vld [vmem:[%s6733_s2 + $0x60] sm:$0xff] }
 0x230   :  { %vm1277_vm14 = vcmp.eq.f32.partialorder %v5222_v50, %v1257_v11  ;;  %vm1278_vm15 = vcmp.eq.f32.partialorder %v5224_v51, %v1259_v22  ;;  %v5328_v23 = vcvt.s32.f32 %v1451_v7  ;;  %v5330_v30 = vcvt.s32.f32 %v1465_v8  ;;  %v5453_v8 = vld [vmem:[%s6733_s2 + $0x50] sm:$0xff]  ;;  %v5458_v11 = vld [vmem:[%s6733_s2 + $0x58] sm:$0xff] }
 0x231   :  { %v5333_v2 = vsel %vm1277_vm14, %v5231_v40, 128  ;;  %v5336_v31 = vsel %vm1278_vm15, %v5231_v40, 128  ;;  %v6743_v7 = vand.u32 4294901760, %v5436_v46 }
 0x232   :  { %1454 = vmin.xlane.f32.xlu1 %v5328_v23  ;;  %1468 = vmin.xlane.f32.xlu0 %v5330_v30  ;;  %v1479_v34 = vshra.s32 %v5333_v2, 16  ;;  %v1493_v36 = vshra.s32 %v5336_v31, 16 }
 0x233   :  { %v1261_v43 = vpop.xlane.xlu1 %1260  ;;  %v5467_v22 = vpack.c.bf16 %v6743_v7, %v6746_v48  ;;  %v1324_v7 = vand.u32 65535, %v5240_v56 }
 0x234   :  { %vm1279_vm1 = vcmp.eq.f32.partialorder %v5228_v63, %v1261_v43  ;;  %v5343_v50 = vcvt.s32.f32 %v1479_v34  ;;  %v5345_v51 = vcvt.s32.f32 %v1493_v36  ;;  %v5359_v63 = vld [vmem:[%s6733_s2] sm:$0xff]  ;;  %v6745_v34 = vand.u32 4294901760, %v5453_v8 }
 0x235   :  { %v5348_v0 = vsel %vm1279_vm1, %v5231_v40, 128  ;;  %v1585_v60 = vand.u32 4294901760, %v5359_v63  ;;  %6820 = vst [vmem:[#allocation11_spill] sm:$0xff] %v5467_v22  ;;  %v6744_v36 = vand.u32 4294901760, %v5458_v11  ;;  %v1326_v56 = vcvt.s32.f32 %v1324_v7 }
 0x236   :  { %1482 = vmin.xlane.f32.xlu1 %v5343_v50  ;;  %1496 = vmin.xlane.f32.xlu0 %v5345_v51  ;;  %v1507_v41 = vshra.s32 %v5348_v0, 16  ;;  %v1354_v7 = vcvt.s32.f32 %v1352_v19  ;;  %v1382_v19 = vcvt.s32.f32 %v1380_v5  ;;  %v1396_v5 = vcvt.s32.f32 %v1394_v28 }
 0x237   :  { %v5394_v17 = vpack.c.bf16 %v1588_v1, %v1585_v60  ;;  %v5479_v43 = vpack.c.bf16 %v6744_v36, %v6745_v34  ;;  %v1310_v36 = vand.u32 65535, %v5243_v62  ;;  %v1450_v28 = vand.u32 65535, %v5317_v61 }
 0x238   :  { %v5353_v45 = vcvt.s32.f32 %v1507_v41  ;;  %v1296_v41 = vand.u32 65535, %v5234_v42 }
 0x239   :  { %4473 = vmatprep.subr.bf16.mxu0 %v5394_v17  ;;  %4313 = vmatprep.subr.bf16.mxu1 %v5394_v17  ;;  %6821 = vst [vmem:[#allocation12_spill] sm:$0xff] %v5479_v43  ;;  %v1312_v42 = vcvt.s32.f32 %v1310_v36  ;;  %v1340_v36 = vcvt.s32.f32 %v1338_v29  ;;  %v1368_v29 = vcvt.s32.f32 %v1366_v18 }
 0x23a   :  { %1510 = vmin.xlane.f32.xlu1 %v5353_v45  ;;  %4475 = vmatpush3.bf16.msra.mxu0 %v5394_v17  ;;  %v1298_v48 = vcvt.s32.f32 %v1296_v41 }
 0x23b   :  { %4315 = vmatpush3.bf16.msra.mxu1 %v5394_v17  ;;  %4477 = vmatprep.subr.bf16.mxu0 %v5402_v24 }
 0x23c   :  { %4317 = vmatprep.subr.bf16.mxu1 %v5402_v24 }
 0x23e   :  { %4479 = vmatpush3.bf16.msra.mxu0 %v5402_v24 }
 0x23f   :  { %4319 = vmatpush3.bf16.msra.mxu1 %v5402_v24  ;;  %4481 = vmatprep.subr.bf16.mxu0 %v5423_v27 }
 0x240   :  { %4321 = vmatprep.subr.bf16.mxu1 %v5423_v27 }
 0x242   :  { %4483 = vmatpush3.bf16.msra.mxu0 %v5423_v27 }
 0x243   :  { %4323 = vmatpush3.bf16.msra.mxu1 %v5423_v27  ;;  %4485 = vmatprep.subr.bf16.mxu0 %v5445_v47 }
 0x244   :  { %4325 = vmatprep.subr.bf16.mxu1 %v5445_v47 }
 0x246   :  { %4487 = vmatpush3.bf16.msra.mxu0 %v5445_v47 }
 0x247   :  { %4327 = vmatpush3.bf16.msra.mxu1 %v5445_v47  ;;  %4489 = vmatprep.subr.bf16.mxu0 %v5467_v22 }
 0x248   :  { %4329 = vmatprep.subr.bf16.mxu1 %v5467_v22 }
 0x24a   :  { %4491 = vmatpush3.bf16.msra.mxu0 %v5467_v22 }
 0x24b   :  { %4331 = vmatpush3.bf16.msra.mxu1 %v5467_v22  ;;  %4493 = vmatprep.subr.bf16.mxu0 %v5479_v43 }
 0x24c   :  { %4333 = vmatprep.subr.bf16.mxu1 %v5479_v43 }
 0x24e   :  { %4495 = vmatpush3.bf16.msra.mxu0 %v5479_v43 }
 0x24f   :  { %4335 = vmatpush3.bf16.msra.mxu1 %v5479_v43 }
 0x2a7   :  { %v5491_v34 = vpop.xlane.xlu0 %1300 }
 0x2a8   :  { %vm1302_vm2 = vcmp.eq.f32.partialorder %v5237_v59, %v5491_v34 }
 0x2a9   :  { %v1303_v33 = vsel %vm1302_vm2, %v1298_v48, inf }
 0x2aa   :  { %1304 = vmin.xlane.f32.xlu0 %v1303_v33 }
 0x2ab   :  { %v5497_v9 = vpop.xlane.xlu1 %1314  ;;  %v5499_v54 = vpop.xlane.xlu0 %1328 }
 0x2ac   :  { %vm1316_vm3 = vcmp.eq.f32.partialorder %v5250_v10, %v5497_v9  ;;  %vm1330_vm4 = vcmp.eq.f32.partialorder %v5248_v13, %v5499_v54 }
 0x2ad   :  { %v1317_v62 = vsel %vm1316_vm3, %v1312_v42, inf  ;;  %v1331_v59 = vsel %vm1330_vm4, %v1326_v56, inf  ;;  %v1621_v56 = vand.u32 4294901760, %v5528_v15  ;;  %vm2886_vm3 = vcmask 7168  }
 0x2ae   :  { %1318 = vmin.xlane.f32.xlu1 %v1317_v62  ;;  %1332 = vmin.xlane.f32.xlu0 %v1331_v59  ;;  %v1436_v62 = vand.u32 65535, %v5304_v39  ;;  %v5556_v39 = vld [vmem:[%s6733_s2 + $0x70] sm:$0xff]  ;;  %vm2967_vm4 = vcmask 519168  }
 0x2af   :  { %v5507_v33 = vpop.xlane.xlu1 %1342  ;;  %v5509_v48 = vpop.xlane.xlu0 %1356 }
 0x2b0   :  { %vm1344_vm5 = vcmp.eq.f32.partialorder %v5264_v21, %v5507_v33  ;;  %vm1358_vm6 = vcmp.eq.f32.partialorder %v5266_v26, %v5509_v48 }
 0x2b1   :  { %v1345_v13 = vsel %vm1344_vm5, %v1340_v36, inf  ;;  %v1359_v10 = vsel %vm1358_vm6, %v1354_v7, inf  ;;  %v1410_v36 = vcvt.s32.f32 %v1408_v6  ;;  %v1464_v6 = vand.u32 65535, %v5320_v4 }
 0x2b2   :  { %1346 = vmin.xlane.f32.xlu1 %v1345_v13  ;;  %1360 = vmin.xlane.f32.xlu0 %v1359_v10 }
 0x2b3   :  { %v5517_v41 = vpop.xlane.xlu1 %1370  ;;  %v5519_v42 = vpop.xlane.xlu0 %1384 }
 0x2b4   :  { %vm1372_vm7 = vcmp.eq.f32.partialorder %v5280_v32, %v5517_v41  ;;  %vm1386_vm8 = vcmp.eq.f32.partialorder %v5282_v14, %v5519_v42  ;;  %v1624_v32 = vand.u32 4294901760, %v5533_v16  ;;  %v1422_v14 = vand.u32 65535, %v5301_v38 }
 0x2b5   :  { %v1373_v21 = vsel %vm1372_vm7, %v1368_v29, inf  ;;  %v1387_v26 = vsel %vm1386_vm8, %v1382_v19, inf }
 0x2b6   :  { %1374 = vmin.xlane.f32.xlu1 %v1373_v21  ;;  %1388 = vmin.xlane.f32.xlu0 %v1387_v26  ;;  %v5551_v38 = vpack.c.bf16 %v1624_v32, %v1621_v56  ;;  %v1424_v21 = vcvt.s32.f32 %v1422_v14  ;;  %v1438_v26 = vcvt.s32.f32 %v1436_v62 }
 0x2b7   :  { %v5539_v59 = vpop.xlane.xlu1 %1398  ;;  %v5541_v18 = vpop.xlane.xlu0 %1412 }
 0x2b8   :  { %vm1400_vm9 = vcmp.eq.f32.partialorder %v5296_v35, %v5539_v59  ;;  %vm1414_vm10 = vcmp.eq.f32.partialorder %v5298_v37, %v5541_v18  ;;  %6822 = vst [vmem:[#allocation13_spill] sm:$0xff] %v5551_v38  ;;  %v5561_v35 = vld [vmem:[%s6733_s2 + $0x78] sm:$0xff]  ;;  %v1627_v37 = vand.u32 4294901760, %v5556_v39  ;;  %4497 = vmatprep.subr.bf16.mxu0 %v5551_v38  ;;  %4337 = vmatprep.subr.bf16.mxu1 %v5551_v38 }
 0x2b9   :  { %v1401_v7 = vsel %vm1400_vm9, %v1396_v5, inf  ;;  %v1415_v13 = vsel %vm1414_vm10, %v1410_v36, inf  ;;  %v1630_v10 = vand.u32 4294901760, %v5561_v35  ;;  %4499 = vmatpush3.bf16.msra.mxu0 %v5551_v38  ;;  %4339 = vmatpush3.bf16.msra.mxu1 %v5551_v38  ;;  %v1478_v5 = vand.u32 65535, %v5333_v2 }
 0x2ba   :  { %1402 = vmin.xlane.f32.xlu1 %v1401_v7  ;;  %1416 = vmin.xlane.f32.xlu0 %v1415_v13  ;;  %v1452_v36 = vcvt.s32.f32 %v1450_v28  ;;  %v1466_v7 = vcvt.s32.f32 %v1464_v6  ;;  %v1506_v28 = vand.u32 65535, %v5348_v0 }
 0x2bb   :  { %v5567_v29 = vpop.xlane.xlu1 %1426  ;;  %v5569_v19 = vpop.xlane.xlu0 %1440  ;;  %v5584_v14 = vpack.c.bf16 %v1630_v10, %v1627_v37 }
 0x2bc   :  { %vm1428_vm11 = vcmp.eq.f32.partialorder %v5312_v57, %v5567_v29  ;;  %vm1442_vm12 = vcmp.eq.f32.partialorder %v5314_v58, %v5569_v19  ;;  %v1492_v57 = vand.u32 65535, %v5336_v31  ;;  %v1480_v31 = vcvt.s32.f32 %v1478_v5 }
 0x2bd   :  { %v1429_v61 = vsel %vm1428_vm11, %v1424_v21, inf  ;;  %v1443_v4 = vsel %vm1442_vm12, %v1438_v26, inf  ;;  %6823 = vst [vmem:[#allocation14_spill] sm:$0xff] %v5584_v14  ;;  %4501 = vmatprep.subr.bf16.mxu0 %v5584_v14  ;;  %4341 = vmatprep.subr.bf16.mxu1 %v5584_v14  ;;  %v5607_v21 = vsub.f32 %v5359_v63, %v1585_v60  ;;  %v5612_v26 = vsub.f32 %v5364_v53, %v1588_v1 }
 0x2be   :  { %1430 = vmin.xlane.f32.xlu1 %v1429_v61  ;;  %1444 = vmin.xlane.f32.xlu0 %v1443_v4  ;;  %v1508_v60 = vcvt.s32.f32 %v1506_v28  ;;  %v5651_v28 = vsub.f32 %v5556_v39, %v1627_v37 }
 0x2bf   :  { %v5587_v62 = vpop.xlane.xlu1 %1454  ;;  %v5589_v58 = vpop.xlane.xlu0 %1468  ;;  %4503 = vmatpush3.bf16.msra.mxu0 %v5584_v14  ;;  %4343 = vmatpush3.bf16.msra.mxu1 %v5584_v14  ;;  %6824 = vst [vmem:[#allocation15_spill] sm:$0xff] %v5607_v21  ;;  %6825 = vst [vmem:[#allocation16_spill] sm:$0xff] %v5612_v26  ;;  %v6762_v4 = vand.u32 4294901760, %v5607_v21  ;;  %v6760_v5 = vand.u32 4294901760, %v5612_v26 }
 0x2c0   :  { %vm1456_vm13 = vcmp.eq.f32.partialorder %v5328_v23, %v5587_v62  ;;  %vm1470_vm14 = vcmp.eq.f32.partialorder %v5330_v30, %v5589_v58  ;;  %v1494_v30 = vcvt.s32.f32 %v1492_v57  ;;  %6828 = vst [vmem:[#allocation19_spill] sm:$0xff] %v5651_v28 }
 0x2c1   :  { %v1457_v2 = vsel %vm1456_vm13, %v1452_v36, inf  ;;  %v1471_v13 = vsel %vm1470_vm14, %v1466_v7, inf  ;;  %v1829_v53 = vsub.f32 %v5607_v21, %v6762_v4  ;;  %v5636_v7 = vsub.f32 %v5528_v15, %v1621_v56 }
 0x2c2   :  { %1458 = vmin.xlane.f32.xlu1 %v1457_v2  ;;  %1472 = vmin.xlane.f32.xlu0 %v1471_v13  ;;  %v5641_v2 = vsub.f32 %v5533_v16, %v1624_v32  ;;  %v5656_v15 = vsub.f32 %v5561_v35, %v1630_v10  ;;  %v6753_v32 = vand.u32 4294901760, %v5651_v28 }
 0x2c3   :  { %v5600_v6 = vpop.xlane.xlu1 %1482  ;;  %v5602_v23 = vpop.xlane.xlu0 %1496  ;;  %v1830_v1 = vand.u32 4294901760, %v1829_v53  ;;  %6826 = vst [vmem:[#allocation17_spill] sm:$0xff] %v5636_v7  ;;  %v5675_v53 = vpack.c.bf16 %v5612_v26, %v5607_v21 }
 0x2c4   :  { %vm1484_vm15 = vcmp.eq.f32.partialorder %v5343_v50, %v5600_v6  ;;  %vm1498_vm1 = vcmp.eq.f32.partialorder %v5345_v51, %v5602_v23  ;;  %v1836_v50 = vsub.f32 %v5612_v26, %v6760_v5  ;;  %6827 = vst [vmem:[#allocation18_spill] sm:$0xff] %v5641_v2  ;;  %v6754_v13 = vand.u32 4294901760, %v5641_v2  ;;  %6829 = vst [vmem:[#allocation20_spill] sm:$0xff] %v5656_v15 }
 0x2c5   :  { %v1485_v0 = vsel %vm1484_vm15, %v1480_v31, inf  ;;  %v1499_v61 = vsel %vm1498_vm1, %v1494_v30, inf  ;;  %v6752_v30 = vand.u32 4294901760, %v5656_v15  ;;  %v1927_v39 = vsub.f32 %v5651_v28, %v6753_v32 }
 0x2c6   :  { %1486 = vmin.xlane.f32.xlu1 %v1485_v0  ;;  %1500 = vmin.xlane.f32.xlu0 %v1499_v61  ;;  %v1837_v57 = vand.u32 4294901760, %v1836_v50  ;;  %v1920_v16 = vsub.f32 %v5641_v2, %v6754_v13  ;;  %v5679_v50 = vpack.c.bf16 %v5641_v2, %v5636_v7  ;;  %v1503_v4 = vcvt.f32.s32 %v5602_v23 }
 0x2c7   :  { %v5620_v63 = vpop.xlane.xlu1 %1510  ;;  %v1934_v37 = vsub.f32 %v5656_v15, %v6752_v30  ;;  %v1928_v10 = vand.u32 4294901760, %v1927_v39  ;;  %v1363_v39 = vcvt.f32.s32 %v5509_v48  ;;  %v1405_v30 = vcvt.f32.s32 %v5539_v59 }
 0x2c8   :  { %vm1512_vm2 = vcmp.eq.f32.partialorder %v5353_v45, %v5620_v63  ;;  %v5630_v36 = vpack.c.bf16 %v1837_v57, %v1830_v1  ;;  %v6755_v45 = vand.u32 4294901760, %v5636_v7  ;;  %v1921_v0 = vand.u32 4294901760, %v1920_v16 }
 0x2c9   :  { %v1513_v51 = vsel %vm1512_vm2, %v1508_v60, inf  ;;  %v1935_v61 = vand.u32 4294901760, %v1934_v37  ;;  %v1307_v1 = vcvt.f32.s32 %v5491_v34  ;;  %v1321_v57 = vcvt.f32.s32 %v5497_v9 }
 0x2ca   :  { %1514 = vmin.xlane.f32.xlu1 %v1513_v51  ;;  %4345 = vmatprep.subr.bf16.mxu1 %v5630_v36  ;;  %v1913_v31 = vsub.f32 %v5636_v7, %v6755_v45  ;;  %v5683_v51 = vpack.c.bf16 %v5656_v15, %v5651_v28  ;;  %v1349_v16 = vcvt.f32.s32 %v5507_v33  ;;  %v1377_v37 = vcvt.f32.s32 %v5517_v41 }
 0x2cb   :  { %v5671_v60 = vpack.c.bf16 %v1935_v61, %v1928_v10  ;;  %v1391_v10 = vcvt.f32.s32 %v5519_v42  ;;  %v5700_v9 = vsub.f32 %v5369_v55, %v1591_v12  ;;  %v6831_v48 = vand.u32 4294901760, %v5382_v49 }
 0x2cc   :  { %v1914_v56 = vand.u32 4294901760, %v1913_v31  ;;  %v1335_v31 = vcvt.f32.s32 %v5499_v54  ;;  %v6830_v54 = vand.u32 4294901760, %v5376_v3  ;;  %v5707_v33 = vshll.u32 %v1349_v16, 16 }
 0x2cd   :  { %v5712_v41 = vsub.f32 %v5382_v49, %v6831_v48  ;;  %v6832_v42 = vand.u32 4294901760, %v5387_v52  ;;  %v6833_v55 = vand.u32 4294901760, %v5407_v25  ;;  %v6835_v49 = vand.u32 4294901760, %v5431_v44 }
 0x2ce   :  { %v5669_v35 = vpack.c.bf16 %v1921_v0, %v1914_v56  ;;  %v1308_v56 = vshll.u32 %v1307_v1, 16  ;;  %v5689_v0 = vshll.u32 %v1321_v57, 16  ;;  %v5694_v61 = vshll.u32 %v1335_v31, 16 }
 0x2cf   :  { %v5705_v34 = vsub.f32 %v5376_v3, %v6830_v54  ;;  %v5717_v59 = vsub.f32 %v5387_v52, %v6832_v42  ;;  %v5722_v12 = vsub.f32 %v5407_v25, %v6833_v55  ;;  %v1419_v3 = vcvt.f32.s32 %v5541_v18 }
 0x2d0   :  { %v6834_v1 = vand.u32 4294901760, %v5412_v20  ;;  %v5733_v31 = vsub.f32 %v5431_v44, %v6835_v49  ;;  %v6836_v52 = vand.u32 4294901760, %v5436_v46  ;;  %v5740_v54 = vshll.u32 %v1363_v39, 16 }
 0x2d1   :  { %v5742_v25 = vshll.u32 %v1377_v37, 16  ;;  %v5744_v18 = vshll.u32 %v1391_v10, 16  ;;  %v1433_v48 = vcvt.f32.s32 %v5567_v29  ;;  %v1447_v42 = vcvt.f32.s32 %v5569_v19 }
 0x2d2   :  { %v5728_v57 = vsub.f32 %v5412_v20, %v6834_v1  ;;  %v5738_v16 = vsub.f32 %v5436_v46, %v6836_v52  ;;  %v5747_v20 = vshll.u32 %v1405_v30, 16  ;;  %v6756_v44 = vand.u32 4294901760, %v5700_v9 }
 0x2d3   :  { %v6758_v55 = vand.u32 4294901760, %v5705_v34  ;;  %v1461_v46 = vcvt.f32.s32 %v5587_v62  ;;  %v6757_v39 = vand.u32 4294901760, %v5712_v41  ;;  %v6759_v37 = vand.u32 4294901760, %v5717_v59 }
 0x2d4   :  { %v6761_v10 = vand.u32 4294901760, %v5722_v12  ;;  %v5756_v1 = vshll.u32 %v1419_v3, 16  ;;  %v6763_v29 = vand.u32 4294901760, %v5728_v57  ;;  %v6766_v30 = vand.u32 4294901760, %v5733_v31 }
 0x2d5   :  { %v6768_v19 = vand.u32 4294901760, %v5738_v16  ;;  %v5761_v49 = vshll.u32 %v1433_v48, 16  ;;  %v1475_v52 = vcvt.f32.s32 %v5589_v58  ;;  %v1489_v62 = vcvt.f32.s32 %v5600_v6 }
 0x2d6   :  { %v5765_v32 = vshll.u32 %v1447_v42, 16  ;;  %v1843_v3 = vsub.f32 %v5700_v9, %v6756_v44  ;;  %v1850_v13 = vsub.f32 %v5705_v34, %v6758_v55  ;;  %v5773_v45 = vshll.u32 %v1461_v46, 16 }
 0x2d7   :  { %v1857_v48 = vsub.f32 %v5712_v41, %v6757_v39  ;;  %v1864_v58 = vsub.f32 %v5717_v59, %v6759_v37  ;;  %v1871_v6 = vsub.f32 %v5722_v12, %v6761_v10  ;;  %v1878_v44 = vsub.f32 %v5728_v57, %v6763_v29 }
 0x2d8   :  { %v1885_v46 = vsub.f32 %v5733_v31, %v6766_v30  ;;  %v1892_v39 = vsub.f32 %v5738_v16, %v6768_v19  ;;  %v6837_v55 = vand.u32 4294901760, %v5453_v8  ;;  %v5798_v5 = vshll.u32 %v1475_v52, 16 }
 0x2d9   :  { %v5800_v10 = vshll.u32 %v1489_v62, 16  ;;  %v1517_v15 = vcvt.f32.s32 %v5620_v63  ;;  %v1844_v28 = vand.u32 4294901760, %v1843_v3  ;;  %v1851_v30 = vand.u32 4294901760, %v1850_v13 }
 0x2da   :  { %v5796_v37 = vsub.f32 %v5453_v8, %v6837_v55  ;;  %v6838_v2 = vand.u32 4294901760, %v5458_v11  ;;  %v1858_v8 = vand.u32 4294901760, %v1857_v48  ;;  %v1865_v55 = vand.u32 4294901760, %v1864_v58 }
 0x2db   :  { %v1872_v52 = vand.u32 4294901760, %v1871_v6  ;;  %v1879_v21 = vand.u32 4294901760, %v1878_v44  ;;  %v1886_v14 = vand.u32 4294901760, %v1885_v46  ;;  %v1893_v23 = vand.u32 4294901760, %v1892_v39 }
 0x2dc   :  { %v5807_v19 = vsub.f32 %v5458_v11, %v6838_v2  ;;  %v5812_v63 = vshll.u32 %v1503_v4, 16  ;;  %v5821_v13 = vshll.u32 %v1517_v15, 16  ;;  %v6781_v4 = vmov 0.0  }
 0x2dd   :  { %v5831_v39 = vpack.c.bf16 %v1851_v30, %v1844_v28  ;;  %v5842_v46 = vpack.c.bf16 %v1865_v55, %v1858_v8 }
 0x337   :  { %v1305_v42 = vpop.xlane.xlu0 %1304 }
 0x338   :  { %v1306_v29 = vcvt.f32.s32 %v1305_v42  ;;  %v6777_v42 = vand.u32 4294901760, %v5796_v37 }
 0x33a   :  { %v5809_v7 = vadd.s32 %v1308_v56, %v1306_v29  ;;  %v6774_v56 = vmov 1.0   ;;  %v5851_v28 = vsub.f32 %v5796_v37, %v6777_v42 }
 0x33b   :  { %v1319_v26 = vpop.xlane.xlu1 %1318  ;;  %v1333_v62 = vpop.xlane.xlu0 %1332 }
 0x33c   :  { %2887 = vst.msk [vmem:[%s6737_s6] sm:$0xff] %vm2886_vm3, %v5809_v7  ;;  %v1320_v11 = vcvt.f32.s32 %v1319_v26  ;;  %v1334_v2 = vcvt.f32.s32 %v1333_v62  ;;  %vm1520_vm5 = vcmp.eq.s32.totalorder %v5231_v40, %v5809_v7  ;;  %v6776_v26 = vand.u32 4294901760, %v5807_v19 }
 0x33d   :  { %4240 = vmatprep.mubr.msk.f32.mxu0 %vm1520_vm5, %v6774_v56  ;;  %v3328_v44 = vsel %vm1520_vm5, 1.0, %v6781_v4  ;;  %v5844_v62 = vpack.c.bf16 %v1879_v21, %v1872_v52  ;;  %v5846_v56 = vpack.c.bf16 %v1893_v23, %v1886_v14 }
 0x33e   :  { %v5835_v29 = vadd.s32 %v5689_v0, %v1320_v11  ;;  %v5838_v15 = vadd.s32 %v5694_v61, %v1334_v2  ;;  %v5840_v3 = vsub.f32 %v3328_v44, %v3328_v44  ;;  %v3408_v48 = vpack.c.bf16 %v3328_v44, %v3328_v44 }
 0x33f   :  { %v1347_v58 = vpop.xlane.xlu1 %1346  ;;  %v1361_v6 = vpop.xlane.xlu0 %1360  ;;  %v6839_v61 = vmov 1.0   ;;  %v5887_v55 = vsub.f32 %v5807_v19, %v6776_v26 }
 0x340   :  { %vm1521_vm6 = vcmp.eq.s32.totalorder %v5231_v40, %v5835_v29  ;;  %2888 = vst.msk [vmem:[%s6737_s6 + $0x8] sm:$0xff] %vm2886_vm3, %v5835_v29  ;;  %2889 = vst.msk [vmem:[%s6737_s6 + $0x10] sm:$0xff] %vm2886_vm3, %v5838_v15  ;;  %v1348_v14 = vcvt.f32.s32 %v1347_v58  ;;  %v1362_v21 = vcvt.f32.s32 %v1361_v6  ;;  %vm1522_vm7 = vcmp.eq.s32.totalorder %v5231_v40, %v5838_v15 }
 0x341   :  { %2968 = vst.msk [vmem:[%s6736_s5] sm:$0xf] %vm2967_vm4, %v3408_v48  ;;  %v3329_v0 = vsel %vm1521_vm6, 1.0, %v6781_v4  ;;  %4241 = vmatmul.mubr.msk.f32.vlgmr.msra.gmra.mrb[16].mxu0 %vm1521_vm6, %v6839_v61  ;;  %v3330_v30 = vsel %vm1522_vm7, 1.0, %v6781_v4  ;;  %v6778_v8 = vand.u32 4294901760, %v5840_v3 }
 0x342   :  { %v3409_v52 = vpack.c.bf16 %v3329_v0, %v3329_v0  ;;  %v5890_v23 = vadd.s32 %v5707_v33, %v1348_v14  ;;  %v5893_v11 = vadd.s32 %v5740_v54, %v1362_v21  ;;  %4243 = vmatprep.mubr.msk.f32.mxu0 %vm1522_vm7, %v6839_v61  ;;  %v3410_v2 = vpack.c.bf16 %v3330_v30, %v3330_v30 }
 0x343   :  { %v1375_v48 = vpop.xlane.xlu1 %1374  ;;  %v1389_v58 = vpop.xlane.xlu0 %1388  ;;  %v1668_v6 = vsub.f32 %v5840_v3, %v6778_v8  ;;  %v3066_v26 = vadd.f32 %v3329_v0, %v3328_v44  ;;  %v5902_v42 = vsub.f32 %v3329_v0, %v3329_v0  ;;  %v5904_v33 = vsub.f32 %v3330_v30, %v3330_v30 }
 0x344   :  { %2969 = vst.msk [vmem:[%s6736_s5 + $0x4] sm:$0xf] %vm2967_vm4, %v3409_v52  ;;  %2970 = vst.msk [vmem:[%s6736_s5 + $0x8] sm:$0xf] %vm2967_vm4, %v3410_v2  ;;  %v1376_v54 = vcvt.f32.s32 %v1375_v48  ;;  %v1390_v44 = vcvt.f32.s32 %v1389_v58  ;;  %vm1523_vm8 = vcmp.eq.s32.totalorder %v5231_v40, %v5890_v23  ;;  %vm1524_vm9 = vcmp.eq.s32.totalorder %v5231_v40, %v5893_v11 }
 0x345   :  { %6840 = vst [vmem:[#allocation21_spill] sm:$0xff] %v5904_v33  ;;  %2890 = vst.msk [vmem:[%s6737_s6 + $0x18] sm:$0xff] %vm2886_vm3, %v5890_v23  ;;  %v3331_v14 = vsel %vm1523_vm8, 1.0, %v6781_v4  ;;  %4244 = vmatmul.mubr.msk.f32.gmra.mrb[18].mxu0 %vm1523_vm8, %v6839_v61  ;;  %v1669_v21 = vand.u32 4294901760, %v1668_v6  ;;  %v3067_v0 = vadd.f32 %v3330_v30, %v3066_v26  ;;  %v3332_v52 = vsel %vm1524_vm9, 1.0, %v6781_v4 }
 0x346   :  { %2891 = vst.msk [vmem:[%s6737_s6 + $0x20] sm:$0xff] %vm2886_vm3, %v5893_v11  ;;  %v5941_v2 = vadd.s32 %v5742_v25, %v1376_v54  ;;  %v5944_v48 = vadd.s32 %v5744_v18, %v1390_v44  ;;  %v3411_v58 = vpack.c.bf16 %v3331_v14, %v3331_v14  ;;  %4246 = vmatprep.mubr.msk.f32.mxu0 %vm1524_vm9, %v6839_v61  ;;  %v6793_v38 = vand.u32 4294901760, %v5902_v42 }
 0x347   :  { %v3412_v8 = vpack.c.bf16 %v3332_v52, %v3332_v52  ;;  %3960 = vmatprep.mubr.f32.mxu1 %v1669_v21  ;;  %v3068_v26 = vadd.f32 %v3331_v14, %v3067_v0  ;;  %v1403_v30 = vpop.xlane.xlu1 %1402  ;;  %v1417_v6 = vpop.xlane.xlu0 %1416  ;;  %v5952_v25 = vsub.f32 %v3331_v14, %v3331_v14  ;;  %v6841_v44 = vmov 0.0  }
 0x348   :  { %2892 = vst.msk [vmem:[%s6737_s6 + $0x28] sm:$0xff] %vm2886_vm3, %v5941_v2  ;;  %vm1526_vm10 = vcmp.eq.s32.totalorder %v5231_v40, %v5944_v48  ;;  %2893 = vst.msk [vmem:[%s6737_s6 + $0x30] sm:$0xff] %vm2886_vm3, %v5944_v48  ;;  %v1404_v18 = vcvt.f32.s32 %v1403_v30  ;;  %v1418_v54 = vcvt.f32.s32 %v1417_v6  ;;  %vm1525_vm11 = vcmp.eq.s32.totalorder %v5231_v40, %v5941_v2 }
 0x349   :  { %2971 = vst.msk [vmem:[%s6736_s5 + $0xc] sm:$0xf] %vm2967_vm4, %v3411_v58  ;;  %2972 = vst.msk [vmem:[%s6736_s5 + $0x10] sm:$0xf] %vm2967_vm4, %v3412_v8  ;;  %v5980_v14 = vsel %vm1526_vm10, 1.0, %v6841_v44  ;;  %v3069_v21 = vadd.f32 %v3332_v52, %v3068_v26  ;;  %v3333_v0 = vsel %vm1525_vm11, 1.0, %v6841_v44  ;;  %4247 = vmatmul.mubr.msk.f32.gmra.mrb[20].mxu0 %vm1525_vm11, %v6839_v61  ;;  %v1678_v8 = vsub.f32 %v5902_v42, %v6793_v38 }
 0x34a   :  { %v3414_v58 = vpack.c.bf16 %v5980_v14, %v5980_v14  ;;  %v5996_v30 = vadd.s32 %v5747_v20, %v1404_v18  ;;  %v5999_v26 = vadd.s32 %v5756_v1, %v1418_v54  ;;  %v3413_v6 = vpack.c.bf16 %v3333_v0, %v3333_v0 }
 0x34b   :  { %v3070_v4 = vadd.f32 %v3333_v0, %v3069_v21  ;;  %v1679_v43 = vand.u32 4294901760, %v1678_v8  ;;  %v1431_v22 = vpop.xlane.xlu1 %1430  ;;  %v6842_v47 = vand.u32 4294901760, %v5904_v33  ;;  %v1445_v24 = vpop.xlane.xlu0 %1444  ;;  %v6796_v38 = vand.u32 4294901760, %v5952_v25 }
 0x34c   :  { %2974 = vst.msk [vmem:[%s6736_s5 + $0x18] sm:$0xf] %vm2967_vm4, %v3414_v58  ;;  %vm1527_vm12 = vcmp.eq.s32.totalorder %v5231_v40, %v5996_v30  ;;  %vm1528_vm13 = vcmp.eq.s32.totalorder %v5231_v40, %v5999_v26  ;;  %2973 = vst.msk [vmem:[%s6736_s5 + $0x14] sm:$0xf] %vm2967_vm4, %v3413_v6  ;;  %v1446_v20 = vcvt.f32.s32 %v1445_v24 }
 0x34d   :  { %v1688_v27 = vsub.f32 %v5904_v33, %v6842_v47  ;;  %2894 = vst.msk [vmem:[%s6737_s6 + $0x38] sm:$0xff] %vm2886_vm3, %v5996_v30  ;;  %2895 = vst.msk [vmem:[%s6737_s6 + $0x40] sm:$0xff] %vm2886_vm3, %v5999_v26  ;;  %v1432_v47 = vcvt.f32.s32 %v1431_v22  ;;  %v6031_v1 = vsel %vm1527_vm12, 1.0, %v6841_v44  ;;  %v6037_v18 = vsel %vm1528_vm13, 1.0, %v6841_v44  ;;  %3961 = vmatmul.mubr.f32.vlgmr.msra.gmra.mrb[0].mxu1 %v1679_v43 }
 0x34e   :  { %v3071_v54 = vadd.f32 %v5980_v14, %v3070_v4  ;;  %v3415_v22 = vpack.c.bf16 %v6031_v1, %v6031_v1  ;;  %v3416_v24 = vpack.c.bf16 %v6037_v18, %v6037_v18  ;;  %4347 = vmatpush3.bf16.msra.mxu1 %v5630_v36  ;;  %v6049_v58 = vadd.s32 %v5765_v32, %v1446_v20 }
 0x34f   :  { %v1689_v21 = vand.u32 4294901760, %v1688_v27  ;;  %v6045_v8 = vadd.s32 %v5761_v49, %v1432_v47  ;;  %v1698_v27 = vsub.f32 %v5952_v25, %v6796_v38  ;;  %4349 = vmatprep.subr.bf16.mxu1 %v5831_v39  ;;  %v1459_v43 = vpop.xlane.xlu1 %1458  ;;  %v6056_v4 = vsub.f32 %v3332_v52, %v3332_v52  ;;  %v1473_v33 = vpop.xlane.xlu0 %1472 }
 0x350   :  { %v3072_v6 = vadd.f32 %v6031_v1, %v3071_v54  ;;  %v1900_v49 = vand.u32 4294901760, %v5851_v28  ;;  %2975 = vst.msk [vmem:[%s6736_s5 + $0x1c] sm:$0xf] %vm2967_vm4, %v3415_v22  ;;  %2976 = vst.msk [vmem:[%s6736_s5 + $0x20] sm:$0xf] %vm2967_vm4, %v3416_v24  ;;  %vm1530_vm15 = vcmp.eq.s32.totalorder %v5231_v40, %v6049_v58  ;;  %v1460_v36 = vcvt.f32.s32 %v1459_v43 }
 0x351   :  { %3963 = vmatprep.mubr.f32.mxu1 %v1689_v21  ;;  %6843 = vst [vmem:[#allocation22_spill] sm:$0xff] %v6056_v4  ;;  %vm1529_vm14 = vcmp.eq.s32.totalorder %v5231_v40, %v6045_v8  ;;  %2896 = vst.msk [vmem:[%s6737_s6 + $0x48] sm:$0xff] %vm2886_vm3, %v6045_v8  ;;  %v1474_v32 = vcvt.f32.s32 %v1473_v33  ;;  %v6090_v47 = vsel %vm1530_vm15, 1.0, %v6841_v44  ;;  %v1699_v20 = vand.u32 4294901760, %v1698_v27  ;;  %v4703_v8 = vld [vmem:[%s6731_s0] sm:$0xff] }
 0x352   :  { %2897 = vst.msk [vmem:[%s6737_s6 + $0x50] sm:$0xff] %vm2886_vm3, %v6049_v58  ;;  %v3337_v28 = vsel %vm1529_vm14, 1.0, %v6841_v44  ;;  %v3073_v52 = vadd.f32 %v6037_v18, %v3072_v6  ;;  %v3418_v21 = vpack.c.bf16 %v6090_v47, %v6090_v47  ;;  %v6095_v33 = vadd.s32 %v5773_v45, %v1460_v36  ;;  %4351 = vmatpush3.bf16.msra.mxu1 %v5831_v39 }
 0x353   :  { %v3417_v54 = vpack.c.bf16 %v3337_v28, %v3337_v28  ;;  %v6797_v22 = vand.u32 4294901760, %v6056_v4  ;;  %3964 = vmatmul.mubr.f32.gmra.mrb[2].mxu1 %v1699_v20  ;;  %v6100_v6 = vadd.s32 %v5798_v5, %v1474_v32  ;;  %v6102_v43 = vsub.f32 %v3333_v0, %v3333_v0  ;;  %4353 = vmatprep.subr.bf16.mxu1 %v5842_v46  ;;  %v1487_v27 = vpop.xlane.xlu1 %1486 }
 0x354   :  { %v3074_v24 = vadd.f32 %v3337_v28, %v3073_v52  ;;  %v1907_v38 = vand.u32 4294901760, %v5887_v55  ;;  %2978 = vst.msk [vmem:[%s6736_s5 + $0x28] sm:$0xf] %vm2967_vm4, %v3418_v21  ;;  %vm1531_vm1 = vcmp.eq.s32.totalorder %v5231_v40, %v6095_v33  ;;  %v1488_v45 = vcvt.f32.s32 %v1487_v27 }
 0x355   :  { %6844 = vst [vmem:[#allocation23_spill] sm:$0xff] %v6102_v43  ;;  %2977 = vst.msk [vmem:[%s6736_s5 + $0x24] sm:$0xf] %vm2967_vm4, %v3417_v54  ;;  %v1708_v5 = vsub.f32 %v6056_v4, %v6797_v22  ;;  %v6126_v39 = vsub.f32 %v5980_v14, %v5980_v14  ;;  %v3339_v0 = vsel %vm1531_vm1, 1.0, %v6841_v44  ;;  %vm6806_vm2 = vcmp.eq.s32.totalorder %v5231_v40, %v6100_v6  ;;  %v1501_v14 = vpop.xlane.xlu0 %1500 }
 0x356   :  { %2898 = vst.msk [vmem:[%s6737_s6 + $0x58] sm:$0xff] %vm2886_vm3, %v6095_v33  ;;  %v3075_v55 = vadd.f32 %v6090_v47, %v3074_v24  ;;  %2899 = vst.msk [vmem:[%s6737_s6 + $0x60] sm:$0xff] %vm2886_vm3, %v6100_v6  ;;  %v6799_v36 = vand.u32 4294901760, %v6102_v43  ;;  %v3419_v32 = vpack.c.bf16 %v3339_v0, %v3339_v0  ;;  %v3340_v20 = vsel %vm6806_vm2, 1.0, %v6841_v44  ;;  %4355 = vmatpush3.bf16.msra.mxu1 %v5842_v46 }
 0x357   :  { %v1709_v52 = vand.u32 4294901760, %v1708_v5  ;;  %v6146_v54 = vadd.s32 %v5800_v10, %v1488_v45  ;;  %v3420_v24 = vpack.c.bf16 %v3340_v20, %v3340_v20  ;;  %v6804_v22 = vand.u32 4294901760, %v6126_v39  ;;  %4357 = vmatprep.subr.bf16.mxu1 %v5844_v62  ;;  %v1515_v5 = vpop.xlane.xlu1 %1514 }
 0x358   :  { %v3076_v21 = vadd.f32 %v3339_v0, %v3075_v55  ;;  %v1718_v27 = vsub.f32 %v6102_v43, %v6799_v36  ;;  %2979 = vst.msk [vmem:[%s6736_s5 + $0x2c] sm:$0xf] %vm2967_vm4, %v3419_v32  ;;  %v1502_v10 = vcvt.f32.s32 %v1501_v14  ;;  %v6167_v46 = vsub.f32 %v6031_v1, %v6031_v1 }
 0x359   :  { %3966 = vmatprep.mubr.f32.mxu1 %v1709_v52  ;;  %vm6805_vm0 = vcmp.eq.s32.totalorder %v5231_v40, %v6146_v54  ;;  %2900 = vst.msk [vmem:[%s6737_s6 + $0x68] sm:$0xff] %vm2886_vm3, %v6146_v54  ;;  %v1516_v45 = vcvt.f32.s32 %v1515_v5  ;;  %v1728_v14 = vsub.f32 %v6126_v39, %v6804_v22  ;;  %v4364_v52 = vpack.c.bf16 %v1907_v38, %v1900_v49 }
 0x35a   :  { %2980 = vst.msk [vmem:[%s6736_s5 + $0x30] sm:$0xf] %vm2967_vm4, %v3420_v24  ;;  %v1719_v55 = vand.u32 4294901760, %v1718_v27  ;;  %v3341_v32 = vsel %vm6805_vm0, 1.0, %v6841_v44  ;;  %v6181_v1 = vadd.s32 %v5812_v63, %v1502_v10  ;;  %v6809_v5 = vand.u32 4294901760, %v6167_v46  ;;  %4359 = vmatpush3.bf16.msra.mxu1 %v5844_v62 }
 0x35b   :  { %v3421_v36 = vpack.c.bf16 %v3341_v32, %v3341_v32  ;;  %v6185_v43 = vadd.s32 %v5821_v13, %v1516_v45  ;;  %v3077_v24 = vadd.f32 %v3340_v20, %v3076_v21  ;;  %v1729_v27 = vand.u32 4294901760, %v1728_v14  ;;  %4361 = vmatprep.subr.bf16.mxu1 %v5846_v56 }
 0x35c   :  { %3967 = vmatmul.mubr.f32.gmra.mrb[4].mxu1 %v1719_v55  ;;  %v6190_v4 = vsub.f32 %v6037_v18, %v6037_v18  ;;  %v6192_v22 = vsub.f32 %v3337_v28, %v3337_v28  ;;  %vm1534_vm0 = vcmp.eq.s32.totalorder %v5231_v40, %v6181_v1  ;;  %2901 = vst.msk [vmem:[%s6737_s6 + $0x70] sm:$0xff] %vm2886_vm3, %v6181_v1 }
 0x35d   :  { %2981 = vst.msk [vmem:[%s6736_s5 + $0x34] sm:$0xf] %vm2967_vm4, %v3421_v36  ;;  %v1738_v38 = vsub.f32 %v6167_v46, %v6809_v5  ;;  %vm1535_vm2 = vcmp.eq.s32.totalorder %v5231_v40, %v6185_v43  ;;  %v6218_v63 = vsub.f32 %v6090_v47, %v6090_v47  ;;  %3969 = vmatprep.mubr.f32.mxu1 %v1729_v27  ;;  %v3342_v13 = vsel %vm1534_vm0, 1.0, %v6841_v44 }
 0x35e   :  { %2902 = vst.msk [vmem:[%s6737_s6 + $0x78] sm:$0xff] %vm2886_vm3, %v6185_v43  ;;  %v3343_v62 = vsel %vm1535_vm2, 1.0, %v6841_v44  ;;  %v6808_v18 = vand.u32 4294901760, %v6190_v4  ;;  %v6807_v49 = vand.u32 4294901760, %v6192_v22  ;;  %v3422_v28 = vpack.c.bf16 %v3342_v13, %v3342_v13  ;;  %4363 = vmatpush3.bf16.msra.mxu1 %v5846_v56 }
 0x35f   :  { %v1739_v36 = vand.u32 4294901760, %v1738_v38  ;;  %v3423_v21 = vpack.c.bf16 %v3343_v62, %v3343_v62  ;;  %v6810_v47 = vand.u32 4294901760, %v6218_v63  ;;  %v6238_v44 = vsub.f32 %v3339_v0, %v3339_v0  ;;  %4365 = vmatprep.subr.bf16.mxu1 %v4364_v52 }
 0x360   :  { %v1748_v10 = vsub.f32 %v6190_v4, %v6808_v18  ;;  %v1758_v45 = vsub.f32 %v6192_v22, %v6807_v49  ;;  %v6240_v55 = vsub.f32 %v3340_v20, %v3340_v20  ;;  %2982 = vst.msk [vmem:[%s6736_s5 + $0x38] sm:$0xf] %vm2967_vm4, %v3422_v28  ;;  %v6253_v0 = vsub.f32 %v3341_v32, %v3341_v32 }
 0x361   :  { %3970 = vmatmul.mubr.f32.gmra.mrb[6].mxu1 %v1739_v36  ;;  %2983 = vst.msk [vmem:[%s6736_s5 + $0x3c] sm:$0xf] %vm2967_vm4, %v3423_v21  ;;  %v1768_v56 = vsub.f32 %v6218_v63, %v6810_v47  ;;  %v6255_v14 = vsub.f32 %v3342_v13, %v3342_v13  ;;  %v6257_v20 = vsub.f32 %v3343_v62, %v3343_v62  ;;  %v1777_v28 = vand.u32 4294901760, %v6238_v44 }
 0x362   :  { %v1749_v27 = vand.u32 4294901760, %v1748_v10  ;;  %v1759_v38 = vand.u32 4294901760, %v1758_v45  ;;  %v6812_v36 = vand.u32 4294901760, %v6240_v55  ;;  %v3078_v49 = vadd.f32 %v3341_v32, %v3077_v24  ;;  %4367 = vmatpush3.bf16.msra.mxu1 %v4364_v52 }
 0x363   :  { %v1769_v18 = vand.u32 4294901760, %v1768_v56  ;;  %v6811_v21 = vand.u32 4294901760, %v6253_v0  ;;  %v1807_v5 = vand.u32 4294901760, %v6255_v14  ;;  %v1778_v47 = vsub.f32 %v6238_v44, %v1777_v28  ;;  %4369 = vmatprep.subr.bf16.mxu1 %v5669_v35 }
 0x364   :  { %3972 = vmatprep.mubr.f32.mxu1 %v1749_v27  ;;  %v1788_v10 = vsub.f32 %v6240_v55, %v6812_v36  ;;  %v6813_v52 = vand.u32 4294901760, %v6257_v20  ;;  %v3079_v27 = vadd.f32 %v3342_v13, %v3078_v49  ;;  %vm6845_vm3 = vcmp.eq.s32.totalorder %v5231_v40, %v6100_v6 }
 0x365   :  { %3973 = vmatmul.mubr.f32.gmra.mrb[8].mxu1 %v1759_v38  ;;  %v1798_v32 = vsub.f32 %v6253_v0, %v6811_v21  ;;  %v1779_v24 = vand.u32 4294901760, %v1778_v47  ;;  %v1808_v56 = vsub.f32 %v6255_v14, %v1807_v5  ;;  %vm6846_vm4 = vcmp.eq.s32.totalorder %v5231_v40, %v6146_v54  ;;  %v4702_v40 = vld [vmem:[%s6731_s0 + $0x8] sm:$0xff] }
 0x366   :  { %3975 = vmatprep.mubr.f32.mxu1 %v1769_v18  ;;  %v1789_v45 = vand.u32 4294901760, %v1788_v10  ;;  %4371 = vmatpush3.bf16.msra.mxu1 %v5669_v35  ;;  %v1818_v21 = vsub.f32 %v6257_v20, %v6813_v52  ;;  %v3080_v36 = vadd.f32 %v3343_v62, %v3079_v27  ;;  %v4380_v62 = vpack.c.bf16 %v5705_v34, %v5700_v9  ;;  %v6850_v27 = vld [vmem:[#allocation9_spill] sm:$0xff] }
 0x367   :  { %4373 = vmatprep.subr.bf16.mxu1 %v5671_v60  ;;  %v1799_v38 = vand.u32 4294901760, %v1798_v32  ;;  %v1809_v18 = vand.u32 4294901760, %v1808_v56  ;;  %v6849_v56 = vld [vmem:[#allocation22_spill] sm:$0xff]  ;;  %v6864_v52 = vand.u32 4294901760, %v5902_v42 }
 0x368   :  { %v3081_v47 = vrot.slane %v3080_v36, 4  ;;  %v1819_v10 = vand.u32 4294901760, %v1818_v21  ;;  %v4392_v21 = vpack.c.bf16 %v5738_v16, %v5733_v31 }
 0x369   :  { %3976 = vmatmul.mubr.f32.gmra.mrb[10].mxu1 %v1779_v24  ;;  %v4396_v24 = vpack.c.bf16 %v5807_v19, %v5796_v37 }
 0x36a   :  { %3978 = vmatprep.mubr.f32.mxu1 %v1789_v45  ;;  %4375 = vmatpush3.bf16.msra.mxu1 %v5671_v60  ;;  %v3082_v35 = vadd.f32 %v3081_v47, %v3080_v36  ;;  %v4384_v36 = vpack.c.bf16 %v5717_v59, %v5712_v41  ;;  %v6847_v45 = vld [vmem:[#allocation21_spill] sm:$0xff]  ;;  %v6854_v47 = vld [vmem:[#allocation12_spill] sm:$0xff] }
 0x36b   :  { %4377 = vmatprep.subr.bf16.mxu1 %v5675_v53 }
 0x36c   :  { %v3083_v13 = vrot.slane %v3082_v35, 2 }
 0x36d   :  { %3979 = vmatmul.mubr.f32.gmra.mrb[12].mxu1 %v1799_v38  ;;  %v6852_v38 = vld [vmem:[#allocation10_spill] sm:$0xff] }
 0x36e   :  { %3981 = vmatprep.mubr.f32.mxu1 %v1809_v18  ;;  %v3084_v49 = vadd.f32 %v3083_v13, %v3082_v35  ;;  %v6853_v18 = vld [vmem:[#allocation11_spill] sm:$0xff]  ;;  %v6856_v35 = vld [vmem:[#allocation14_spill] sm:$0xff] }
 0x36f   :  { %v6857_v13 = vld [vmem:[#allocation15_spill] sm:$0xff] }
 0x370   :  { %v3085_v32 = vrot.slane %v3084_v49, 1 }
 0x371   :  { %3982 = vmatmul.mubr.f32.gmra.mrb[14].mxu1 %v1819_v10  ;;  %v6855_v10 = vld [vmem:[#allocation13_spill] sm:$0xff] }
 0x372   :  { %4016 = vmatprep.mubr.msk.f32.mxu1 %vm1520_vm5, %v6839_v61  ;;  %v3086_v60 = vadd.f32 %v3085_v32, %v3084_v49  ;;  %v6858_v49 = vand.u32 4294901760, %v6857_v13  ;;  %v6865_v13 = vand.u32 4294901760, %v6847_v45 }
 0x374   :  { %3087 = vst [vmem:[#allocation4] sm:$0x1] %v3086_v60 }
 0x375   :  { %4017 = vmatmul.mubr.msk.f32.vlgmr.msra.gmra.mrb[0].mxu1 %vm1521_vm6, %v6839_v61 }
 0x376   :  { %4019 = vmatprep.mubr.msk.f32.mxu1 %vm1522_vm7, %v6839_v61  ;;  %4379 = vmatpush3.bf16.msra.mxu1 %v5675_v53  ;;  %v4388_v53 = vpack.c.bf16 %v5728_v57, %v5722_v12 }
 0x377   :  { %4381 = vmatprep.subr.bf16.mxu1 %v4380_v62 }
 0x379   :  { %4020 = vmatmul.mubr.msk.f32.gmra.mrb[2].mxu1 %vm1523_vm8, %v6839_v61 }
 0x37a   :  { %4022 = vmatprep.mubr.msk.f32.mxu1 %vm1524_vm9, %v6839_v61  ;;  %4383 = vmatpush3.bf16.msra.mxu1 %v4380_v62  ;;  %v6859_v62 = vld [vmem:[#allocation16_spill] sm:$0xff] }
 0x37b   :  { %4385 = vmatprep.subr.bf16.mxu1 %v4384_v36  ;;  %v6860_v32 = vand.u32 4294901760, %v6859_v62  ;;  %v6867_v62 = vand.u32 4294901760, %v5717_v59  ;;  %v6874_v59 = vand.u32 4294901760, %v5733_v31  ;;  %v6881_v31 = vand.u32 4294901760, %v6218_v63 }
 0x37d   :  { %4023 = vmatmul.mubr.msk.f32.gmra.mrb[4].mxu1 %vm1525_vm11, %v6839_v61  ;;  %v4440_v60 = vpack.c.bf16 %v6860_v32, %v6858_v49  ;;  %v6866_v49 = vand.u32 4294901760, %v5712_v41  ;;  %v6868_v32 = vand.u32 4294901760, %v5952_v25  ;;  %v6873_v41 = vand.u32 4294901760, %v6126_v39 }
 0x37e   :  { %4025 = vmatprep.mubr.msk.f32.mxu1 %vm1526_vm10, %v6839_v61  ;;  %4387 = vmatpush3.bf16.msra.mxu1 %v4384_v36  ;;  %v6861_v36 = vand.u32 4294901760, %v5840_v3 }
 0x37f   :  { %4389 = vmatprep.subr.bf16.mxu1 %v4388_v53 }
 0x381   :  { %4026 = vmatmul.mubr.msk.f32.gmra.mrb[6].mxu1 %vm1527_vm12, %v6839_v61 }
 0x382   :  { %4028 = vmatprep.mubr.msk.f32.mxu1 %vm1528_vm13, %v6839_v61  ;;  %4391 = vmatpush3.bf16.msra.mxu1 %v4388_v53  ;;  %v6862_v53 = vand.u32 4294901760, %v5700_v9  ;;  %v6869_v9 = vand.u32 4294901760, %v6849_v56 }
 0x383   :  { %4393 = vmatprep.subr.bf16.mxu1 %v4392_v21 }
 0x385   :  { %4029 = vmatmul.mubr.msk.f32.gmra.mrb[8].mxu1 %vm1529_vm14, %v6839_v61 }
 0x386   :  { %4031 = vmatprep.mubr.msk.f32.mxu1 %vm1530_vm15, %v6839_v61  ;;  %4395 = vmatpush3.bf16.msra.mxu1 %v4392_v21  ;;  %v6863_v21 = vand.u32 4294901760, %v5705_v34  ;;  %v6870_v34 = vand.u32 4294901760, %v5722_v12  ;;  %v6877_v12 = vand.u32 4294901760, %v6190_v4 }
 0x387   :  { %4397 = vmatprep.subr.bf16.mxu1 %v4396_v24 }
 0x389   :  { %4032 = vmatmul.mubr.msk.f32.gmra.mrb[10].mxu1 %vm1531_vm1, %v6839_v61 }
 0x38a   :  { %4034 = vmatprep.mubr.msk.f32.mxu1 %vm6845_vm3, %v6839_v61  ;;  %4399 = vmatpush3.bf16.msra.mxu1 %v4396_v24  ;;  %v4444_v24 = vpack.c.bf16 %v6863_v21, %v6862_v53  ;;  %v6884_v53 = vld [vmem:[#allocation18_spill] sm:$0xff] }
 0x38b   :  { %4401 = vmatprep.subr.bf16.mxu1 %v5679_v50 }
 0x38d   :  { %4035 = vmatmul.mubr.msk.f32.gmra.mrb[12].mxu1 %vm6846_vm4, %v6839_v61 }
 0x38e   :  { %4037 = vmatprep.mubr.msk.f32.mxu1 %vm1534_vm0, %v6839_v61  ;;  %4403 = vmatpush3.bf16.msra.mxu1 %v5679_v50  ;;  %v6848_v50 = vld [vmem:[#allocation8_spill] sm:$0xff] }
 0x38f   :  { %4405 = vmatprep.subr.bf16.mxu1 %v5683_v51 }
 0x391   :  { %4038 = vmatmul.mubr.msk.f32.gmra.mrb[14].mxu1 %vm1535_vm2, %v6839_v61 }
 0x392   :  { %4407 = vmatpush3.bf16.msra.mxu1 %v5683_v51  ;;  %4072 = vmatprep.mubr.f32.mxu1 %v5840_v3  ;;  %v6851_v51 = vld [vmem:[#allocation23_spill] sm:$0xff]  ;;  %v4448_v3 = vpack.c.bf16 %v6867_v62, %v6866_v49  ;;  %v6891_v49 = vand.u32 4294901760, %v6253_v0 }
 0x393   :  { %4409 = vmatprep.subr.bf16.mxu1 %v5394_v17 }
 0x395   :  { %4073 = vmatmul.mubr.f32.vlgmr.msra.gmra.mrb[0].mxu1 %v5902_v42  ;;  %v6871_v42 = vand.u32 4294901760, %v5728_v57  ;;  %v6878_v57 = vand.u32 4294901760, %v5796_v37  ;;  %v6886_v37 = vand.u32 4294901760, %v6240_v55 }
 0x396   :  { %4075 = vmatprep.mubr.f32.mxu1 %v6847_v45  ;;  %4411 = vmatpush3.bf16.msra.mxu1 %v5394_v17  ;;  %v6872_v45 = vand.u32 4294901760, %v6851_v51 }
 0x397   :  { %4413 = vmatprep.subr.bf16.mxu1 %v6848_v50 }
 0x399   :  { %4076 = vmatmul.mubr.f32.gmra.mrb[2].mxu1 %v5952_v25  ;;  %v6875_v25 = vand.u32 4294901760, %v5738_v16  ;;  %v6882_v16 = vld [vmem:[#allocation17_spill] sm:$0xff] }
 0x39a   :  { %4078 = vmatprep.mubr.f32.mxu1 %v6849_v56  ;;  %4415 = vmatpush3.bf16.msra.mxu1 %v6848_v50 }
 0x39b   :  { %4417 = vmatprep.subr.bf16.mxu1 %v6850_v27  ;;  %v4456_v56 = vpack.c.bf16 %v6875_v25, %v6874_v59 }
 0x39d   :  { %4079 = vmatmul.mubr.f32.gmra.mrb[4].mxu1 %v6851_v51 }
 0x39e   :  { %4081 = vmatprep.mubr.f32.mxu1 %v6126_v39  ;;  %4419 = vmatpush3.bf16.msra.mxu1 %v6850_v27  ;;  %v6879_v39 = vand.u32 4294901760, %v5807_v19  ;;  %v6887_v19 = vld [vmem:[#allocation19_spill] sm:$0xff] }
 0x39f   :  { %4421 = vmatprep.subr.bf16.mxu1 %v6852_v38 }
 0x3a0   :  { %v4460_v51 = vpack.c.bf16 %v6879_v39, %v6878_v57 }
 0x3a1   :  { %4082 = vmatmul.mubr.f32.gmra.mrb[6].mxu1 %v6167_v46 }
 0x3a2   :  { %4084 = vmatprep.mubr.f32.mxu1 %v6190_v4  ;;  %4423 = vmatpush3.bf16.msra.mxu1 %v6852_v38  ;;  %v6885_v4 = vand.u32 4294901760, %v6884_v53 }
 0x3a3   :  { %4425 = vmatprep.subr.bf16.mxu1 %v6853_v18 }
 0x3a5   :  { %4085 = vmatmul.mubr.f32.gmra.mrb[8].mxu1 %v6192_v22 }
 0x3a6   :  { %4087 = vmatprep.mubr.f32.mxu1 %v6218_v63  ;;  %4427 = vmatpush3.bf16.msra.mxu1 %v6853_v18 }
 0x3a7   :  { %4429 = vmatprep.subr.bf16.mxu1 %v6854_v47 }
 0x3a9   :  { %4088 = vmatmul.mubr.f32.gmra.mrb[10].mxu1 %v6238_v44  ;;  %v6892_v44 = vand.u32 4294901760, %v6257_v20 }
 0x3aa   :  { %4090 = vmatprep.mubr.f32.mxu1 %v6240_v55  ;;  %4431 = vmatpush3.bf16.msra.mxu1 %v6854_v47 }
 0x3ab   :  { %4433 = vmatprep.subr.bf16.mxu1 %v6855_v10 }
 0x3ad   :  { %4091 = vmatmul.mubr.f32.gmra.mrb[12].mxu1 %v6253_v0  ;;  %v4704_v0 = vld [vmem:[%s6731_s0 + $0x18] sm:$0xff] }
 0x3ae   :  { %4093 = vmatprep.mubr.f32.mxu1 %v6255_v14  ;;  %4435 = vmatpush3.bf16.msra.mxu1 %v6855_v10 }
 0x3af   :  { %4437 = vmatprep.subr.bf16.mxu1 %v6856_v35 }
 0x3b1   :  { %4094 = vmatmul.mubr.f32.gmra.mrb[14].mxu1 %v6257_v20 }
 0x3b2   :  { %4439 = vmatpush3.bf16.msra.mxu1 %v6856_v35  ;;  %4128 = vmatprep.mubr.f32.mxu1 %v6861_v36  ;;  %v6880_v36 = vand.u32 4294901760, %v6192_v22  ;;  %v6888_v22 = vand.u32 4294901760, %v6887_v19 }
 0x3b3   :  { %4441 = vmatprep.subr.bf16.mxu1 %v4440_v60 }
 0x3b5   :  { %4129 = vmatmul.mubr.f32.vlgmr.msra.gmra.mrb[0].mxu1 %v6864_v52  ;;  %v4452_v52 = vpack.c.bf16 %v6871_v42, %v6870_v34  ;;  %v4707_v34 = vld [vmem:[%s6731_s0 + $0x20] sm:$0xff] }
 0x3b6   :  { %4131 = vmatprep.mubr.f32.mxu1 %v6865_v13  ;;  %4443 = vmatpush3.bf16.msra.mxu1 %v4440_v60  ;;  %v6876_v60 = vand.u32 4294901760, %v6167_v46  ;;  %v6883_v46 = vand.u32 4294901760, %v6882_v16  ;;  %v4709_v16 = vld [vmem:[%s6731_s0 + $0x30] sm:$0xff] }
 0x3b7   :  { %4445 = vmatprep.subr.bf16.mxu1 %v4444_v24 }
 0x3b8   :  { %v4464_v21 = vpack.c.bf16 %v6885_v4, %v6883_v46 }
 0x3b9   :  { %4132 = vmatmul.mubr.f32.gmra.mrb[2].mxu1 %v6868_v32 }
 0x3ba   :  { %4134 = vmatprep.mubr.f32.mxu1 %v6869_v9  ;;  %4447 = vmatpush3.bf16.msra.mxu1 %v4444_v24  ;;  %v6889_v24 = vld [vmem:[#allocation20_spill] sm:$0xff] }
 0x3bb   :  { %4449 = vmatprep.subr.bf16.mxu1 %v4448_v3  ;;  %v6890_v63 = vand.u32 4294901760, %v6889_v24 }
 0x3bd   :  { %4135 = vmatmul.mubr.f32.gmra.mrb[4].mxu1 %v6872_v45  ;;  %v4468_v13 = vpack.c.bf16 %v6890_v63, %v6888_v22  ;;  %v4711_v63 = vld [vmem:[%s6731_s0 + $0x40] sm:$0xff] }
 0x3be   :  { %4137 = vmatprep.mubr.f32.mxu1 %v6873_v41  ;;  %4451 = vmatpush3.bf16.msra.mxu1 %v4448_v3  ;;  %v4706_v3 = vld [vmem:[%s6731_s0 + $0x28] sm:$0xff] }
 0x3bf   :  { %4453 = vmatprep.subr.bf16.mxu1 %v4452_v52 }
 0x3c1   :  { %4138 = vmatmul.mubr.f32.gmra.mrb[6].mxu1 %v6876_v60 }
 0x3c2   :  { %4140 = vmatprep.mubr.f32.mxu1 %v6877_v12  ;;  %4455 = vmatpush3.bf16.msra.mxu1 %v4452_v52 }
 0x3c3   :  { %4457 = vmatprep.subr.bf16.mxu1 %v4456_v56 }
 0x3c5   :  { %4141 = vmatmul.mubr.f32.gmra.mrb[8].mxu1 %v6880_v36 }
 0x3c6   :  { %4143 = vmatprep.mubr.f32.mxu1 %v6881_v31  ;;  %4459 = vmatpush3.bf16.msra.mxu1 %v4456_v56 }
 0x3c7   :  { %4461 = vmatprep.subr.bf16.mxu1 %v4460_v51 }
 0x3c9   :  { %4144 = vmatmul.mubr.f32.gmra.mrb[10].mxu1 %v1777_v28  ;;  %v4705_v28 = vld [vmem:[%s6731_s0 + $0x10] sm:$0xff] }
 0x3ca   :  { %4146 = vmatprep.mubr.f32.mxu1 %v6886_v37  ;;  %4463 = vmatpush3.bf16.msra.mxu1 %v4460_v51  ;;  %v4708_v51 = vld [vmem:[%s6731_s0 + $0x38] sm:$0xff]  ;;  %v4710_v37 = vld [vmem:[%s6731_s0 + $0x48] sm:$0xff] }
 0x3cb   :  { %4465 = vmatprep.subr.bf16.mxu1 %v4464_v21 }
 0x3cd   :  { %4147 = vmatmul.mubr.f32.gmra.mrb[12].mxu1 %v6891_v49 }
 0x3ce   :  { %4149 = vmatprep.mubr.f32.mxu1 %v1807_v5  ;;  %4467 = vmatpush3.bf16.msra.mxu1 %v4464_v21 }
 0x3cf   :  { %4469 = vmatprep.subr.bf16.mxu1 %v4468_v13 }
 0x3d1   :  { %4150 = vmatmul.mubr.f32.gmra.mrb[14].mxu1 %v6892_v44 }
 0x3d2   :  { %4471 = vmatpush3.bf16.msra.mxu1 %v4468_v13  ;;  %4184 = vmatprep.mubr.msk.f32.mxu1 %vm1520_vm5, %v6839_v61  ;;  %vm6893_vm5 = vmmov %vm6845_vm3 }
 0x3d3   :  { %4504 = vmatprep.subr.bf16.mxu1 %v5394_v17 }
 0x3d5   :  { %4185 = vmatmul.mubr.msk.f32.vlgmr.msra.gmra.mrb[0].mxu1 %vm1521_vm6, %v6839_v61  ;;  %vm6894_vm6 = vmmov %vm6846_vm4 }
 0x3d6   :  { %4187 = vmatprep.mubr.msk.f32.mxu1 %vm1522_vm7, %v6839_v61  ;;  %4512 = vmatpush3.bf16.msra.mxu1 %v5394_v17  ;;  %vm6895_vm7 = vmmov %vm6845_vm3 }
 0x3d7   :  { %4505 = vmatprep.subr.bf16.mxu1 %v6848_v50 }
 0x3d9   :  { %4188 = vmatmul.mubr.msk.f32.gmra.mrb[2].mxu1 %vm1523_vm8, %v6839_v61  ;;  %vm6896_vm8 = vmmov %vm6846_vm4 }
 0x3da   :  { %4190 = vmatprep.mubr.msk.f32.mxu1 %vm1524_vm9, %v6839_v61  ;;  %4513 = vmatpush3.bf16.msra.mxu1 %v6848_v50  ;;  %vm6897_vm9 = vcmask 261120  }
 0x3db   :  { %4506 = vmatprep.subr.bf16.mxu1 %v6850_v27 }
 0x3dd   :  { %4191 = vmatmul.mubr.msk.f32.gmra.mrb[4].mxu1 %vm1525_vm11, %v6839_v61 }
 0x3de   :  { %4193 = vmatprep.mubr.msk.f32.mxu1 %vm1526_vm10, %v6839_v61  ;;  %4514 = vmatpush3.bf16.msra.mxu1 %v6850_v27 }
 0x3df   :  { %4507 = vmatprep.subr.bf16.mxu1 %v6852_v38 }
 0x3e1   :  { %4194 = vmatmul.mubr.msk.f32.gmra.mrb[6].mxu1 %vm1527_vm12, %v6839_v61 }
 0x3e2   :  { %4196 = vmatprep.mubr.msk.f32.mxu1 %vm1528_vm13, %v6839_v61  ;;  %4515 = vmatpush3.bf16.msra.mxu1 %v6852_v38 }
 0x3e3   :  { %4508 = vmatprep.subr.bf16.mxu1 %v6853_v18 }
 0x3e5   :  { %4197 = vmatmul.mubr.msk.f32.gmra.mrb[8].mxu1 %vm1529_vm14, %v6839_v61 }
 0x3e6   :  { %4199 = vmatprep.mubr.msk.f32.mxu1 %vm1530_vm15, %v6839_v61  ;;  %4516 = vmatpush3.bf16.msra.mxu1 %v6853_v18 }
 0x3e7   :  { %4509 = vmatprep.subr.bf16.mxu1 %v6854_v47 }
 0x3e9   :  { %4200 = vmatmul.mubr.msk.f32.gmra.mrb[10].mxu1 %vm1531_vm1, %v6839_v61 }
 0x3ea   :  { %4202 = vmatprep.mubr.msk.f32.mxu1 %vm6893_vm5, %v6839_v61  ;;  %4517 = vmatpush3.bf16.msra.mxu1 %v6854_v47 }
 0x3eb   :  { %4510 = vmatprep.subr.bf16.mxu1 %v6855_v10 }
 0x3ed   :  { %4203 = vmatmul.mubr.msk.f32.gmra.mrb[12].mxu1 %vm6894_vm6, %v6839_v61 }
 0x3ee   :  { %4205 = vmatprep.mubr.msk.f32.mxu1 %vm1534_vm0, %v6839_v61  ;;  %4518 = vmatpush3.bf16.msra.mxu1 %v6855_v10 }
 0x3ef   :  { %4511 = vmatprep.subr.bf16.mxu1 %v6856_v35 }
 0x3f1   :  { %4206 = vmatmul.mubr.msk.f32.gmra.mrb[14].mxu1 %vm1535_vm2, %v6839_v61 }
 0x3f2   :  { %4519 = vmatpush3.bf16.msra.mxu1 %v6856_v35  ;;  %4249 = vmatprep.mubr.msk.f32.mxu1 %vm1526_vm10, %v6839_v61 }
 0x3f5   :  { %4250 = vmatmul.mubr.msk.f32.vlgmr.msra.gmra.mrb[6].mxu1 %vm1527_vm12, %v6839_v61 }
 0x3f6   :  { %4252 = vmatprep.mubr.msk.f32.mxu1 %vm1528_vm13, %v6839_v61 }
 0x3f9   :  { %4253 = vmatmul.mubr.msk.f32.gmra.mrb[8].mxu1 %vm1529_vm14, %v6839_v61 }
 0x3fa   :  { %4255 = vmatprep.mubr.msk.f32.mxu1 %vm1530_vm15, %v6839_v61 }
 0x3fd   :  { %4256 = vmatmul.mubr.msk.f32.gmra.mrb[10].mxu1 %vm1531_vm1, %v6839_v61 }
 0x3fe   :  { %4258 = vmatprep.mubr.msk.f32.mxu1 %vm6895_vm7, %v6839_v61 }
 0x401   :  { %4259 = vmatmul.mubr.msk.f32.gmra.mrb[12].mxu1 %vm6896_vm8, %v6839_v61 }
 0x402   :  { %4261 = vmatprep.mubr.msk.f32.mxu1 %vm1534_vm0, %v6839_v61  ;;  %vm6898_vm0 = vmmov %vm6897_vm9 }
 0x403   :  { %vm6899_vm10 = vmmov %vm6898_vm0 }
 0x404   :  { %vm6900_vm11 = vmmov %vm6898_vm0 }
 0x405   :  { %4262 = vmatmul.mubr.msk.f32.gmra.mrb[14].mxu1 %vm1535_vm2, %v6839_v61  ;;  %vm6901_vm12 = vmmov %vm6898_vm0 }
 0x406   :  { %vm6902_vm13 = vmmov %vm6898_vm0 }
 0x407   :  { %vm6903_vm14 = vmmov %vm6898_vm0 }
 0x408   :  { %vm6904_vm15 = vmmov %vm6898_vm0 }
 0x409   :  { %vm6905_vm1 = vmmov %vm6898_vm0 }
 0x40a   :  { %vm6906_vm2 = vmmov %vm6898_vm0 }
 0x40b   :  { %vm6907_vm3 = vmmov %vm6898_vm0 }
 0x40c   :  { %vm6908_vm4 = vmmov %vm6898_vm0 }
 0x40d   :  { %vm6909_vm5 = vmmov %vm6898_vm0 }
 0x40e   :  { %vm6910_vm6 = vmmov %vm6898_vm0 }
 0x40f   :  { %vm6911_vm7 = vmmov %vm6898_vm0 }
 0x410   :  { %vm6912_vm8 = vmmov %vm6898_vm0 }
 0x414   :  { %v4242_v17 = vpop.f32.mrb[16].mxu0 }
 0x415   :  { %v2776_v7 = vpop.f32.mrb[17].mxu0 }
 0x418   :  { %v4245_v29 = vpop.f32.mrb[18].mxu0 }
 0x419   :  { %v2788_v15 = vpop.f32.mrb[19].mxu0 }
 0x41c   :  { %v4248_v23 = vpop.f32.mrb[20].mxu0 }
 0x41d   :  { %v2800_v11 = vpop.f32.mrb[21].mxu0 }
 0x4a8   :  { %v4186_v2 = vpop.f32.mrb[0].mxu1 }
 0x4a9   :  { %v4536_v48 = vadd.f32 %v4242_v17, %v4186_v2  ;;  %v2599_v30 = vpop.f32.mrb[1].mxu1 }
 0x4aa   :  { %v4537_v26 = vadd.f32 %v2776_v7, %v2599_v30  ;;  %v4713_v30 = vld [vmem:[%s6731_s0 + $0x50] sm:$0xff] }
 0x4ab   :  { %2871 = vst.msk [vmem:[%s6735_s4 + $0x8] sm:$0xff] %vm6897_vm9, %v4536_v48  ;;  %v2985_v61 = vsub.f32 %v4536_v48, %v4702_v40  ;;  %vm6913_vm9 = vmmov %vm6898_vm0 }
 0x4ac   :  { %2870 = vst.msk [vmem:[%s6735_s4] sm:$0xff] %vm6898_vm0, %v4537_v26  ;;  %v2984_v58 = vsub.f32 %v4537_v26, %v4703_v8  ;;  %v4189_v33 = vpop.f32.mrb[2].mxu1 }
 0x4ad   :  { %v3008_v6 = vmul.f32 %v2985_v61, %v2985_v61  ;;  %v4538_v43 = vadd.f32 %v4245_v29, %v4189_v33  ;;  %v2611_v54 = vpop.f32.mrb[3].mxu1 }
 0x4ae   :  { %v3007_v1 = vmul.f32 %v2984_v58, %v2984_v58  ;;  %v4539_v5 = vadd.f32 %v2788_v15, %v2611_v54 }
 0x4af   :  { %v3024_v55 = vsel %vm6899_vm10, %v3008_v6, 0.0  ;;  %2873 = vst.msk [vmem:[%s6735_s4 + $0x18] sm:$0xff] %vm6900_vm11, %v4538_v43  ;;  %v2987_v14 = vsub.f32 %v4538_v43, %v4704_v0  ;;  %vm6914_vm10 = vmmov %vm6898_vm0  ;;  %v4714_v43 = vld [vmem:[%s6731_s0 + $0x68] sm:$0xff] }
 0x4b0   :  { %v3023_v20 = vsel %vm6901_vm12, %v3007_v1, 0.0  ;;  %2872 = vst.msk [vmem:[%s6735_s4 + $0x10] sm:$0xff] %vm6902_vm13, %v4539_v5  ;;  %v2986_v50 = vsub.f32 %v4539_v5, %v4705_v28  ;;  %v4192_v27 = vpop.f32.mrb[4].mxu1  ;;  %vm6915_vm11 = vmmov %vm6898_vm0 }
 0x4b1   :  { %v3025_v38 = vadd.f32 %v3024_v55, %v3023_v20  ;;  %v4540_v18 = vadd.f32 %v4248_v23, %v4192_v27  ;;  %v2623_v47 = vpop.f32.mrb[5].mxu1  ;;  %v3010_v10 = vmul.f32 %v2987_v14, %v2987_v14  ;;  %v4712_v23 = vld [vmem:[%s6731_s0 + $0x58] sm:$0xff]  ;;  %vm6916_vm12 = vmmov %vm6898_vm0  ;;  %v4715_v55 = vld [vmem:[%s6731_s0 + $0x60] sm:$0xff] }
 0x4b2   :  { %v3009_v35 = vmul.f32 %v2986_v50, %v2986_v50  ;;  %v4541_v62 = vadd.f32 %v2800_v11, %v2623_v47  ;;  %vm6917_vm13 = vmmov %vm6898_vm0 }
 0x4b3   :  { %2875 = vst.msk [vmem:[%s6735_s4 + $0x28] sm:$0xff] %vm6903_vm14, %v4540_v18  ;;  %v2989_v32 = vsub.f32 %v4540_v18, %v4706_v3  ;;  %v3028_v45 = vsel %vm6906_vm2, %v3010_v10, 0.0  ;;  %vm6918_vm14 = vmmov %vm6898_vm0  ;;  %v4716_v18 = vld [vmem:[%s6731_s0 + $0x78] sm:$0xff] }
 0x4b4   :  { %v3026_v9 = vsel %vm6904_vm15, %v3009_v35, 0.0  ;;  %2874 = vst.msk [vmem:[%s6735_s4 + $0x20] sm:$0xff] %vm6905_vm1, %v4541_v62  ;;  %v2988_v42 = vsub.f32 %v4541_v62, %v4707_v34  ;;  %vm6919_vm15 = vmmov %vm6898_vm0  ;;  %v4717_v62 = vld [vmem:[%s6731_s0 + $0x70] sm:$0xff] }
 0x4b5   :  { %v3027_v52 = vadd.f32 %v3026_v9, %v3025_v38  ;;  %v3012_v41 = vmul.f32 %v2989_v32, %v2989_v32  ;;  %vm6920_vm1 = vmmov %vm6898_vm0 }
 0x4b6   :  { %v3011_v59 = vmul.f32 %v2988_v42, %v2988_v42  ;;  %vm6921_vm2 = vmmov %vm6898_vm0 }
 0x4b7   :  { %v3029_v25 = vadd.f32 %v3028_v45, %v3027_v52  ;;  %v3032_v12 = vsel %vm6908_vm4, %v3012_v41, 0.0  ;;  %vm6923_vm4 = vmmov %vm6898_vm0 }
 0x4b8   :  { %v3030_v56 = vsel %vm6907_vm3, %v3011_v59, 0.0  ;;  %vm6922_vm3 = vmmov %vm6898_vm0 }
 0x4b9   :  { %v3031_v60 = vadd.f32 %v3030_v56, %v3029_v25 }
 0x4bb   :  { %v3033_v57 = vadd.f32 %v3032_v12, %v3031_v60 }
 0x4c8   :  { %v4251_v39 = vpop.f32.mrb[6].mxu1 }
 0x4c9   :  { %2877 = vst.msk [vmem:[%s6735_s4 + $0x38] sm:$0xff] %vm6909_vm5, %v4251_v39  ;;  %v2991_v36 = vsub.f32 %v4251_v39, %v4708_v51  ;;  %v2812_v31 = vpop.f32.mrb[7].mxu1  ;;  %vm6924_vm5 = vmmov %vm6898_vm0 }
 0x4ca   :  { %2876 = vst.msk [vmem:[%s6735_s4 + $0x30] sm:$0xff] %vm6910_vm6, %v2812_v31  ;;  %v2990_v46 = vsub.f32 %v2812_v31, %v4709_v16  ;;  %vm6925_vm6 = vmmov %vm6898_vm0 }
 0x4cb   :  { %v3014_v53 = vmul.f32 %v2991_v36, %v2991_v36 }
 0x4cc   :  { %v3013_v4 = vmul.f32 %v2990_v46, %v2990_v46  ;;  %v4254_v21 = vpop.f32.mrb[8].mxu1 }
 0x4cd   :  { %2879 = vst.msk [vmem:[%s6735_s4 + $0x48] sm:$0xff] %vm6911_vm7, %v4254_v21  ;;  %v2993_v19 = vsub.f32 %v4254_v21, %v4710_v37  ;;  %v2824_v22 = vpop.f32.mrb[9].mxu1  ;;  %v3036_v44 = vsel %vm6898_vm0, %v3014_v53, 0.0  ;;  %vm6926_vm7 = vmmov %vm6898_vm0 }
 0x4ce   :  { %v3034_v24 = vsel %vm6912_vm8, %v3013_v4, 0.0  ;;  %2878 = vst.msk [vmem:[%s6735_s4 + $0x40] sm:$0xff] %vm6913_vm9, %v2824_v22  ;;  %v2992_v13 = vsub.f32 %v2824_v22, %v4711_v63  ;;  %vm6927_vm8 = vmmov %vm6898_vm0 }
 0x4cf   :  { %v3035_v49 = vadd.f32 %v3034_v24, %v3033_v57  ;;  %v3016_v17 = vmul.f32 %v2993_v19, %v2993_v19 }
 0x4d0   :  { %v3015_v7 = vmul.f32 %v2992_v13, %v2992_v13  ;;  %v4257_v29 = vpop.f32.mrb[10].mxu1 }
 0x4d1   :  { %v3037_v15 = vadd.f32 %v3036_v44, %v3035_v49  ;;  %2881 = vst.msk [vmem:[%s6735_s4 + $0x58] sm:$0xff] %vm6914_vm10, %v4257_v29  ;;  %v2995_v11 = vsub.f32 %v4257_v29, %v4712_v23  ;;  %v2836_v2 = vpop.f32.mrb[11].mxu1  ;;  %v3040_v61 = vsel %vm6917_vm13, %v3016_v17, 0.0 }
 0x4d2   :  { %v3038_v48 = vsel %vm6915_vm11, %v3015_v7, 0.0  ;;  %2880 = vst.msk [vmem:[%s6735_s4 + $0x50] sm:$0xff] %vm6916_vm12, %v2836_v2  ;;  %v2994_v26 = vsub.f32 %v2836_v2, %v4713_v30 }
 0x4d3   :  { %v3039_v40 = vadd.f32 %v3038_v48, %v3037_v15  ;;  %v3018_v8 = vmul.f32 %v2995_v11, %v2995_v11 }
 0x4d4   :  { %v3017_v58 = vmul.f32 %v2994_v26, %v2994_v26  ;;  %v4260_v33 = vpop.f32.mrb[12].mxu1 }
 0x4d5   :  { %v3041_v6 = vadd.f32 %v3040_v61, %v3039_v40  ;;  %2883 = vst.msk [vmem:[%s6735_s4 + $0x68] sm:$0xff] %vm6918_vm14, %v4260_v33  ;;  %v2997_v54 = vsub.f32 %v4260_v33, %v4714_v43  ;;  %v2848_v1 = vpop.f32.mrb[13].mxu1  ;;  %v3044_v20 = vsel %vm6921_vm2, %v3018_v8, 0.0 }
 0x4d6   :  { %v3042_v5 = vsel %vm6919_vm15, %v3017_v58, 0.0  ;;  %2882 = vst.msk [vmem:[%s6735_s4 + $0x60] sm:$0xff] %vm6920_vm1, %v2848_v1  ;;  %v2996_v0 = vsub.f32 %v2848_v1, %v4715_v55 }
 0x4d7   :  { %v3043_v14 = vadd.f32 %v3042_v5, %v3041_v6  ;;  %v3020_v28 = vmul.f32 %v2997_v54, %v2997_v54 }
 0x4d8   :  { %v3019_v50 = vmul.f32 %v2996_v0, %v2996_v0  ;;  %v4263_v27 = vpop.f32.mrb[14].mxu1 }
 0x4d9   :  { %v3045_v38 = vadd.f32 %v3044_v20, %v3043_v14  ;;  %2885 = vst.msk [vmem:[%s6735_s4 + $0x78] sm:$0xff] %vm6922_vm3, %v4263_v27  ;;  %v2999_v47 = vsub.f32 %v4263_v27, %v4716_v18  ;;  %v2860_v10 = vpop.f32.mrb[15].mxu1  ;;  %v3048_v9 = vsel %vm6925_vm6, %v3020_v28, 0.0 }
 0x4da   :  { %v3046_v35 = vsel %vm6923_vm4, %v3019_v50, 0.0  ;;  %2884 = vst.msk [vmem:[%s6735_s4 + $0x70] sm:$0xff] %vm6924_vm5, %v2860_v10  ;;  %v2998_v3 = vsub.f32 %v2860_v10, %v4717_v62  ;;  %s3309_s4 = sshll.u32 %s4768_s27, 4  ;;  %s3310_s4 = int_to_ptr.vmem [resolvable:$true] %s3309_s4 }
 0x4db   :  { %v3047_v32 = vadd.f32 %v3046_v35, %v3045_v38  ;;  %v3022_v34 = vmul.f32 %v2999_v47, %v2999_v47  ;;  %s4718_s28 = scalar_lea.vmem %s3310_s4, 16  ;;  %s4722_s0 = scalar_lea.vmem %s3310_s4, 32 }
 0x4dc   :  { %v3021_v42 = vmul.f32 %v2998_v3, %v2998_v3  ;;  %p4719_p0 = scmp.ne.s32.totalorder %s3310_s4, %s4718_s28  ;;  %p4723_p1 = scmp.lt.s32.totalorder %s3310_s4, %s3310_s4 }
 0x4dd   :  { %v3049_v52 = vadd.f32 %v3048_v9, %v3047_v32  ;;  %v3052_v59 = vsel %vm6927_vm8, %v3022_v34, 0.0  ;;  %p4724_p2 = scmp.lt.s32.totalorder %s4722_s0, %s4718_s28 }
 0x4de   :  { %v3050_v45 = vsel %vm6926_vm7, %v3021_v42, 0.0 }
 0x4df   :  { %v3051_v41 = vadd.f32 %v3050_v45, %v3049_v52  ;;  %p4725_p3 = por %p4724_p2, %p4723_p1 }
 0x4e1   :  { %v3053_v25 = vadd.f32 %v3052_v59, %v3051_v41  ;;  %p4726_p4 = pnand %p4725_p3, %p4719_p0 }
 0x4e3   :  { %3054 = vadd.xlane.f32.xlu0 %v3053_v25 }
 0x4e4   :  { %4729 = shalt.err (!%p4726_p4)
}
 0x4e5   :  { %s4730_s30 = scalar_lea.hbm %s6739_s8, 16 }
 0x4e6   :  { %p4731_p5 = scmp.ne.s32.totalorder %s6739_s8, %s4730_s30  ;;  %p4734_p6 = scmp.lt.u32.totalorder %s4730_s30, %s6739_s8 }
 0x4e8   :  { %p4736_p7 = pnand %p4734_p6, %p4731_p5 }
 0x4ea   :  { %4739 = shalt.err (!%p4736_p7)
}
 0x4eb   :  { %3312 = dma.vmem_to_hbm [thread:$0]  %s3310_s4, 16, %s6739_s8, [#allocation5]   ;;  %vm3064_vm9 = vcmask 0  }
 0x4ec   :  { %s4769_s15 = smov [#allocation2]  }
 0x4ed   :  { %s3299_s16 = sshll.u32 %s4769_s15, 4  ;;  %s3300_s16 = int_to_ptr.vmem [resolvable:$true] %s3299_s16 }
 0x4ee   :  { %s4740_s17 = scalar_lea.vmem %s3300_s16, 16  ;;  %s4744_s18 = scalar_lea.vmem %s3300_s16, 32 }
 0x4ef   :  { %p4741_p8 = scmp.ne.s32.totalorder %s3300_s16, %s4740_s17  ;;  %p4745_p9 = scmp.lt.s32.totalorder %s3300_s16, %s3300_s16 }
 0x4f0   :  { %p4746_p10 = scmp.lt.s32.totalorder %s4744_s18, %s4740_s17 }
 0x4f2   :  { %p4747_p11 = por %p4746_p10, %p4745_p9 }
 0x4f4   :  { %p4748_p12 = pnand %p4747_p11, %p4741_p8 }
 0x570   :  { %v3055_v56 = vpop.xlane.xlu0 %3054 }
 0x571   :  { %v3056_v60 = vrot.slane %v3055_v56, 4 }
 0x573   :  { %v3057_v12 = vadd.f32 %v3056_v60, %v3055_v56 }
 0x575   :  { %v3058_v57 = vrot.slane %v3057_v12, 2 }
 0x577   :  { %v3059_v39 = vadd.f32 %v3058_v57, %v3057_v12 }
 0x579   :  { %v3060_v51 = vrot.slane %v3059_v39, 1 }
 0x57b   :  { %v3061_v36 = vadd.f32 %v3060_v51, %v3059_v39 }
 0x57d   :  { %4696 = vpush %v3061_v36 }
 0x5ae   :  { %s4697_s6 = spop %4696 }
 0x5af   :  { %v3063_v31 = vstv %s4697_s6 }
 0x5b0   :  { %3065 = vst.msk [vmem:[#allocation2] sm:$0x1] %vm3064_vm9, %v3063_v31 }
 0x5b1   :  { %4751 = shalt.err (!%p4748_p12)
}
 0x5b2   :  { %s4752_s5 = scalar_lea.hbm %s6738_s7, 16 }
 0x5b3   :  { %p4753_p13 = scmp.ne.s32.totalorder %s6738_s7, %s4752_s5  ;;  %p4756_p0 = scmp.lt.u32.totalorder %s4752_s5, %s6738_s7 }
 0x5b5   :  { %p4758_p1 = pnand %p4756_p0, %p4753_p13 }
 0x5b7   :  { %4761 = shalt.err (!%p4758_p1)
}
 0x5b8   :  { %3302 = dma.vmem_to_hbm [thread:$0]  %s3300_s16, 16, %s6738_s7, [#allocation3]  }
 0x5b9   :  { %4762 = dma.done.wait [#allocation3], 16  }
 0x5ba   :  { %4763 = vsyncadd [#allocation3], 4294967280 }
 0x5bb   :  { %4764 = dma.done.wait [#allocation5], 16  }
 0x5bc   :  { %4765 = vsyncadd [#allocation5], 4294967280 }
 0x5bd   :  { %3325 = vsyncpa [#allocation3], 1 }
 0x5be   :  { %3326 = vsyncpa [#allocation5], 1 }

// kernel: tpu_custom_call.1
= control target key start
LH: loop header
LB: loop body
LE: loop exit
PB: predicated region body
PF: predicated region fallthrough
CT: control target
= control target key end

     0   :  { %14 = vsyncpa [#allocation3], 0  ;;  %vm6798_vm0 = vcmask 261120   ;;  %s6731_s0 = inlined_call_operand.vmem [shape: f32[128,32], index: 0, kind: input, shape index: {}]   ;;  %s6732_s1 = inlined_call_operand.vmem [shape: f32[32,128], index: 1, kind: input, shape index: {}]   ;;  %s6733_s2 = inlined_call_operand.vmem [shape: f32[128,32], index: 2, kind: input, shape index: {}]   ;;  %s6734_s3 = inlined_call_operand.vmem [shape: f32[1,128], index: 3, kind: input, shape index: {}]   ;;  %s6735_s4 = inlined_call_operand.vmem [shape: f32[128,32], index: 4, kind: output, shape index: {0}]   ;;  %s6736_s5 = inlined_call_operand.vmem [shape: bf16[128,64], index: 5, kind: output, shape index: {1}]   ;;  %s6737_s6 = inlined_call_operand.vmem [shape: s32[128,1], index: 6, kind: output, shape index: {2}]   ;;  %s6738_s7 = inlined_call_operand.hbm [shape: f32[1,1], index: 7, kind: output, shape index: {3}]   ;;  %s6739_s8 = inlined_call_operand.hbm [shape: f32[1,128], index: 8, kind: output, shape index: {4}]  }
   0x1   :  { %v40_v0 = vld [vmem:[%s6732_s1] sm:$0xff]  ;;  %v41_v1 = vld [vmem:[%s6732_s1 + $0x8] sm:$0xff]  ;;  %v4824_v2 = vld [vmem:[%s6732_s1 + $0x10] sm:$0xff] }
   0x2   :  { %v101_v3 = vand.u32 4294901760, %v40_v0  ;;  %v104_v4 = vand.u32 4294901760, %v41_v1  ;;  %v4829_v5 = vld [vmem:[%s6732_s1 + $0x18] sm:$0xff]  ;;  %v107_v6 = vand.u32 4294901760, %v4824_v2  ;;  %v24_v7 = vld [vmem:[%s6731_s0] sm:$0xff]  ;;  %v25_v8 = vld [vmem:[%s6731_s0 + $0x8] sm:$0xff] }
   0x3   :  { %v110_v9 = vand.u32 4294901760, %v4829_v5  ;;  %v53_v10 = vsel %vm6798_vm0, %v24_v7, 0  ;;  %v56_v11 = vsel %vm6798_vm0, %v25_v8, 0  ;;  %v26_v12 = vld [vmem:[%s6731_s0 + $0x10] sm:$0xff]  ;;  %v27_v13 = vld [vmem:[%s6731_s0 + $0x18] sm:$0xff]  ;;  %v28_v18 = vld [vmem:[%s6731_s0 + $0x20] sm:$0xff] }
   0x4   :  { %v4847_v14 = vpack.c.bf16 %v104_v4, %v101_v3  ;;  %v4849_v15 = vand.u32 4294901760, %v53_v10  ;;  %v4851_v16 = vand.u32 4294901760, %v56_v11  ;;  %v4853_v17 = vsub.f32 %v40_v0, %v101_v3  ;;  %v29_v19 = vld [vmem:[%s6731_s0 + $0x28] sm:$0xff] }
   0x5   :  { %v4865_v20 = vpack.c.bf16 %v110_v9, %v107_v6  ;;  %v4867_v21 = vsub.f32 %v41_v1, %v104_v4  ;;  %v59_v22 = vsel %vm6798_vm0, %v26_v12, 0  ;;  %v62_v23 = vsel %vm6798_vm0, %v27_v13, 0 }
   0x6   :  { %4265 = vmatprep.subr.bf16.mxu0 %v4847_v14  ;;  %v4873_v24 = vsub.f32 %v53_v10, %v4849_v15  ;;  %v4876_v25 = vsub.f32 %v56_v11, %v4851_v16  ;;  %v332_v26 = vand.u32 4294901760, %v4853_v17  ;;  %v4879_v27 = vand.u32 4294901760, %v59_v22 }
   0x7   :  { %4267 = vmatpush3.bf16.msra.mxu0 %v4847_v14  ;;  %v339_v28 = vand.u32 4294901760, %v4867_v21  ;;  %v4883_v29 = vand.u32 4294901760, %v62_v23  ;;  %v65_v30 = vsel %vm6798_vm0, %v28_v18, 0  ;;  %v68_v31 = vsel %vm6798_vm0, %v29_v19, 0 }
   0x8   :  { %4269 = vmatprep.subr.bf16.mxu0 %v4865_v20  ;;  %v171_v32 = vand.u32 4294901760, %v4873_v24  ;;  %v181_v33 = vand.u32 4294901760, %v4876_v25  ;;  %v333_v34 = vsub.f32 %v4853_v17, %v332_v26  ;;  %v4894_v35 = vsub.f32 %v59_v22, %v4879_v27 }
   0x9   :  { %15 = vsyncpa [#allocation5], 0  ;;  %v340_v36 = vsub.f32 %v4867_v21, %v339_v28  ;;  %v4900_v37 = vsub.f32 %v62_v23, %v4883_v29  ;;  %v4902_v38 = vand.u32 4294901760, %v65_v30  ;;  %v4904_v39 = vand.u32 4294901760, %v68_v31  ;;  %v30_v40 = vld [vmem:[%s6731_s0 + $0x30] sm:$0xff]  ;;  %v31_v49 = vld [vmem:[%s6731_s0 + $0x38] sm:$0xff] }
   0xa   :  { %v172_v41 = vsub.f32 %v4873_v24, %v171_v32  ;;  %v182_v42 = vsub.f32 %v4876_v25, %v181_v33  ;;  %v334_v43 = vand.u32 4294901760, %v333_v34  ;;  %v191_v44 = vand.u32 4294901760, %v4894_v35  ;;  %v32_v50 = vld [vmem:[%s6731_s0 + $0x40] sm:$0xff]  ;;  %v33_v59 = vld [vmem:[%s6731_s0 + $0x48] sm:$0xff]  ;;  %v34_v12 = vld [vmem:[%s6731_s0 + $0x50] sm:$0xff]  ;;  %s4768_s27 = smov [#allocation4]  }
   0xb   :  { %4271 = vmatpush3.bf16.msra.mxu0 %v4865_v20  ;;  %v341_v45 = vand.u32 4294901760, %v340_v36  ;;  %v201_v46 = vand.u32 4294901760, %v4900_v37  ;;  %v4919_v47 = vsub.f32 %v65_v30, %v4902_v38  ;;  %v4922_v48 = vsub.f32 %v68_v31, %v4904_v39  ;;  %v35_v13 = vld [vmem:[%s6731_s0 + $0x58] sm:$0xff] }
   0xc   :  { %v173_v51 = vand.u32 4294901760, %v172_v41  ;;  %v183_v52 = vand.u32 4294901760, %v182_v42  ;;  %v192_v53 = vsub.f32 %v4894_v35, %v191_v44  ;;  %v71_v54 = vsel %vm6798_vm0, %v30_v40, 0 }
   0xd   :  { %v4272_v55 = vpack.c.bf16 %v341_v45, %v334_v43  ;;  %v202_v56 = vsub.f32 %v4900_v37, %v201_v46  ;;  %v211_v57 = vand.u32 4294901760, %v4919_v47  ;;  %v221_v58 = vand.u32 4294901760, %v4922_v48 }
   0xe   :  { %3744 = vmatprep.mubr.f32.mxu0 %v173_v51  ;;  %v193_v60 = vand.u32 4294901760, %v192_v53  ;;  %v4942_v61 = vand.u32 4294901760, %v71_v54  ;;  %v74_v62 = vsel %vm6798_vm0, %v31_v49, 0  ;;  %v77_v63 = vsel %vm6798_vm0, %v32_v50, 0  ;;  %v37_v53 = vld [vmem:[%s6731_s0 + $0x68] sm:$0xff] }
   0xf   :  { %3745 = vmatmul.mubr.f32.vlgmr.msra.gmra.mrb[0].mxu0 %v183_v52  ;;  %4273 = vmatprep.subr.bf16.mxu0 %v4272_v55  ;;  %v203_v0 = vand.u32 4294901760, %v202_v56  ;;  %v212_v1 = vsub.f32 %v4919_v47, %v211_v57  ;;  %v222_v3 = vsub.f32 %v4922_v48, %v221_v58  ;;  %v4952_v4 = vand.u32 4294901760, %v74_v62  ;;  %v36_v52 = vld [vmem:[%s6731_s0 + $0x60] sm:$0xff] }
  0x10   :  { %4275 = vmatpush3.bf16.msra.mxu0 %v4272_v55  ;;  %3747 = vmatprep.mubr.f32.mxu0 %v193_v60  ;;  %v4955_v7 = vsub.f32 %v71_v54, %v4942_v61  ;;  %v4957_v8 = vand.u32 4294901760, %v77_v63  ;;  %v80_v10 = vsel %vm6798_vm0, %v33_v59, 0  ;;  %v4963_v11 = vsub.f32 %v4824_v2, %v107_v6 }
  0x11   :  { %v213_v18 = vand.u32 4294901760, %v212_v1  ;;  %v223_v19 = vand.u32 4294901760, %v222_v3  ;;  %v4972_v22 = vsub.f32 %v74_v62, %v4952_v4  ;;  %v4974_v23 = vand.u32 4294901760, %v80_v10  ;;  %v38_v1 = vld [vmem:[%s6731_s0 + $0x70] sm:$0xff]  ;;  %v39_v3 = vld [vmem:[%s6731_s0 + $0x78] sm:$0xff] }
  0x12   :  { %v231_v30 = vand.u32 4294901760, %v4955_v7  ;;  %v4978_v2 = vsub.f32 %v77_v63, %v4957_v8  ;;  %v346_v6 = vand.u32 4294901760, %v4963_v11  ;;  %v4984_v31 = vsub.f32 %v4829_v5, %v110_v9 }
  0x13   :  { %3748 = vmatmul.mubr.f32.gmra.mrb[2].mxu0 %v203_v0  ;;  %v241_v34 = vand.u32 4294901760, %v4972_v22  ;;  %v4988_v36 = vsub.f32 %v80_v10, %v4974_v23  ;;  %v83_v40 = vsel %vm6798_vm0, %v34_v12, 0  ;;  %v86_v41 = vsel %vm6798_vm0, %v35_v13, 0 }
  0x14   :  { %3750 = vmatprep.mubr.f32.mxu0 %v213_v18  ;;  %v232_v42 = vsub.f32 %v4955_v7, %v231_v30  ;;  %v251_v43 = vand.u32 4294901760, %v4978_v2  ;;  %v347_v5 = vsub.f32 %v4963_v11, %v346_v6  ;;  %v353_v9 = vand.u32 4294901760, %v4984_v31 }
  0x15   :  { %v242_v45 = vsub.f32 %v4972_v22, %v241_v34  ;;  %v6740_v49 = vand.u32 4294901760, %v4988_v36  ;;  %v5002_v50 = vand.u32 4294901760, %v83_v40  ;;  %v5004_v51 = vand.u32 4294901760, %v86_v41 }
  0x16   :  { %v233_v54 = vand.u32 4294901760, %v232_v42  ;;  %v252_v55 = vsub.f32 %v4978_v2, %v251_v43  ;;  %v348_v56 = vand.u32 4294901760, %v347_v5  ;;  %v354_v59 = vsub.f32 %v4984_v31, %v353_v9 }
  0x17   :  { %3751 = vmatmul.mubr.f32.gmra.mrb[4].mxu0 %v223_v19  ;;  %v243_v60 = vand.u32 4294901760, %v242_v45  ;;  %v262_v62 = vsub.f32 %v4988_v36, %v6740_v49  ;;  %v5020_v63 = vsub.f32 %v83_v40, %v5002_v50  ;;  %v5023_v0 = vsub.f32 %v86_v41, %v5004_v51 }
  0x18   :  { %3753 = vmatprep.mubr.f32.mxu0 %v233_v54  ;;  %v253_v10 = vand.u32 4294901760, %v252_v55  ;;  %v355_v12 = vand.u32 4294901760, %v354_v59  ;;  %v89_v13 = vsel %vm6798_vm0, %v36_v52, 0  ;;  %v92_v18 = vsel %vm6798_vm0, %v37_v53, 0 }
  0x19   :  { %v263_v19 = vand.u32 4294901760, %v262_v62  ;;  %v6742_v40 = vand.u32 4294901760, %v5020_v63  ;;  %v6741_v41 = vand.u32 4294901760, %v5023_v0  ;;  %v5035_v42 = vand.u32 4294901760, %v89_v13 }
  0x1a   :  { %v4276_v5 = vpack.c.bf16 %v355_v12, %v348_v56  ;;  %v5037_v45 = vand.u32 4294901760, %v92_v18  ;;  %v95_v49 = vsel %vm6798_vm0, %v38_v1, 0  ;;  %v98_v54 = vsel %vm6798_vm0, %v39_v3, 0 }
  0x1b   :  { %3754 = vmatmul.mubr.f32.gmra.mrb[6].mxu0 %v243_v60  ;;  %v272_v52 = vsub.f32 %v5020_v63, %v6742_v40  ;;  %v282_v53 = vsub.f32 %v5023_v0, %v6741_v41  ;;  %v5048_v55 = vsub.f32 %v89_v13, %v5035_v42  ;;  %v5050_v59 = vand.u32 4294901760, %v95_v49 }
  0x1c   :  { %3756 = vmatprep.mubr.f32.mxu0 %v253_v10  ;;  %4277 = vmatprep.subr.bf16.mxu0 %v4276_v5  ;;  %v5053_v56 = vsub.f32 %v92_v18, %v5037_v45  ;;  %v5055_v62 = vand.u32 4294901760, %v98_v54  ;;  %v4280_v60 = vpack.c.bf16 %v4867_v21, %v4853_v17  ;;  %v4296_v18 = vpack.c.bf16 %v339_v28, %v332_v26 }
  0x1d   :  { %4279 = vmatpush3.bf16.msra.mxu0 %v4276_v5  ;;  %v273_v1 = vand.u32 4294901760, %v272_v52  ;;  %v291_v3 = vand.u32 4294901760, %v5048_v55  ;;  %v5061_v12 = vsub.f32 %v95_v49, %v5050_v59  ;;  %v5071_v41 = vpack.c.bf16 %v353_v9, %v346_v6 }
  0x1e   :  { %v301_v13 = vand.u32 4294901760, %v5053_v56  ;;  %v5065_v10 = vsub.f32 %v98_v54, %v5055_v62  ;;  %4281 = vmatprep.subr.bf16.mxu0 %v4280_v60  ;;  %v283_v5 = vand.u32 4294901760, %v282_v53 }
  0x1f   :  { %3757 = vmatmul.mubr.f32.gmra.mrb[8].mxu0 %v263_v19  ;;  %v292_v49 = vsub.f32 %v5048_v55, %v291_v3  ;;  %v311_v52 = vand.u32 4294901760, %v5061_v12  ;;  %v4284_v19 = vpack.c.bf16 %v4984_v31, %v4963_v11 }
  0x20   :  { %3759 = vmatprep.mubr.f32.mxu0 %v273_v1  ;;  %v302_v54 = vsub.f32 %v5053_v56, %v301_v13  ;;  %v321_v17 = vand.u32 4294901760, %v5065_v10 }
  0x21   :  { %v293_v40 = vand.u32 4294901760, %v292_v49  ;;  %v312_v21 = vsub.f32 %v5061_v12, %v311_v52 }
  0x22   :  { %v303_v26 = vand.u32 4294901760, %v302_v54  ;;  %v322_v28 = vsub.f32 %v5065_v10, %v321_v17 }
  0x23   :  { %3760 = vmatmul.mubr.f32.gmra.mrb[10].mxu0 %v283_v5  ;;  %v313_v6 = vand.u32 4294901760, %v312_v21 }
  0x24   :  { %3762 = vmatprep.mubr.f32.mxu0 %v293_v40  ;;  %v323_v9 = vand.u32 4294901760, %v322_v28 }
  0x27   :  { %3763 = vmatmul.mubr.f32.gmra.mrb[12].mxu0 %v303_v26 }
  0x28   :  { %3765 = vmatprep.mubr.f32.mxu0 %v313_v6 }
  0x2b   :  { %3766 = vmatmul.mubr.f32.gmra.mrb[14].mxu0 %v323_v9 }
  0x2c   :  { %3776 = vmatprep.mubr.f32.mxu0 %v4849_v15 }
  0x2f   :  { %3777 = vmatmul.mubr.f32.vlgmr.msra.gmra.mrb[0].mxu0 %v4851_v16 }
  0x30   :  { %4283 = vmatpush3.bf16.msra.mxu0 %v4280_v60  ;;  %3779 = vmatprep.mubr.f32.mxu0 %v4879_v27 }
  0x31   :  { %4285 = vmatprep.subr.bf16.mxu0 %v4284_v19 }
  0x33   :  { %3780 = vmatmul.mubr.f32.gmra.mrb[2].mxu0 %v4883_v29 }
  0x34   :  { %3782 = vmatprep.mubr.f32.mxu0 %v4902_v38  ;;  %4287 = vmatpush3.bf16.msra.mxu0 %v4284_v19 }
  0x35   :  { %4289 = vmatprep.subr.bf16.mxu0 %v4847_v14 }
  0x37   :  { %3783 = vmatmul.mubr.f32.gmra.mrb[4].mxu0 %v4904_v39 }
  0x38   :  { %3785 = vmatprep.mubr.f32.mxu0 %v4942_v61 }
  0x3b   :  { %3786 = vmatmul.mubr.f32.gmra.mrb[6].mxu0 %v4952_v4 }
  0x3c   :  { %3788 = vmatprep.mubr.f32.mxu0 %v4957_v8 }
  0x3f   :  { %3789 = vmatmul.mubr.f32.gmra.mrb[8].mxu0 %v4974_v23 }
  0x40   :  { %3791 = vmatprep.mubr.f32.mxu0 %v5002_v50 }
  0x43   :  { %3792 = vmatmul.mubr.f32.gmra.mrb[10].mxu0 %v5004_v51 }
  0x44   :  { %3794 = vmatprep.mubr.f32.mxu0 %v5035_v42 }
  0x47   :  { %3795 = vmatmul.mubr.f32.gmra.mrb[12].mxu0 %v5037_v45 }
  0x48   :  { %3797 = vmatprep.mubr.f32.mxu0 %v5050_v59 }
  0x4b   :  { %3798 = vmatmul.mubr.f32.gmra.mrb[14].mxu0 %v5055_v62 }
  0x4c   :  { %3808 = vmatprep.mubr.f32.mxu0 %v4873_v24  ;;  %v6814_v24 = vand.u32 4294901760, %v4988_v36 }
  0x4f   :  { %3809 = vmatmul.mubr.f32.vlgmr.msra.gmra.mrb[0].mxu0 %v4876_v25  ;;  %v6815_v25 = vand.u32 4294901760, %v5020_v63 }
  0x50   :  { %4291 = vmatpush3.bf16.msra.mxu0 %v4847_v14  ;;  %3811 = vmatprep.mubr.f32.mxu0 %v4894_v35 }
  0x51   :  { %4293 = vmatprep.subr.bf16.mxu0 %v4865_v20 }
  0x53   :  { %3812 = vmatmul.mubr.f32.gmra.mrb[2].mxu0 %v4900_v37 }
  0x54   :  { %3814 = vmatprep.mubr.f32.mxu0 %v4919_v47  ;;  %4295 = vmatpush3.bf16.msra.mxu0 %v4865_v20 }
  0x55   :  { %4297 = vmatprep.subr.bf16.mxu0 %v4296_v18 }
  0x57   :  { %3815 = vmatmul.mubr.f32.gmra.mrb[4].mxu0 %v4922_v48 }
  0x58   :  { %3817 = vmatprep.mubr.f32.mxu0 %v4955_v7 }
  0x5b   :  { %3818 = vmatmul.mubr.f32.gmra.mrb[6].mxu0 %v4972_v22 }
  0x5c   :  { %3820 = vmatprep.mubr.f32.mxu0 %v4978_v2 }
  0x5f   :  { %3821 = vmatmul.mubr.f32.gmra.mrb[8].mxu0 %v4988_v36 }
  0x60   :  { %3823 = vmatprep.mubr.f32.mxu0 %v5020_v63 }
  0x63   :  { %3824 = vmatmul.mubr.f32.gmra.mrb[10].mxu0 %v5023_v0 }
  0x64   :  { %3826 = vmatprep.mubr.f32.mxu0 %v5048_v55 }
  0x67   :  { %3827 = vmatmul.mubr.f32.gmra.mrb[12].mxu0 %v5053_v56 }
  0x68   :  { %3829 = vmatprep.mubr.f32.mxu0 %v5061_v12 }
  0x6b   :  { %3830 = vmatmul.mubr.f32.gmra.mrb[14].mxu0 %v5065_v10 }
  0x6c   :  { %3840 = vmatprep.mubr.f32.mxu0 %v171_v32  ;;  %v6816_v32 = vand.u32 4294901760, %v5023_v0  ;;  %v1262_v0 = vlaneseq }
  0x6e   :  { %v5231_v40 = vand.u32 127, %v1262_v0 }
  0x6f   :  { %3841 = vmatmul.mubr.f32.vlgmr.msra.gmra.mrb[0].mxu0 %v181_v33 }
  0x70   :  { %4299 = vmatpush3.bf16.msra.mxu0 %v4296_v18  ;;  %3843 = vmatprep.mubr.f32.mxu0 %v191_v44 }
  0x71   :  { %4301 = vmatprep.subr.bf16.mxu0 %v5071_v41 }
  0x73   :  { %3844 = vmatmul.mubr.f32.gmra.mrb[2].mxu0 %v201_v46 }
  0x74   :  { %3846 = vmatprep.mubr.f32.mxu0 %v211_v57  ;;  %4303 = vmatpush3.bf16.msra.mxu0 %v5071_v41 }
  0x75   :  { %4305 = vmatprep.subr.bf16.mxu0 %v4847_v14 }
  0x77   :  { %3847 = vmatmul.mubr.f32.gmra.mrb[4].mxu0 %v221_v58 }
  0x78   :  { %3849 = vmatprep.mubr.f32.mxu0 %v231_v30 }
  0x7b   :  { %3850 = vmatmul.mubr.f32.gmra.mrb[6].mxu0 %v241_v34 }
  0x7c   :  { %3852 = vmatprep.mubr.f32.mxu0 %v251_v43 }
  0x7f   :  { %3853 = vmatmul.mubr.f32.gmra.mrb[8].mxu0 %v6814_v24 }
  0x80   :  { %3855 = vmatprep.mubr.f32.mxu0 %v6815_v25 }
  0x83   :  { %3856 = vmatmul.mubr.f32.gmra.mrb[10].mxu0 %v6816_v32 }
  0x84   :  { %3858 = vmatprep.mubr.f32.mxu0 %v291_v3 }
  0x87   :  { %3859 = vmatmul.mubr.f32.gmra.mrb[12].mxu0 %v301_v13 }
  0x88   :  { %3861 = vmatprep.mubr.f32.mxu0 %v311_v52 }
  0x8b   :  { %3862 = vmatmul.mubr.f32.gmra.mrb[14].mxu0 %v321_v17 }
  0x8c   :  { %3872 = vmatprep.mubr.f32.mxu0 %v4849_v15 }
  0x8f   :  { %3873 = vmatmul.mubr.f32.vlgmr.msra.gmra.mrb[0].mxu0 %v4851_v16 }
  0x90   :  { %4307 = vmatpush3.bf16.msra.mxu0 %v4847_v14  ;;  %3875 = vmatprep.mubr.f32.mxu0 %v4879_v27  ;;  %v3327_v14 = vld [vmem:[%s6734_s3] ss:$0 sm:$0xff] }
  0x91   :  { %4309 = vmatprep.subr.bf16.mxu0 %v4865_v20 }
  0x93   :  { %3876 = vmatmul.mubr.f32.gmra.mrb[2].mxu0 %v4883_v29 }
  0x94   :  { %3878 = vmatprep.mubr.f32.mxu0 %v4902_v38  ;;  %4311 = vmatpush3.bf16.msra.mxu0 %v4865_v20 }
  0x97   :  { %3879 = vmatmul.mubr.f32.gmra.mrb[4].mxu0 %v4904_v39 }
  0x98   :  { %3881 = vmatprep.mubr.f32.mxu0 %v4942_v61 }
  0x9b   :  { %3882 = vmatmul.mubr.f32.gmra.mrb[6].mxu0 %v4952_v4 }
  0x9c   :  { %3884 = vmatprep.mubr.f32.mxu0 %v4957_v8 }
  0x9f   :  { %3885 = vmatmul.mubr.f32.gmra.mrb[8].mxu0 %v4974_v23 }
  0xa0   :  { %3887 = vmatprep.mubr.f32.mxu0 %v5002_v50 }
  0xa3   :  { %3888 = vmatmul.mubr.f32.gmra.mrb[10].mxu0 %v5004_v51 }
  0xa4   :  { %3890 = vmatprep.mubr.f32.mxu0 %v5035_v42 }
  0xa7   :  { %3891 = vmatmul.mubr.f32.gmra.mrb[12].mxu0 %v5037_v45 }
  0xa8   :  { %3893 = vmatprep.mubr.f32.mxu0 %v5050_v59 }
  0xab   :  { %3894 = vmatmul.mubr.f32.gmra.mrb[14].mxu0 %v5055_v62 }
  0xac   :  { %3904 = vmatprep.mubr.f32.mxu0 %v4849_v15 }
  0xaf   :  { %3905 = vmatmul.mubr.f32.vlgmr.msra.gmra.mrb[0].mxu0 %v4851_v16 }
  0xb0   :  { %3907 = vmatprep.mubr.f32.mxu0 %v4879_v27 }
  0xb3   :  { %3908 = vmatmul.mubr.f32.gmra.mrb[2].mxu0 %v4883_v29 }
  0xb4   :  { %3910 = vmatprep.mubr.f32.mxu0 %v4902_v38 }
  0xb7   :  { %3911 = vmatmul.mubr.f32.gmra.mrb[4].mxu0 %v4904_v39 }
  0xb8   :  { %3913 = vmatprep.mubr.f32.mxu0 %v4942_v61 }
  0xbb   :  { %3914 = vmatmul.mubr.f32.gmra.mrb[6].mxu0 %v4952_v4 }
  0xbc   :  { %3916 = vmatprep.mubr.f32.mxu0 %v4957_v8 }
  0xbf   :  { %3917 = vmatmul.mubr.f32.gmra.mrb[8].mxu0 %v4974_v23 }
  0xc0   :  { %3919 = vmatprep.mubr.f32.mxu0 %v5002_v50 }
  0xc3   :  { %3920 = vmatmul.mubr.f32.gmra.mrb[10].mxu0 %v5004_v51 }
  0xc4   :  { %3922 = vmatprep.mubr.f32.mxu0 %v5035_v42 }
  0xc7   :  { %3923 = vmatmul.mubr.f32.gmra.mrb[12].mxu0 %v5037_v45 }
  0xc8   :  { %3925 = vmatprep.mubr.f32.mxu0 %v5050_v59 }
  0xcb   :  { %3926 = vmatmul.mubr.f32.gmra.mrb[14].mxu0 %v5055_v62 }
 0x182   :  { %v3906_v15 = vpop.f32.mrb[0].mxu0 }
 0x183   :  { %v1136_v16 = vpop.f32.mrb[1].mxu0  ;;  %v4520_v33 = vadd.f32 %v3906_v15, %v3327_v14 }
 0x184   :  { %v4521_v20 = vadd.f32 %v3327_v14, %v1136_v16 }
 0x186   :  { %v3909_v27 = vpop.f32.mrb[2].mxu0  ;;  %1230 = vmin.xlane.f32.xlu0 %v4521_v20 }
 0x187   :  { %v1148_v29 = vpop.f32.mrb[3].mxu0  ;;  %v4522_v39 = vadd.f32 %v3909_v27, %v3327_v14 }
 0x188   :  { %v4523_v35 = vadd.f32 %v3327_v14, %v1148_v29 }
 0x18a   :  { %v3912_v37 = vpop.f32.mrb[4].mxu0  ;;  %1234 = vmin.xlane.f32.xlu1 %v4523_v35  ;;  %1232 = vmin.xlane.f32.xlu0 %v4520_v33 }
 0x18b   :  { %v1160_v38 = vpop.f32.mrb[5].mxu0  ;;  %v5198_v48 = vadd.f32 %v3912_v37, %v3327_v14 }
 0x18c   :  { %v4525_v44 = vadd.f32 %v3327_v14, %v1160_v38 }
 0x18e   :  { %v3915_v46 = vpop.f32.mrb[6].mxu0  ;;  %1236 = vmin.xlane.f32.xlu1 %v4522_v39  ;;  %1238 = vmin.xlane.f32.xlu0 %v4525_v44 }
 0x18f   :  { %v1172_v47 = vpop.f32.mrb[7].mxu0  ;;  %v5204_v4 = vadd.f32 %v3915_v46, %v3327_v14 }
 0x190   :  { %v5200_v57 = vadd.f32 %v3327_v14, %v1172_v47 }
 0x192   :  { %v3918_v58 = vpop.f32.mrb[8].mxu0  ;;  %1240 = vmin.xlane.f32.xlu1 %v5198_v48  ;;  %1242 = vmin.xlane.f32.xlu0 %v5200_v57 }
 0x193   :  { %v1184_v61 = vpop.f32.mrb[9].mxu0  ;;  %v5210_v22 = vadd.f32 %v3918_v58, %v3327_v14 }
 0x194   :  { %v5206_v7 = vadd.f32 %v3327_v14, %v1184_v61 }
 0x196   :  { %v3921_v8 = vpop.f32.mrb[10].mxu0  ;;  %1244 = vmin.xlane.f32.xlu1 %v5204_v4  ;;  %1246 = vmin.xlane.f32.xlu0 %v5206_v7 }
 0x197   :  { %v1196_v11 = vpop.f32.mrb[11].mxu0  ;;  %v5216_v31 = vadd.f32 %v3921_v8, %v3327_v14 }
 0x198   :  { %v5212_v23 = vadd.f32 %v3327_v14, %v1196_v11 }
 0x19a   :  { %v3924_v30 = vpop.f32.mrb[12].mxu0  ;;  %1248 = vmin.xlane.f32.xlu1 %v5210_v22  ;;  %1250 = vmin.xlane.f32.xlu0 %v5212_v23 }
 0x19b   :  { %v1208_v2 = vpop.f32.mrb[13].mxu0  ;;  %v5222_v50 = vadd.f32 %v3924_v30, %v3327_v14 }
 0x19c   :  { %v5218_v34 = vadd.f32 %v3327_v14, %v1208_v2 }
 0x19e   :  { %v3927_v36 = vpop.f32.mrb[14].mxu0  ;;  %1252 = vmin.xlane.f32.xlu1 %v5216_v31  ;;  %1254 = vmin.xlane.f32.xlu0 %v5218_v34 }
 0x19f   :  { %v1220_v43 = vpop.f32.mrb[15].mxu0  ;;  %v5228_v63 = vadd.f32 %v3927_v36, %v3327_v14 }
 0x1a0   :  { %v5224_v51 = vadd.f32 %v3327_v14, %v1220_v43 }
 0x1a2   :  { %1256 = vmin.xlane.f32.xlu1 %v5222_v50  ;;  %1258 = vmin.xlane.f32.xlu0 %v5224_v51 }
 0x1a6   :  { %1260 = vmin.xlane.f32.xlu1 %v5228_v63 }
 0x213   :  { %v1231_v41 = vpop.xlane.xlu0 %1230 }
 0x214   :  { %vm1264_vm1 = vcmp.eq.f32.partialorder %v4521_v20, %v1231_v41 }
 0x215   :  { %v5234_v42 = vsel %vm1264_vm1, %v5231_v40, 128 }
 0x216   :  { %v1297_v45 = vshra.s32 %v5234_v42, 16 }
 0x217   :  { %v1235_v53 = vpop.xlane.xlu1 %1234  ;;  %v1233_v55 = vpop.xlane.xlu0 %1232 }
 0x218   :  { %vm1266_vm2 = vcmp.eq.f32.partialorder %v4523_v35, %v1235_v53  ;;  %vm1265_vm3 = vcmp.eq.f32.partialorder %v4520_v33, %v1233_v55  ;;  %v5237_v59 = vcvt.s32.f32 %v1297_v45  ;;  %v5364_v53 = vld [vmem:[%s6733_s2 + $0x8] sm:$0xff]  ;;  %v5369_v55 = vld [vmem:[%s6733_s2 + $0x10] sm:$0xff] }
 0x219   :  { %v5240_v56 = vsel %vm1266_vm2, %v5231_v40, 128  ;;  %v5243_v62 = vsel %vm1265_vm3, %v5231_v40, 128 }
 0x21a   :  { %1300 = vmin.xlane.f32.xlu0 %v5237_v59  ;;  %v1325_v60 = vshra.s32 %v5240_v56, 16  ;;  %v1311_v1 = vshra.s32 %v5243_v62, 16 }
 0x21b   :  { %v1237_v3 = vpop.xlane.xlu1 %1236  ;;  %v1239_v12 = vpop.xlane.xlu0 %1238 }
 0x21c   :  { %vm1267_vm4 = vcmp.eq.f32.partialorder %v4522_v39, %v1237_v3  ;;  %vm1268_vm5 = vcmp.eq.f32.partialorder %v4525_v44, %v1239_v12  ;;  %v5248_v13 = vcvt.s32.f32 %v1325_v60  ;;  %v5250_v10 = vcvt.s32.f32 %v1311_v1  ;;  %v5376_v3 = vld [vmem:[%s6733_s2 + $0x18] sm:$0xff] }
 0x21d   :  { %v5253_v18 = vsel %vm1267_vm4, %v5231_v40, 128  ;;  %v5256_v5 = vsel %vm1268_vm5, %v5231_v40, 128  ;;  %v1588_v1 = vand.u32 4294901760, %v5364_v53  ;;  %v1591_v12 = vand.u32 4294901760, %v5369_v55 }
 0x21e   :  { %1328 = vmin.xlane.f32.xlu0 %v5248_v13  ;;  %1314 = vmin.xlane.f32.xlu1 %v5250_v10  ;;  %v1339_v49 = vshra.s32 %v5253_v18, 16  ;;  %v1353_v52 = vshra.s32 %v5256_v5, 16 }
 0x21f   :  { %v1241_v54 = vpop.xlane.xlu1 %1240  ;;  %v1243_v17 = vpop.xlane.xlu0 %1242 }
 0x220   :  { %vm1269_vm6 = vcmp.eq.f32.partialorder %v5198_v48, %v1241_v54  ;;  %vm1270_vm7 = vcmp.eq.f32.partialorder %v5200_v57, %v1243_v17  ;;  %v5264_v21 = vcvt.s32.f32 %v1339_v49  ;;  %v5266_v26 = vcvt.s32.f32 %v1353_v52  ;;  %v5382_v49 = vld [vmem:[%s6733_s2 + $0x20] sm:$0xff]  ;;  %v5387_v52 = vld [vmem:[%s6733_s2 + $0x28] sm:$0xff] }
 0x221   :  { %v5269_v28 = vsel %vm1269_vm6, %v5231_v40, 128  ;;  %v5272_v6 = vsel %vm1270_vm7, %v5231_v40, 128  ;;  %v6751_v54 = vand.u32 4294901760, %v5376_v3 }
 0x222   :  { %1342 = vmin.xlane.f32.xlu1 %v5264_v21  ;;  %1356 = vmin.xlane.f32.xlu0 %v5266_v26  ;;  %v1367_v9 = vshra.s32 %v5269_v28, 16  ;;  %v1381_v19 = vshra.s32 %v5272_v6, 16 }
 0x223   :  { %v1245_v24 = vpop.xlane.xlu1 %1244  ;;  %v1247_v25 = vpop.xlane.xlu0 %1246 }
 0x224   :  { %vm1271_vm8 = vcmp.eq.f32.partialorder %v5204_v4, %v1245_v24  ;;  %vm1272_vm9 = vcmp.eq.f32.partialorder %v5206_v7, %v1247_v25  ;;  %v5280_v32 = vcvt.s32.f32 %v1367_v9  ;;  %v5282_v14 = vcvt.s32.f32 %v1381_v19  ;;  %v5407_v25 = vld [vmem:[%s6733_s2 + $0x30] sm:$0xff] }
 0x225   :  { %v5285_v15 = vsel %vm1271_vm8, %v5231_v40, 128  ;;  %v5288_v16 = vsel %vm1272_vm9, %v5231_v40, 128  ;;  %v6750_v9 = vand.u32 4294901760, %v5382_v49  ;;  %v6749_v19 = vand.u32 4294901760, %v5387_v52 }
 0x226   :  { %1370 = vmin.xlane.f32.xlu1 %v5280_v32  ;;  %1384 = vmin.xlane.f32.xlu0 %v5282_v14  ;;  %v1395_v20 = vshra.s32 %v5285_v15, 16  ;;  %v1409_v27 = vshra.s32 %v5288_v16, 16  ;;  %v5402_v24 = vpack.c.bf16 %v6751_v54, %v1591_v12 }
 0x227   :  { %v1249_v29 = vpop.xlane.xlu1 %1248  ;;  %v1251_v33 = vpop.xlane.xlu0 %1250 }
 0x228   :  { %vm1273_vm10 = vcmp.eq.f32.partialorder %v5210_v22, %v1249_v29  ;;  %vm1274_vm11 = vcmp.eq.f32.partialorder %v5212_v23, %v1251_v33  ;;  %v5296_v35 = vcvt.s32.f32 %v1395_v20  ;;  %v5298_v37 = vcvt.s32.f32 %v1409_v27  ;;  %6817 = vst [vmem:[#allocation8_spill] sm:$0xff] %v5402_v24  ;;  %v5412_v20 = vld [vmem:[%s6733_s2 + $0x38] sm:$0xff] }
 0x229   :  { %v5301_v38 = vsel %vm1273_vm10, %v5231_v40, 128  ;;  %v5304_v39 = vsel %vm1274_vm11, %v5231_v40, 128  ;;  %v5423_v27 = vpack.c.bf16 %v6749_v19, %v6750_v9  ;;  %v6748_v29 = vand.u32 4294901760, %v5407_v25 }
 0x22a   :  { %1398 = vmin.xlane.f32.xlu1 %v5296_v35  ;;  %1412 = vmin.xlane.f32.xlu0 %v5298_v37  ;;  %v1423_v44 = vshra.s32 %v5301_v38, 16  ;;  %v1437_v46 = vshra.s32 %v5304_v39, 16  ;;  %v6747_v33 = vand.u32 4294901760, %v5412_v20  ;;  %v1352_v19 = vand.u32 65535, %v5256_v5 }
 0x22b   :  { %v1253_v47 = vpop.xlane.xlu1 %1252  ;;  %v1255_v48 = vpop.xlane.xlu0 %1254  ;;  %6818 = vst [vmem:[#allocation9_spill] sm:$0xff] %v5423_v27  ;;  %v1380_v5 = vand.u32 65535, %v5272_v6  ;;  %v1408_v6 = vand.u32 65535, %v5288_v16  ;;  %v5533_v16 = vld [vmem:[%s6733_s2 + $0x68] sm:$0xff] }
 0x22c   :  { %vm1275_vm12 = vcmp.eq.f32.partialorder %v5216_v31, %v1253_v47  ;;  %vm1276_vm13 = vcmp.eq.f32.partialorder %v5218_v34, %v1255_v48  ;;  %v5312_v57 = vcvt.s32.f32 %v1423_v44  ;;  %v5314_v58 = vcvt.s32.f32 %v1437_v46  ;;  %v5431_v44 = vld [vmem:[%s6733_s2 + $0x40] sm:$0xff]  ;;  %v5436_v46 = vld [vmem:[%s6733_s2 + $0x48] sm:$0xff] }
 0x22d   :  { %v5317_v61 = vsel %vm1275_vm12, %v5231_v40, 128  ;;  %v5320_v4 = vsel %vm1276_vm13, %v5231_v40, 128  ;;  %v5445_v47 = vpack.c.bf16 %v6747_v33, %v6748_v29  ;;  %v6746_v48 = vand.u32 4294901760, %v5431_v44 }
 0x22e   :  { %1426 = vmin.xlane.f32.xlu1 %v5312_v57  ;;  %1440 = vmin.xlane.f32.xlu0 %v5314_v58  ;;  %v1451_v7 = vshra.s32 %v5317_v61, 16  ;;  %v1465_v8 = vshra.s32 %v5320_v4, 16  ;;  %v1338_v29 = vand.u32 65535, %v5253_v18  ;;  %v1366_v18 = vand.u32 65535, %v5269_v28 }
 0x22f   :  { %v1257_v11 = vpop.xlane.xlu1 %1256  ;;  %v1259_v22 = vpop.xlane.xlu0 %1258  ;;  %6819 = vst [vmem:[#allocation10_spill] sm:$0xff] %v5445_v47  ;;  %v1394_v28 = vand.u32 65535, %v5285_v15  ;;  %v5528_v15 = vld [vmem:[%s6733_s2 + $0x60] sm:$0xff] }
 0x230   :  { %vm1277_vm14 = vcmp.eq.f32.partialorder %v5222_v50, %v1257_v11  ;;  %vm1278_vm15 = vcmp.eq.f32.partialorder %v5224_v51, %v1259_v22  ;;  %v5328_v23 = vcvt.s32.f32 %v1451_v7  ;;  %v5330_v30 = vcvt.s32.f32 %v1465_v8  ;;  %v5453_v8 = vld [vmem:[%s6733_s2 + $0x50] sm:$0xff]  ;;  %v5458_v11 = vld [vmem:[%s6733_s2 + $0x58] sm:$0xff] }
 0x231   :  { %v5333_v2 = vsel %vm1277_vm14, %v5231_v40, 128  ;;  %v5336_v31 = vsel %vm1278_vm15, %v5231_v40, 128  ;;  %v6743_v7 = vand.u32 4294901760, %v5436_v46 }
 0x232   :  { %1454 = vmin.xlane.f32.xlu1 %v5328_v23  ;;  %1468 = vmin.xlane.f32.xlu0 %v5330_v30  ;;  %v1479_v34 = vshra.s32 %v5333_v2, 16  ;;  %v1493_v36 = vshra.s32 %v5336_v31, 16 }
 0x233   :  { %v1261_v43 = vpop.xlane.xlu1 %1260  ;;  %v5467_v22 = vpack.c.bf16 %v6743_v7, %v6746_v48  ;;  %v1324_v7 = vand.u32 65535, %v5240_v56 }
 0x234   :  { %vm1279_vm1 = vcmp.eq.f32.partialorder %v5228_v63, %v1261_v43  ;;  %v5343_v50 = vcvt.s32.f32 %v1479_v34  ;;  %v5345_v51 = vcvt.s32.f32 %v1493_v36  ;;  %v5359_v63 = vld [vmem:[%s6733_s2] sm:$0xff]  ;;  %v6745_v34 = vand.u32 4294901760, %v5453_v8 }
 0x235   :  { %v5348_v0 = vsel %vm1279_vm1, %v5231_v40, 128  ;;  %v1585_v60 = vand.u32 4294901760, %v5359_v63  ;;  %6820 = vst [vmem:[#allocation11_spill] sm:$0xff] %v5467_v22  ;;  %v6744_v36 = vand.u32 4294901760, %v5458_v11  ;;  %v1326_v56 = vcvt.s32.f32 %v1324_v7 }
 0x236   :  { %1482 = vmin.xlane.f32.xlu1 %v5343_v50  ;;  %1496 = vmin.xlane.f32.xlu0 %v5345_v51  ;;  %v1507_v41 = vshra.s32 %v5348_v0, 16  ;;  %v1354_v7 = vcvt.s32.f32 %v1352_v19  ;;  %v1382_v19 = vcvt.s32.f32 %v1380_v5  ;;  %v1396_v5 = vcvt.s32.f32 %v1394_v28 }
 0x237   :  { %v5394_v17 = vpack.c.bf16 %v1588_v1, %v1585_v60  ;;  %v5479_v43 = vpack.c.bf16 %v6744_v36, %v6745_v34  ;;  %v1310_v36 = vand.u32 65535, %v5243_v62  ;;  %v1450_v28 = vand.u32 65535, %v5317_v61 }
 0x238   :  { %v5353_v45 = vcvt.s32.f32 %v1507_v41  ;;  %v1296_v41 = vand.u32 65535, %v5234_v42 }
 0x239   :  { %4473 = vmatprep.subr.bf16.mxu0 %v5394_v17  ;;  %4313 = vmatprep.subr.bf16.mxu1 %v5394_v17  ;;  %6821 = vst [vmem:[#allocation12_spill] sm:$0xff] %v5479_v43  ;;  %v1312_v42 = vcvt.s32.f32 %v1310_v36  ;;  %v1340_v36 = vcvt.s32.f32 %v1338_v29  ;;  %v1368_v29 = vcvt.s32.f32 %v1366_v18 }
 0x23a   :  { %1510 = vmin.xlane.f32.xlu1 %v5353_v45  ;;  %4475 = vmatpush3.bf16.msra.mxu0 %v5394_v17  ;;  %v1298_v48 = vcvt.s32.f32 %v1296_v41 }
 0x23b   :  { %4315 = vmatpush3.bf16.msra.mxu1 %v5394_v17  ;;  %4477 = vmatprep.subr.bf16.mxu0 %v5402_v24 }
 0x23c   :  { %4317 = vmatprep.subr.bf16.mxu1 %v5402_v24 }
 0x23e   :  { %4479 = vmatpush3.bf16.msra.mxu0 %v5402_v24 }
 0x23f   :  { %4319 = vmatpush3.bf16.msra.mxu1 %v5402_v24  ;;  %4481 = vmatprep.subr.bf16.mxu0 %v5423_v27 }
 0x240   :  { %4321 = vmatprep.subr.bf16.mxu1 %v5423_v27 }
 0x242   :  { %4483 = vmatpush3.bf16.msra.mxu0 %v5423_v27 }
 0x243   :  { %4323 = vmatpush3.bf16.msra.mxu1 %v5423_v27  ;;  %4485 = vmatprep.subr.bf16.mxu0 %v5445_v47 }
 0x244   :  { %4325 = vmatprep.subr.bf16.mxu1 %v5445_v47 }
 0x246   :  { %4487 = vmatpush3.bf16.msra.mxu0 %v5445_v47 }
 0x247   :  { %4327 = vmatpush3.bf16.msra.mxu1 %v5445_v47  ;;  %4489 = vmatprep.subr.bf16.mxu0 %v5467_v22 }
 0x248   :  { %4329 = vmatprep.subr.bf16.mxu1 %v5467_v22 }
 0x24a   :  { %4491 = vmatpush3.bf16.msra.mxu0 %v5467_v22 }
 0x24b   :  { %4331 = vmatpush3.bf16.msra.mxu1 %v5467_v22  ;;  %4493 = vmatprep.subr.bf16.mxu0 %v5479_v43 }
 0x24c   :  { %4333 = vmatprep.subr.bf16.mxu1 %v5479_v43 }
 0x24e   :  { %4495 = vmatpush3.bf16.msra.mxu0 %v5479_v43 }
 0x24f   :  { %4335 = vmatpush3.bf16.msra.mxu1 %v5479_v43 }
 0x2a7   :  { %v5491_v34 = vpop.xlane.xlu0 %1300 }
 0x2a8   :  { %vm1302_vm2 = vcmp.eq.f32.partialorder %v5237_v59, %v5491_v34 }
 0x2a9   :  { %v1303_v33 = vsel %vm1302_vm2, %v1298_v48, inf }
 0x2aa   :  { %1304 = vmin.xlane.f32.xlu0 %v1303_v33 }
 0x2ab   :  { %v5497_v9 = vpop.xlane.xlu1 %1314  ;;  %v5499_v54 = vpop.xlane.xlu0 %1328 }
 0x2ac   :  { %vm1316_vm3 = vcmp.eq.f32.partialorder %v5250_v10, %v5497_v9  ;;  %vm1330_vm4 = vcmp.eq.f32.partialorder %v5248_v13, %v5499_v54 }
 0x2ad   :  { %v1317_v62 = vsel %vm1316_vm3, %v1312_v42, inf  ;;  %v1331_v59 = vsel %vm1330_vm4, %v1326_v56, inf  ;;  %v1621_v56 = vand.u32 4294901760, %v5528_v15  ;;  %vm2886_vm3 = vcmask 7168  }
 0x2ae   :  { %1318 = vmin.xlane.f32.xlu1 %v1317_v62  ;;  %1332 = vmin.xlane.f32.xlu0 %v1331_v59  ;;  %v1436_v62 = vand.u32 65535, %v5304_v39  ;;  %v5556_v39 = vld [vmem:[%s6733_s2 + $0x70] sm:$0xff]  ;;  %vm2967_vm4 = vcmask 519168  }
 0x2af   :  { %v5507_v33 = vpop.xlane.xlu1 %1342  ;;  %v5509_v48 = vpop.xlane.xlu0 %1356 }
 0x2b0   :  { %vm1344_vm5 = vcmp.eq.f32.partialorder %v5264_v21, %v5507_v33  ;;  %vm1358_vm6 = vcmp.eq.f32.partialorder %v5266_v26, %v5509_v48 }
 0x2b1   :  { %v1345_v13 = vsel %vm1344_vm5, %v1340_v36, inf  ;;  %v1359_v10 = vsel %vm1358_vm6, %v1354_v7, inf  ;;  %v1410_v36 = vcvt.s32.f32 %v1408_v6  ;;  %v1464_v6 = vand.u32 65535, %v5320_v4 }
 0x2b2   :  { %1346 = vmin.xlane.f32.xlu1 %v1345_v13  ;;  %1360 = vmin.xlane.f32.xlu0 %v1359_v10 }
 0x2b3   :  { %v5517_v41 = vpop.xlane.xlu1 %1370  ;;  %v5519_v42 = vpop.xlane.xlu0 %1384 }
 0x2b4   :  { %vm1372_vm7 = vcmp.eq.f32.partialorder %v5280_v32, %v5517_v41  ;;  %vm1386_vm8 = vcmp.eq.f32.partialorder %v5282_v14, %v5519_v42  ;;  %v1624_v32 = vand.u32 4294901760, %v5533_v16  ;;  %v1422_v14 = vand.u32 65535, %v5301_v38 }
 0x2b5   :  { %v1373_v21 = vsel %vm1372_vm7, %v1368_v29, inf  ;;  %v1387_v26 = vsel %vm1386_vm8, %v1382_v19, inf }
 0x2b6   :  { %1374 = vmin.xlane.f32.xlu1 %v1373_v21  ;;  %1388 = vmin.xlane.f32.xlu0 %v1387_v26  ;;  %v5551_v38 = vpack.c.bf16 %v1624_v32, %v1621_v56  ;;  %v1424_v21 = vcvt.s32.f32 %v1422_v14  ;;  %v1438_v26 = vcvt.s32.f32 %v1436_v62 }
 0x2b7   :  { %v5539_v59 = vpop.xlane.xlu1 %1398  ;;  %v5541_v18 = vpop.xlane.xlu0 %1412 }
 0x2b8   :  { %vm1400_vm9 = vcmp.eq.f32.partialorder %v5296_v35, %v5539_v59  ;;  %vm1414_vm10 = vcmp.eq.f32.partialorder %v5298_v37, %v5541_v18  ;;  %6822 = vst [vmem:[#allocation13_spill] sm:$0xff] %v5551_v38  ;;  %v5561_v35 = vld [vmem:[%s6733_s2 + $0x78] sm:$0xff]  ;;  %v1627_v37 = vand.u32 4294901760, %v5556_v39  ;;  %4497 = vmatprep.subr.bf16.mxu0 %v5551_v38  ;;  %4337 = vmatprep.subr.bf16.mxu1 %v5551_v38 }
 0x2b9   :  { %v1401_v7 = vsel %vm1400_vm9, %v1396_v5, inf  ;;  %v1415_v13 = vsel %vm1414_vm10, %v1410_v36, inf  ;;  %v1630_v10 = vand.u32 4294901760, %v5561_v35  ;;  %4499 = vmatpush3.bf16.msra.mxu0 %v5551_v38  ;;  %4339 = vmatpush3.bf16.msra.mxu1 %v5551_v38  ;;  %v1478_v5 = vand.u32 65535, %v5333_v2 }
 0x2ba   :  { %1402 = vmin.xlane.f32.xlu1 %v1401_v7  ;;  %1416 = vmin.xlane.f32.xlu0 %v1415_v13  ;;  %v1452_v36 = vcvt.s32.f32 %v1450_v28  ;;  %v1466_v7 = vcvt.s32.f32 %v1464_v6  ;;  %v1506_v28 = vand.u32 65535, %v5348_v0 }
 0x2bb   :  { %v5567_v29 = vpop.xlane.xlu1 %1426  ;;  %v5569_v19 = vpop.xlane.xlu0 %1440  ;;  %v5584_v14 = vpack.c.bf16 %v1630_v10, %v1627_v37 }
 0x2bc   :  { %vm1428_vm11 = vcmp.eq.f32.partialorder %v5312_v57, %v5567_v29  ;;  %vm1442_vm12 = vcmp.eq.f32.partialorder %v5314_v58, %v5569_v19  ;;  %v1492_v57 = vand.u32 65535, %v5336_v31  ;;  %v1480_v31 = vcvt.s32.f32 %v1478_v5 }
 0x2bd   :  { %v1429_v61 = vsel %vm1428_vm11, %v1424_v21, inf  ;;  %v1443_v4 = vsel %vm1442_vm12, %v1438_v26, inf  ;;  %6823 = vst [vmem:[#allocation14_spill] sm:$0xff] %v5584_v14  ;;  %4501 = vmatprep.subr.bf16.mxu0 %v5584_v14  ;;  %4341 = vmatprep.subr.bf16.mxu1 %v5584_v14  ;;  %v5607_v21 = vsub.f32 %v5359_v63, %v1585_v60  ;;  %v5612_v26 = vsub.f32 %v5364_v53, %v1588_v1 }
 0x2be   :  { %1430 = vmin.xlane.f32.xlu1 %v1429_v61  ;;  %1444 = vmin.xlane.f32.xlu0 %v1443_v4  ;;  %v1508_v60 = vcvt.s32.f32 %v1506_v28  ;;  %v5651_v28 = vsub.f32 %v5556_v39, %v1627_v37 }
 0x2bf   :  { %v5587_v62 = vpop.xlane.xlu1 %1454  ;;  %v5589_v58 = vpop.xlane.xlu0 %1468  ;;  %4503 = vmatpush3.bf16.msra.mxu0 %v5584_v14  ;;  %4343 = vmatpush3.bf16.msra.mxu1 %v5584_v14  ;;  %6824 = vst [vmem:[#allocation15_spill] sm:$0xff] %v5607_v21  ;;  %6825 = vst [vmem:[#allocation16_spill] sm:$0xff] %v5612_v26  ;;  %v6762_v4 = vand.u32 4294901760, %v5607_v21  ;;  %v6760_v5 = vand.u32 4294901760, %v5612_v26 }
 0x2c0   :  { %vm1456_vm13 = vcmp.eq.f32.partialorder %v5328_v23, %v5587_v62  ;;  %vm1470_vm14 = vcmp.eq.f32.partialorder %v5330_v30, %v5589_v58  ;;  %v1494_v30 = vcvt.s32.f32 %v1492_v57  ;;  %6828 = vst [vmem:[#allocation19_spill] sm:$0xff] %v5651_v28 }
 0x2c1   :  { %v1457_v2 = vsel %vm1456_vm13, %v1452_v36, inf  ;;  %v1471_v13 = vsel %vm1470_vm14, %v1466_v7, inf  ;;  %v1829_v53 = vsub.f32 %v5607_v21, %v6762_v4  ;;  %v5636_v7 = vsub.f32 %v5528_v15, %v1621_v56 }
 0x2c2   :  { %1458 = vmin.xlane.f32.xlu1 %v1457_v2  ;;  %1472 = vmin.xlane.f32.xlu0 %v1471_v13  ;;  %v5641_v2 = vsub.f32 %v5533_v16, %v1624_v32  ;;  %v5656_v15 = vsub.f32 %v5561_v35, %v1630_v10  ;;  %v6753_v32 = vand.u32 4294901760, %v5651_v28 }
 0x2c3   :  { %v5600_v6 = vpop.xlane.xlu1 %1482  ;;  %v5602_v23 = vpop.xlane.xlu0 %1496  ;;  %v1830_v1 = vand.u32 4294901760, %v1829_v53  ;;  %6826 = vst [vmem:[#allocation17_spill] sm:$0xff] %v5636_v7  ;;  %v5675_v53 = vpack.c.bf16 %v5612_v26, %v5607_v21 }
 0x2c4   :  { %vm1484_vm15 = vcmp.eq.f32.partialorder %v5343_v50, %v5600_v6  ;;  %vm1498_vm1 = vcmp.eq.f32.partialorder %v5345_v51, %v5602_v23  ;;  %v1836_v50 = vsub.f32 %v5612_v26, %v6760_v5  ;;  %6827 = vst [vmem:[#allocation18_spill] sm:$0xff] %v5641_v2  ;;  %v6754_v13 = vand.u32 4294901760, %v5641_v2  ;;  %6829 = vst [vmem:[#allocation20_spill] sm:$0xff] %v5656_v15 }
 0x2c5   :  { %v1485_v0 = vsel %vm1484_vm15, %v1480_v31, inf  ;;  %v1499_v61 = vsel %vm1498_vm1, %v1494_v30, inf  ;;  %v6752_v30 = vand.u32 4294901760, %v5656_v15  ;;  %v1927_v39 = vsub.f32 %v5651_v28, %v6753_v32 }
 0x2c6   :  { %1486 = vmin.xlane.f32.xlu1 %v1485_v0  ;;  %1500 = vmin.xlane.f32.xlu0 %v1499_v61  ;;  %v1837_v57 = vand.u32 4294901760, %v1836_v50  ;;  %v1920_v16 = vsub.f32 %v5641_v2, %v6754_v13  ;;  %v5679_v50 = vpack.c.bf16 %v5641_v2, %v5636_v7  ;;  %v1503_v4 = vcvt.f32.s32 %v5602_v23 }
 0x2c7   :  { %v5620_v63 = vpop.xlane.xlu1 %1510  ;;  %v1934_v37 = vsub.f32 %v5656_v15, %v6752_v30  ;;  %v1928_v10 = vand.u32 4294901760, %v1927_v39  ;;  %v1363_v39 = vcvt.f32.s32 %v5509_v48  ;;  %v1405_v30 = vcvt.f32.s32 %v5539_v59 }
 0x2c8   :  { %vm1512_vm2 = vcmp.eq.f32.partialorder %v5353_v45, %v5620_v63  ;;  %v5630_v36 = vpack.c.bf16 %v1837_v57, %v1830_v1  ;;  %v6755_v45 = vand.u32 4294901760, %v5636_v7  ;;  %v1921_v0 = vand.u32 4294901760, %v1920_v16 }
 0x2c9   :  { %v1513_v51 = vsel %vm1512_vm2, %v1508_v60, inf  ;;  %v1935_v61 = vand.u32 4294901760, %v1934_v37  ;;  %v1307_v1 = vcvt.f32.s32 %v5491_v34  ;;  %v1321_v57 = vcvt.f32.s32 %v5497_v9 }
 0x2ca   :  { %1514 = vmin.xlane.f32.xlu1 %v1513_v51  ;;  %4345 = vmatprep.subr.bf16.mxu1 %v5630_v36  ;;  %v1913_v31 = vsub.f32 %v5636_v7, %v6755_v45  ;;  %v5683_v51 = vpack.c.bf16 %v5656_v15, %v5651_v28  ;;  %v1349_v16 = vcvt.f32.s32 %v5507_v33  ;;  %v1377_v37 = vcvt.f32.s32 %v5517_v41 }
 0x2cb   :  { %v5671_v60 = vpack.c.bf16 %v1935_v61, %v1928_v10  ;;  %v1391_v10 = vcvt.f32.s32 %v5519_v42  ;;  %v5700_v9 = vsub.f32 %v5369_v55, %v1591_v12  ;;  %v6831_v48 = vand.u32 4294901760, %v5382_v49 }
 0x2cc   :  { %v1914_v56 = vand.u32 4294901760, %v1913_v31  ;;  %v1335_v31 = vcvt.f32.s32 %v5499_v54  ;;  %v6830_v54 = vand.u32 4294901760, %v5376_v3  ;;  %v5707_v33 = vshll.u32 %v1349_v16, 16 }
 0x2cd   :  { %v5712_v41 = vsub.f32 %v5382_v49, %v6831_v48  ;;  %v6832_v42 = vand.u32 4294901760, %v5387_v52  ;;  %v6833_v55 = vand.u32 4294901760, %v5407_v25  ;;  %v6835_v49 = vand.u32 4294901760, %v5431_v44 }
 0x2ce   :  { %v5669_v35 = vpack.c.bf16 %v1921_v0, %v1914_v56  ;;  %v1308_v56 = vshll.u32 %v1307_v1, 16  ;;  %v5689_v0 = vshll.u32 %v1321_v57, 16  ;;  %v5694_v61 = vshll.u32 %v1335_v31, 16 }
 0x2cf   :  { %v5705_v34 = vsub.f32 %v5376_v3, %v6830_v54  ;;  %v5717_v59 = vsub.f32 %v5387_v52, %v6832_v42  ;;  %v5722_v12 = vsub.f32 %v5407_v25, %v6833_v55  ;;  %v1419_v3 = vcvt.f32.s32 %v5541_v18 }
 0x2d0   :  { %v6834_v1 = vand.u32 4294901760, %v5412_v20  ;;  %v5733_v31 = vsub.f32 %v5431_v44, %v6835_v49  ;;  %v6836_v52 = vand.u32 4294901760, %v5436_v46  ;;  %v5740_v54 = vshll.u32 %v1363_v39, 16 }
 0x2d1   :  { %v5742_v25 = vshll.u32 %v1377_v37, 16  ;;  %v5744_v18 = vshll.u32 %v1391_v10, 16  ;;  %v1433_v48 = vcvt.f32.s32 %v5567_v29  ;;  %v1447_v42 = vcvt.f32.s32 %v5569_v19 }
 0x2d2   :  { %v5728_v57 = vsub.f32 %v5412_v20, %v6834_v1  ;;  %v5738_v16 = vsub.f32 %v5436_v46, %v6836_v52  ;;  %v5747_v20 = vshll.u32 %v1405_v30, 16  ;;  %v6756_v44 = vand.u32 4294901760, %v5700_v9 }
 0x2d3   :  { %v6758_v55 = vand.u32 4294901760, %v5705_v34  ;;  %v1461_v46 = vcvt.f32.s32 %v5587_v62  ;;  %v6757_v39 = vand.u32 4294901760, %v5712_v41  ;;  %v6759_v37 = vand.u32 4294901760, %v5717_v59 }
 0x2d4   :  { %v6761_v10 = vand.u32 4294901760, %v5722_v12  ;;  %v5756_v1 = vshll.u32 %v1419_v3, 16  ;;  %v6763_v29 = vand.u32 4294901760, %v5728_v57  ;;  %v6766_v30 = vand.u32 4294901760, %v5733_v31 }
 0x2d5   :  { %v6768_v19 = vand.u32 4294901760, %v5738_v16  ;;  %v5761_v49 = vshll.u32 %v1433_v48, 16  ;;  %v1475_v52 = vcvt.f32.s32 %v5589_v58  ;;  %v1489_v62 = vcvt.f32.s32 %v5600_v6 }
 0x2d6   :  { %v5765_v32 = vshll.u32 %v1447_v42, 16  ;;  %v1843_v3 = vsub.f32 %v5700_v9, %v6756_v44  ;;  %v1850_v13 = vsub.f32 %v5705_v34, %v6758_v55  ;;  %v5773_v45 = vshll.u32 %v1461_v46, 16 }
 0x2d7   :  { %v1857_v48 = vsub.f32 %v5712_v41, %v6757_v39  ;;  %v1864_v58 = vsub.f32 %v5717_v59, %v6759_v37  ;;  %v1871_v6 = vsub.f32 %v5722_v12, %v6761_v10  ;;  %v1878_v44 = vsub.f32 %v5728_v57, %v6763_v29 }
 0x2d8   :  { %v1885_v46 = vsub.f32 %v5733_v31, %v6766_v30  ;;  %v1892_v39 = vsub.f32 %v5738_v16, %v6768_v19  ;;  %v6837_v55 = vand.u32 4294901760, %v5453_v8  ;;  %v5798_v5 = vshll.u32 %v1475_v52, 16 }
 0x2d9   :  { %v5800_v10 = vshll.u32 %v1489_v62, 16  ;;  %v1517_v15 = vcvt.f32.s32 %v5620_v63  ;;  %v1844_v28 = vand.u32 4294901760, %v1843_v3  ;;  %v1851_v30 = vand.u32 4294901760, %v1850_v13 }
 0x2da   :  { %v5796_v37 = vsub.f32 %v5453_v8, %v6837_v55  ;;  %v6838_v2 = vand.u32 4294901760, %v5458_v11  ;;  %v1858_v8 = vand.u32 4294901760, %v1857_v48  ;;  %v1865_v55 = vand.u32 4294901760, %v1864_v58 }
 0x2db   :  { %v1872_v52 = vand.u32 4294901760, %v1871_v6  ;;  %v1879_v21 = vand.u32 4294901760, %v1878_v44  ;;  %v1886_v14 = vand.u32 4294901760, %v1885_v46  ;;  %v1893_v23 = vand.u32 4294901760, %v1892_v39 }
 0x2dc   :  { %v5807_v19 = vsub.f32 %v5458_v11, %v6838_v2  ;;  %v5812_v63 = vshll.u32 %v1503_v4, 16  ;;  %v5821_v13 = vshll.u32 %v1517_v15, 16  ;;  %v6781_v4 = vmov 0.0  }
 0x2dd   :  { %v5831_v39 = vpack.c.bf16 %v1851_v30, %v1844_v28  ;;  %v5842_v46 = vpack.c.bf16 %v1865_v55, %v1858_v8 }
 0x337   :  { %v1305_v42 = vpop.xlane.xlu0 %1304 }
 0x338   :  { %v1306_v29 = vcvt.f32.s32 %v1305_v42  ;;  %v6777_v42 = vand.u32 4294901760, %v5796_v37 }
 0x33a   :  { %v5809_v7 = vadd.s32 %v1308_v56, %v1306_v29  ;;  %v6774_v56 = vmov 1.0   ;;  %v5851_v28 = vsub.f32 %v5796_v37, %v6777_v42 }
 0x33b   :  { %v1319_v26 = vpop.xlane.xlu1 %1318  ;;  %v1333_v62 = vpop.xlane.xlu0 %1332 }
 0x33c   :  { %2887 = vst.msk [vmem:[%s6737_s6] sm:$0xff] %vm2886_vm3, %v5809_v7  ;;  %v1320_v11 = vcvt.f32.s32 %v1319_v26  ;;  %v1334_v2 = vcvt.f32.s32 %v1333_v62  ;;  %vm1520_vm5 = vcmp.eq.s32.totalorder %v5231_v40, %v5809_v7  ;;  %v6776_v26 = vand.u32 4294901760, %v5807_v19 }
 0x33d   :  { %4240 = vmatprep.mubr.msk.f32.mxu0 %vm1520_vm5, %v6774_v56  ;;  %v3328_v44 = vsel %vm1520_vm5, 1.0, %v6781_v4  ;;  %v5844_v62 = vpack.c.bf16 %v1879_v21, %v1872_v52  ;;  %v5846_v56 = vpack.c.bf16 %v1893_v23, %v1886_v14 }
 0x33e   :  { %v5835_v29 = vadd.s32 %v5689_v0, %v1320_v11  ;;  %v5838_v15 = vadd.s32 %v5694_v61, %v1334_v2  ;;  %v5840_v3 = vsub.f32 %v3328_v44, %v3328_v44  ;;  %v3408_v48 = vpack.c.bf16 %v3328_v44, %v3328_v44 }
 0x33f   :  { %v1347_v58 = vpop.xlane.xlu1 %1346  ;;  %v1361_v6 = vpop.xlane.xlu0 %1360  ;;  %v6839_v61 = vmov 1.0   ;;  %v5887_v55 = vsub.f32 %v5807_v19, %v6776_v26 }
 0x340   :  { %vm1521_vm6 = vcmp.eq.s32.totalorder %v5231_v40, %v5835_v29  ;;  %2888 = vst.msk [vmem:[%s6737_s6 + $0x8] sm:$0xff] %vm2886_vm3, %v5835_v29  ;;  %2889 = vst.msk [vmem:[%s6737_s6 + $0x10] sm:$0xff] %vm2886_vm3, %v5838_v15  ;;  %v1348_v14 = vcvt.f32.s32 %v1347_v58  ;;  %v1362_v21 = vcvt.f32.s32 %v1361_v6  ;;  %vm1522_vm7 = vcmp.eq.s32.totalorder %v5231_v40, %v5838_v15 }
 0x341   :  { %2968 = vst.msk [vmem:[%s6736_s5] sm:$0xf] %vm2967_vm4, %v3408_v48  ;;  %v3329_v0 = vsel %vm1521_vm6, 1.0, %v6781_v4  ;;  %4241 = vmatmul.mubr.msk.f32.vlgmr.msra.gmra.mrb[16].mxu0 %vm1521_vm6, %v6839_v61  ;;  %v3330_v30 = vsel %vm1522_vm7, 1.0, %v6781_v4  ;;  %v6778_v8 = vand.u32 4294901760, %v5840_v3 }
 0x342   :  { %v3409_v52 = vpack.c.bf16 %v3329_v0, %v3329_v0  ;;  %v5890_v23 = vadd.s32 %v5707_v33, %v1348_v14  ;;  %v5893_v11 = vadd.s32 %v5740_v54, %v1362_v21  ;;  %4243 = vmatprep.mubr.msk.f32.mxu0 %vm1522_vm7, %v6839_v61  ;;  %v3410_v2 = vpack.c.bf16 %v3330_v30, %v3330_v30 }
 0x343   :  { %v1375_v48 = vpop.xlane.xlu1 %1374  ;;  %v1389_v58 = vpop.xlane.xlu0 %1388  ;;  %v1668_v6 = vsub.f32 %v5840_v3, %v6778_v8  ;;  %v3066_v26 = vadd.f32 %v3329_v0, %v3328_v44  ;;  %v5902_v42 = vsub.f32 %v3329_v0, %v3329_v0  ;;  %v5904_v33 = vsub.f32 %v3330_v30, %v3330_v30 }
 0x344   :  { %2969 = vst.msk [vmem:[%s6736_s5 + $0x4] sm:$0xf] %vm2967_vm4, %v3409_v52  ;;  %2970 = vst.msk [vmem:[%s6736_s5 + $0x8] sm:$0xf] %vm2967_vm4, %v3410_v2  ;;  %v1376_v54 = vcvt.f32.s32 %v1375_v48  ;;  %v1390_v44 = vcvt.f32.s32 %v1389_v58  ;;  %vm1523_vm8 = vcmp.eq.s32.totalorder %v5231_v40, %v5890_v23  ;;  %vm1524_vm9 = vcmp.eq.s32.totalorder %v5231_v40, %v5893_v11 }
 0x345   :  { %6840 = vst [vmem:[#allocation21_spill] sm:$0xff] %v5904_v33  ;;  %2890 = vst.msk [vmem:[%s6737_s6 + $0x18] sm:$0xff] %vm2886_vm3, %v5890_v23  ;;  %v3331_v14 = vsel %vm1523_vm8, 1.0, %v6781_v4  ;;  %4244 = vmatmul.mubr.msk.f32.gmra.mrb[18].mxu0 %vm1523_vm8, %v6839_v61  ;;  %v1669_v21 = vand.u32 4294901760, %v1668_v6  ;;  %v3067_v0 = vadd.f32 %v3330_v30, %v3066_v26  ;;  %v3332_v52 = vsel %vm1524_vm9, 1.0, %v6781_v4 }
 0x346   :  { %2891 = vst.msk [vmem:[%s6737_s6 + $0x20] sm:$0xff] %vm2886_vm3, %v5893_v11  ;;  %v5941_v2 = vadd.s32 %v5742_v25, %v1376_v54  ;;  %v5944_v48 = vadd.s32 %v5744_v18, %v1390_v44  ;;  %v3411_v58 = vpack.c.bf16 %v3331_v14, %v3331_v14  ;;  %4246 = vmatprep.mubr.msk.f32.mxu0 %vm1524_vm9, %v6839_v61  ;;  %v6793_v38 = vand.u32 4294901760, %v5902_v42 }
 0x347   :  { %v3412_v8 = vpack.c.bf16 %v3332_v52, %v3332_v52  ;;  %3960 = vmatprep.mubr.f32.mxu1 %v1669_v21  ;;  %v3068_v26 = vadd.f32 %v3331_v14, %v3067_v0  ;;  %v1403_v30 = vpop.xlane.xlu1 %1402  ;;  %v1417_v6 = vpop.xlane.xlu0 %1416  ;;  %v5952_v25 = vsub.f32 %v3331_v14, %v3331_v14  ;;  %v6841_v44 = vmov 0.0  }
 0x348   :  { %2892 = vst.msk [vmem:[%s6737_s6 + $0x28] sm:$0xff] %vm2886_vm3, %v5941_v2  ;;  %vm1526_vm10 = vcmp.eq.s32.totalorder %v5231_v40, %v5944_v48  ;;  %2893 = vst.msk [vmem:[%s6737_s6 + $0x30] sm:$0xff] %vm2886_vm3, %v5944_v48  ;;  %v1404_v18 = vcvt.f32.s32 %v1403_v30  ;;  %v1418_v54 = vcvt.f32.s32 %v1417_v6  ;;  %vm1525_vm11 = vcmp.eq.s32.totalorder %v5231_v40, %v5941_v2 }
 0x349   :  { %2971 = vst.msk [vmem:[%s6736_s5 + $0xc] sm:$0xf] %vm2967_vm4, %v3411_v58  ;;  %2972 = vst.msk [vmem:[%s6736_s5 + $0x10] sm:$0xf] %vm2967_vm4, %v3412_v8  ;;  %v5980_v14 = vsel %vm1526_vm10, 1.0, %v6841_v44  ;;  %v3069_v21 = vadd.f32 %v3332_v52, %v3068_v26  ;;  %v3333_v0 = vsel %vm1525_vm11, 1.0, %v6841_v44  ;;  %4247 = vmatmul.mubr.msk.f32.gmra.mrb[20].mxu0 %vm1525_vm11, %v6839_v61  ;;  %v1678_v8 = vsub.f32 %v5902_v42, %v6793_v38 }
 0x34a   :  { %v3414_v58 = vpack.c.bf16 %v5980_v14, %v5980_v14  ;;  %v5996_v30 = vadd.s32 %v5747_v20, %v1404_v18  ;;  %v5999_v26 = vadd.s32 %v5756_v1, %v1418_v54  ;;  %v3413_v6 = vpack.c.bf16 %v3333_v0, %v3333_v0 }
 0x34b   :  { %v3070_v4 = vadd.f32 %v3333_v0, %v3069_v21  ;;  %v1679_v43 = vand.u32 4294901760, %v1678_v8  ;;  %v1431_v22 = vpop.xlane.xlu1 %1430  ;;  %v6842_v47 = vand.u32 4294901760, %v5904_v33  ;;  %v1445_v24 = vpop.xlane.xlu0 %1444  ;;  %v6796_v38 = vand.u32 4294901760, %v5952_v25 }
 0x34c   :  { %2974 = vst.msk [vmem:[%s6736_s5 + $0x18] sm:$0xf] %vm2967_vm4, %v3414_v58  ;;  %vm1527_vm12 = vcmp.eq.s32.totalorder %v5231_v40, %v5996_v30  ;;  %vm1528_vm13 = vcmp.eq.s32.totalorder %v5231_v40, %v5999_v26  ;;  %2973 = vst.msk [vmem:[%s6736_s5 + $0x14] sm:$0xf] %vm2967_vm4, %v3413_v6  ;;  %v1446_v20 = vcvt.f32.s32 %v1445_v24 }
 0x34d   :  { %v1688_v27 = vsub.f32 %v5904_v33, %v6842_v47  ;;  %2894 = vst.msk [vmem:[%s6737_s6 + $0x38] sm:$0xff] %vm2886_vm3, %v5996_v30  ;;  %2895 = vst.msk [vmem:[%s6737_s6 + $0x40] sm:$0xff] %vm2886_vm3, %v5999_v26  ;;  %v1432_v47 = vcvt.f32.s32 %v1431_v22  ;;  %v6031_v1 = vsel %vm1527_vm12, 1.0, %v6841_v44  ;;  %v6037_v18 = vsel %vm1528_vm13, 1.0, %v6841_v44  ;;  %3961 = vmatmul.mubr.f32.vlgmr.msra.gmra.mrb[0].mxu1 %v1679_v43 }
 0x34e   :  { %v3071_v54 = vadd.f32 %v5980_v14, %v3070_v4  ;;  %v3415_v22 = vpack.c.bf16 %v6031_v1, %v6031_v1  ;;  %v3416_v24 = vpack.c.bf16 %v6037_v18, %v6037_v18  ;;  %4347 = vmatpush3.bf16.msra.mxu1 %v5630_v36  ;;  %v6049_v58 = vadd.s32 %v5765_v32, %v1446_v20 }
 0x34f   :  { %v1689_v21 = vand.u32 4294901760, %v1688_v27  ;;  %v6045_v8 = vadd.s32 %v5761_v49, %v1432_v47  ;;  %v1698_v27 = vsub.f32 %v5952_v25, %v6796_v38  ;;  %4349 = vmatprep.subr.bf16.mxu1 %v5831_v39  ;;  %v1459_v43 = vpop.xlane.xlu1 %1458  ;;  %v6056_v4 = vsub.f32 %v3332_v52, %v3332_v52  ;;  %v1473_v33 = vpop.xlane.xlu0 %1472 }
 0x350   :  { %v3072_v6 = vadd.f32 %v6031_v1, %v3071_v54  ;;  %v1900_v49 = vand.u32 4294901760, %v5851_v28  ;;  %2975 = vst.msk [vmem:[%s6736_s5 + $0x1c] sm:$0xf] %vm2967_vm4, %v3415_v22  ;;  %2976 = vst.msk [vmem:[%s6736_s5 + $0x20] sm:$0xf] %vm2967_vm4, %v3416_v24  ;;  %vm1530_vm15 = vcmp.eq.s32.totalorder %v5231_v40, %v6049_v58  ;;  %v1460_v36 = vcvt.f32.s32 %v1459_v43 }
 0x351   :  { %3963 = vmatprep.mubr.f32.mxu1 %v1689_v21  ;;  %6843 = vst [vmem:[#allocation22_spill] sm:$0xff] %v6056_v4  ;;  %vm1529_vm14 = vcmp.eq.s32.totalorder %v5231_v40, %v6045_v8  ;;  %2896 = vst.msk [vmem:[%s6737_s6 + $0x48] sm:$0xff] %vm2886_vm3, %v6045_v8  ;;  %v1474_v32 = vcvt.f32.s32 %v1473_v33  ;;  %v6090_v47 = vsel %vm1530_vm15, 1.0, %v6841_v44  ;;  %v1699_v20 = vand.u32 4294901760, %v1698_v27  ;;  %v4703_v8 = vld [vmem:[%s6731_s0] sm:$0xff] }
 0x352   :  { %2897 = vst.msk [vmem:[%s6737_s6 + $0x50] sm:$0xff] %vm2886_vm3, %v6049_v58  ;;  %v3337_v28 = vsel %vm1529_vm14, 1.0, %v6841_v44  ;;  %v3073_v52 = vadd.f32 %v6037_v18, %v3072_v6  ;;  %v3418_v21 = vpack.c.bf16 %v6090_v47, %v6090_v47  ;;  %v6095_v33 = vadd.s32 %v5773_v45, %v1460_v36  ;;  %4351 = vmatpush3.bf16.msra.mxu1 %v5831_v39 }
 0x353   :  { %v3417_v54 = vpack.c.bf16 %v3337_v28, %v3337_v28  ;;  %v6797_v22 = vand.u32 4294901760, %v6056_v4  ;;  %3964 = vmatmul.mubr.f32.gmra.mrb[2].mxu1 %v1699_v20  ;;  %v6100_v6 = vadd.s32 %v5798_v5, %v1474_v32  ;;  %v6102_v43 = vsub.f32 %v3333_v0, %v3333_v0  ;;  %4353 = vmatprep.subr.bf16.mxu1 %v5842_v46  ;;  %v1487_v27 = vpop.xlane.xlu1 %1486 }
 0x354   :  { %v3074_v24 = vadd.f32 %v3337_v28, %v3073_v52  ;;  %v1907_v38 = vand.u32 4294901760, %v5887_v55  ;;  %2978 = vst.msk [vmem:[%s6736_s5 + $0x28] sm:$0xf] %vm2967_vm4, %v3418_v21  ;;  %vm1531_vm1 = vcmp.eq.s32.totalorder %v5231_v40, %v6095_v33  ;;  %v1488_v45 = vcvt.f32.s32 %v1487_v27 }
 0x355   :  { %6844 = vst [vmem:[#allocation23_spill] sm:$0xff] %v6102_v43  ;;  %2977 = vst.msk [vmem:[%s6736_s5 + $0x24] sm:$0xf] %vm2967_vm4, %v3417_v54  ;;  %v1708_v5 = vsub.f32 %v6056_v4, %v6797_v22  ;;  %v6126_v39 = vsub.f32 %v5980_v14, %v5980_v14  ;;  %v3339_v0 = vsel %vm1531_vm1, 1.0, %v6841_v44  ;;  %vm6806_vm2 = vcmp.eq.s32.totalorder %v5231_v40, %v6100_v6  ;;  %v1501_v14 = vpop.xlane.xlu0 %1500 }
 0x356   :  { %2898 = vst.msk [vmem:[%s6737_s6 + $0x58] sm:$0xff] %vm2886_vm3, %v6095_v33  ;;  %v3075_v55 = vadd.f32 %v6090_v47, %v3074_v24  ;;  %2899 = vst.msk [vmem:[%s6737_s6 + $0x60] sm:$0xff] %vm2886_vm3, %v6100_v6  ;;  %v6799_v36 = vand.u32 4294901760, %v6102_v43  ;;  %v3419_v32 = vpack.c.bf16 %v3339_v0, %v3339_v0  ;;  %v3340_v20 = vsel %vm6806_vm2, 1.0, %v6841_v44  ;;  %4355 = vmatpush3.bf16.msra.mxu1 %v5842_v46 }
 0x357   :  { %v1709_v52 = vand.u32 4294901760, %v1708_v5  ;;  %v6146_v54 = vadd.s32 %v5800_v10, %v1488_v45  ;;  %v3420_v24 = vpack.c.bf16 %v3340_v20, %v3340_v20  ;;  %v6804_v22 = vand.u32 4294901760, %v6126_v39  ;;  %4357 = vmatprep.subr.bf16.mxu1 %v5844_v62  ;;  %v1515_v5 = vpop.xlane.xlu1 %1514 }
 0x358   :  { %v3076_v21 = vadd.f32 %v3339_v0, %v3075_v55  ;;  %v1718_v27 = vsub.f32 %v6102_v43, %v6799_v36  ;;  %2979 = vst.msk [vmem:[%s6736_s5 + $0x2c] sm:$0xf] %vm2967_vm4, %v3419_v32  ;;  %v1502_v10 = vcvt.f32.s32 %v1501_v14  ;;  %v6167_v46 = vsub.f32 %v6031_v1, %v6031_v1 }
 0x359   :  { %3966 = vmatprep.mubr.f32.mxu1 %v1709_v52  ;;  %vm6805_vm0 = vcmp.eq.s32.totalorder %v5231_v40, %v6146_v54  ;;  %2900 = vst.msk [vmem:[%s6737_s6 + $0x68] sm:$0xff] %vm2886_vm3, %v6146_v54  ;;  %v1516_v45 = vcvt.f32.s32 %v1515_v5  ;;  %v1728_v14 = vsub.f32 %v6126_v39, %v6804_v22  ;;  %v4364_v52 = vpack.c.bf16 %v1907_v38, %v1900_v49 }
 0x35a   :  { %2980 = vst.msk [vmem:[%s6736_s5 + $0x30] sm:$0xf] %vm2967_vm4, %v3420_v24  ;;  %v1719_v55 = vand.u32 4294901760, %v1718_v27  ;;  %v3341_v32 = vsel %vm6805_vm0, 1.0, %v6841_v44  ;;  %v6181_v1 = vadd.s32 %v5812_v63, %v1502_v10  ;;  %v6809_v5 = vand.u32 4294901760, %v6167_v46  ;;  %4359 = vmatpush3.bf16.msra.mxu1 %v5844_v62 }
 0x35b   :  { %v3421_v36 = vpack.c.bf16 %v3341_v32, %v3341_v32  ;;  %v6185_v43 = vadd.s32 %v5821_v13, %v1516_v45  ;;  %v3077_v24 = vadd.f32 %v3340_v20, %v3076_v21  ;;  %v1729_v27 = vand.u32 4294901760, %v1728_v14  ;;  %4361 = vmatprep.subr.bf16.mxu1 %v5846_v56 }
 0x35c   :  { %3967 = vmatmul.mubr.f32.gmra.mrb[4].mxu1 %v1719_v55  ;;  %v6190_v4 = vsub.f32 %v6037_v18, %v6037_v18  ;;  %v6192_v22 = vsub.f32 %v3337_v28, %v3337_v28  ;;  %vm1534_vm0 = vcmp.eq.s32.totalorder %v5231_v40, %v6181_v1  ;;  %2901 = vst.msk [vmem:[%s6737_s6 + $0x70] sm:$0xff] %vm2886_vm3, %v6181_v1 }
 0x35d   :  { %2981 = vst.msk [vmem:[%s6736_s5 + $0x34] sm:$0xf] %vm2967_vm4, %v3421_v36  ;;  %v1738_v38 = vsub.f32 %v6167_v46, %v6809_v5  ;;  %vm1535_vm2 = vcmp.eq.s32.totalorder %v5231_v40, %v6185_v43  ;;  %v6218_v63 = vsub.f32 %v6090_v47, %v6090_v47  ;;  %3969 = vmatprep.mubr.f32.mxu1 %v1729_v27  ;;  %v3342_v13 = vsel %vm1534_vm0, 1.0, %v6841_v44 }
 0x35e   :  { %2902 = vst.msk [vmem:[%s6737_s6 + $0x78] sm:$0xff] %vm2886_vm3, %v6185_v43  ;;  %v3343_v62 = vsel %vm1535_vm2, 1.0, %v6841_v44  ;;  %v6808_v18 = vand.u32 4294901760, %v6190_v4  ;;  %v6807_v49 = vand.u32 4294901760, %v6192_v22  ;;  %v3422_v28 = vpack.c.bf16 %v3342_v13, %v3342_v13  ;;  %4363 = vmatpush3.bf16.msra.mxu1 %v5846_v56 }
 0x35f   :  { %v1739_v36 = vand.u32 4294901760, %v1738_v38  ;;  %v3423_v21 = vpack.c.bf16 %v3343_v62, %v3343_v62  ;;  %v6810_v47 = vand.u32 4294901760, %v6218_v63  ;;  %v6238_v44 = vsub.f32 %v3339_v0, %v3339_v0  ;;  %4365 = vmatprep.subr.bf16.mxu1 %v4364_v52 }
 0x360   :  { %v1748_v10 = vsub.f32 %v6190_v4, %v6808_v18  ;;  %v1758_v45 = vsub.f32 %v6192_v22, %v6807_v49  ;;  %v6240_v55 = vsub.f32 %v3340_v20, %v3340_v20  ;;  %2982 = vst.msk [vmem:[%s6736_s5 + $0x38] sm:$0xf] %vm2967_vm4, %v3422_v28  ;;  %v6253_v0 = vsub.f32 %v3341_v32, %v3341_v32 }
 0x361   :  { %3970 = vmatmul.mubr.f32.gmra.mrb[6].mxu1 %v1739_v36  ;;  %2983 = vst.msk [vmem:[%s6736_s5 + $0x3c] sm:$0xf] %vm2967_vm4, %v3423_v21  ;;  %v1768_v56 = vsub.f32 %v6218_v63, %v6810_v47  ;;  %v6255_v14 = vsub.f32 %v3342_v13, %v3342_v13  ;;  %v6257_v20 = vsub.f32 %v3343_v62, %v3343_v62  ;;  %v1777_v28 = vand.u32 4294901760, %v6238_v44 }
 0x362   :  { %v1749_v27 = vand.u32 4294901760, %v1748_v10  ;;  %v1759_v38 = vand.u32 4294901760, %v1758_v45  ;;  %v6812_v36 = vand.u32 4294901760, %v6240_v55  ;;  %v3078_v49 = vadd.f32 %v3341_v32, %v3077_v24  ;;  %4367 = vmatpush3.bf16.msra.mxu1 %v4364_v52 }
 0x363   :  { %v1769_v18 = vand.u32 4294901760, %v1768_v56  ;;  %v6811_v21 = vand.u32 4294901760, %v6253_v0  ;;  %v1807_v5 = vand.u32 4294901760, %v6255_v14  ;;  %v1778_v47 = vsub.f32 %v6238_v44, %v1777_v28  ;;  %4369 = vmatprep.subr.bf16.mxu1 %v5669_v35 }
 0x364   :  { %3972 = vmatprep.mubr.f32.mxu1 %v1749_v27  ;;  %v1788_v10 = vsub.f32 %v6240_v55, %v6812_v36  ;;  %v6813_v52 = vand.u32 4294901760, %v6257_v20  ;;  %v3079_v27 = vadd.f32 %v3342_v13, %v3078_v49  ;;  %vm6845_vm3 = vcmp.eq.s32.totalorder %v5231_v40, %v6100_v6 }
 0x365   :  { %3973 = vmatmul.mubr.f32.gmra.mrb[8].mxu1 %v1759_v38  ;;  %v1798_v32 = vsub.f32 %v6253_v0, %v6811_v21  ;;  %v1779_v24 = vand.u32 4294901760, %v1778_v47  ;;  %v1808_v56 = vsub.f32 %v6255_v14, %v1807_v5  ;;  %vm6846_vm4 = vcmp.eq.s32.totalorder %v5231_v40, %v6146_v54  ;;  %v4702_v40 = vld [vmem:[%s6731_s0 + $0x8] sm:$0xff] }
 0x366   :  { %3975 = vmatprep.mubr.f32.mxu1 %v1769_v18  ;;  %v1789_v45 = vand.u32 4294901760, %v1788_v10  ;;  %4371 = vmatpush3.bf16.msra.mxu1 %v5669_v35  ;;  %v1818_v21 = vsub.f32 %v6257_v20, %v6813_v52  ;;  %v3080_v36 = vadd.f32 %v3343_v62, %v3079_v27  ;;  %v4380_v62 = vpack.c.bf16 %v5705_v34, %v5700_v9  ;;  %v6850_v27 = vld [vmem:[#allocation9_spill] sm:$0xff] }
 0x367   :  { %4373 = vmatprep.subr.bf16.mxu1 %v5671_v60  ;;  %v1799_v38 = vand.u32 4294901760, %v1798_v32  ;;  %v1809_v18 = vand.u32 4294901760, %v1808_v56  ;;  %v6849_v56 = vld [vmem:[#allocation22_spill] sm:$0xff]  ;;  %v6864_v52 = vand.u32 4294901760, %v5902_v42 }
 0x368   :  { %v3081_v47 = vrot.slane %v3080_v36, 4  ;;  %v1819_v10 = vand.u32 4294901760, %v1818_v21  ;;  %v4392_v21 = vpack.c.bf16 %v5738_v16, %v5733_v31 }
 0x369   :  { %3976 = vmatmul.mubr.f32.gmra.mrb[10].mxu1 %v1779_v24  ;;  %v4396_v24 = vpack.c.bf16 %v5807_v19, %v5796_v37 }
 0x36a   :  { %3978 = vmatprep.mubr.f32.mxu1 %v1789_v45  ;;  %4375 = vmatpush3.bf16.msra.mxu1 %v5671_v60  ;;  %v3082_v35 = vadd.f32 %v3081_v47, %v3080_v36  ;;  %v4384_v36 = vpack.c.bf16 %v5717_v59, %v5712_v41  ;;  %v6847_v45 = vld [vmem:[#allocation21_spill] sm:$0xff]  ;;  %v6854_v47 = vld [vmem:[#allocation12_spill] sm:$0xff] }
 0x36b   :  { %4377 = vmatprep.subr.bf16.mxu1 %v5675_v53 }
 0x36c   :  { %v3083_v13 = vrot.slane %v3082_v35, 2 }
 0x36d   :  { %3979 = vmatmul.mubr.f32.gmra.mrb[12].mxu1 %v1799_v38  ;;  %v6852_v38 = vld [vmem:[#allocation10_spill] sm:$0xff] }
 0x36e   :  { %3981 = vmatprep.mubr.f32.mxu1 %v1809_v18  ;;  %v3084_v49 = vadd.f32 %v3083_v13, %v3082_v35  ;;  %v6853_v18 = vld [vmem:[#allocation11_spill] sm:$0xff]  ;;  %v6856_v35 = vld [vmem:[#allocation14_spill] sm:$0xff] }
 0x36f   :  { %v6857_v13 = vld [vmem:[#allocation15_spill] sm:$0xff] }
 0x370   :  { %v3085_v32 = vrot.slane %v3084_v49, 1 }
 0x371   :  { %3982 = vmatmul.mubr.f32.gmra.mrb[14].mxu1 %v1819_v10  ;;  %v6855_v10 = vld [vmem:[#allocation13_spill] sm:$0xff] }
 0x372   :  { %4016 = vmatprep.mubr.msk.f32.mxu1 %vm1520_vm5, %v6839_v61  ;;  %v3086_v60 = vadd.f32 %v3085_v32, %v3084_v49  ;;  %v6858_v49 = vand.u32 4294901760, %v6857_v13  ;;  %v6865_v13 = vand.u32 4294901760, %v6847_v45 }
 0x374   :  { %3087 = vst [vmem:[#allocation4] sm:$0x1] %v3086_v60 }
 0x375   :  { %4017 = vmatmul.mubr.msk.f32.vlgmr.msra.gmra.mrb[0].mxu1 %vm1521_vm6, %v6839_v61 }
 0x376   :  { %4019 = vmatprep.mubr.msk.f32.mxu1 %vm1522_vm7, %v6839_v61  ;;  %4379 = vmatpush3.bf16.msra.mxu1 %v5675_v53  ;;  %v4388_v53 = vpack.c.bf16 %v5728_v57, %v5722_v12 }
 0x377   :  { %4381 = vmatprep.subr.bf16.mxu1 %v4380_v62 }
 0x379   :  { %4020 = vmatmul.mubr.msk.f32.gmra.mrb[2].mxu1 %vm1523_vm8, %v6839_v61 }
 0x37a   :  { %4022 = vmatprep.mubr.msk.f32.mxu1 %vm1524_vm9, %v6839_v61  ;;  %4383 = vmatpush3.bf16.msra.mxu1 %v4380_v62  ;;  %v6859_v62 = vld [vmem:[#allocation16_spill] sm:$0xff] }
 0x37b   :  { %4385 = vmatprep.subr.bf16.mxu1 %v4384_v36  ;;  %v6860_v32 = vand.u32 4294901760, %v6859_v62  ;;  %v6867_v62 = vand.u32 4294901760, %v5717_v59  ;;  %v6874_v59 = vand.u32 4294901760, %v5733_v31  ;;  %v6881_v31 = vand.u32 4294901760, %v6218_v63 }
 0x37d   :  { %4023 = vmatmul.mubr.msk.f32.gmra.mrb[4].mxu1 %vm1525_vm11, %v6839_v61  ;;  %v4440_v60 = vpack.c.bf16 %v6860_v32, %v6858_v49  ;;  %v6866_v49 = vand.u32 4294901760, %v5712_v41  ;;  %v6868_v32 = vand.u32 4294901760, %v5952_v25  ;;  %v6873_v41 = vand.u32 4294901760, %v6126_v39 }
 0x37e   :  { %4025 = vmatprep.mubr.msk.f32.mxu1 %vm1526_vm10, %v6839_v61  ;;  %4387 = vmatpush3.bf16.msra.mxu1 %v4384_v36  ;;  %v6861_v36 = vand.u32 4294901760, %v5840_v3 }
 0x37f   :  { %4389 = vmatprep.subr.bf16.mxu1 %v4388_v53 }
 0x381   :  { %4026 = vmatmul.mubr.msk.f32.gmra.mrb[6].mxu1 %vm1527_vm12, %v6839_v61 }
 0x382   :  { %4028 = vmatprep.mubr.msk.f32.mxu1 %vm1528_vm13, %v6839_v61  ;;  %4391 = vmatpush3.bf16.msra.mxu1 %v4388_v53  ;;  %v6862_v53 = vand.u32 4294901760, %v5700_v9  ;;  %v6869_v9 = vand.u32 4294901760, %v6849_v56 }
 0x383   :  { %4393 = vmatprep.subr.bf16.mxu1 %v4392_v21 }
 0x385   :  { %4029 = vmatmul.mubr.msk.f32.gmra.mrb[8].mxu1 %vm1529_vm14, %v6839_v61 }
 0x386   :  { %4031 = vmatprep.mubr.msk.f32.mxu1 %vm1530_vm15, %v6839_v61  ;;  %4395 = vmatpush3.bf16.msra.mxu1 %v4392_v21  ;;  %v6863_v21 = vand.u32 4294901760, %v5705_v34  ;;  %v6870_v34 = vand.u32 4294901760, %v5722_v12  ;;  %v6877_v12 = vand.u32 4294901760, %v6190_v4 }
 0x387   :  { %4397 = vmatprep.subr.bf16.mxu1 %v4396_v24 }
 0x389   :  { %4032 = vmatmul.mubr.msk.f32.gmra.mrb[10].mxu1 %vm1531_vm1, %v6839_v61 }
 0x38a   :  { %4034 = vmatprep.mubr.msk.f32.mxu1 %vm6845_vm3, %v6839_v61  ;;  %4399 = vmatpush3.bf16.msra.mxu1 %v4396_v24  ;;  %v4444_v24 = vpack.c.bf16 %v6863_v21, %v6862_v53  ;;  %v6884_v53 = vld [vmem:[#allocation18_spill] sm:$0xff] }
 0x38b   :  { %4401 = vmatprep.subr.bf16.mxu1 %v5679_v50 }
 0x38d   :  { %4035 = vmatmul.mubr.msk.f32.gmra.mrb[12].mxu1 %vm6846_vm4, %v6839_v61 }
 0x38e   :  { %4037 = vmatprep.mubr.msk.f32.mxu1 %vm1534_vm0, %v6839_v61  ;;  %4403 = vmatpush3.bf16.msra.mxu1 %v5679_v50  ;;  %v6848_v50 = vld [vmem:[#allocation8_spill] sm:$0xff] }
 0x38f   :  { %4405 = vmatprep.subr.bf16.mxu1 %v5683_v51 }
 0x391   :  { %4038 = vmatmul.mubr.msk.f32.gmra.mrb[14].mxu1 %vm1535_vm2, %v6839_v61 }
 0x392   :  { %4407 = vmatpush3.bf16.msra.mxu1 %v5683_v51  ;;  %4072 = vmatprep.mubr.f32.mxu1 %v5840_v3  ;;  %v6851_v51 = vld [vmem:[#allocation23_spill] sm:$0xff]  ;;  %v4448_v3 = vpack.c.bf16 %v6867_v62, %v6866_v49  ;;  %v6891_v49 = vand.u32 4294901760, %v6253_v0 }
 0x393   :  { %4409 = vmatprep.subr.bf16.mxu1 %v5394_v17 }
 0x395   :  { %4073 = vmatmul.mubr.f32.vlgmr.msra.gmra.mrb[0].mxu1 %v5902_v42  ;;  %v6871_v42 = vand.u32 4294901760, %v5728_v57  ;;  %v6878_v57 = vand.u32 4294901760, %v5796_v37  ;;  %v6886_v37 = vand.u32 4294901760, %v6240_v55 }
 0x396   :  { %4075 = vmatprep.mubr.f32.mxu1 %v6847_v45  ;;  %4411 = vmatpush3.bf16.msra.mxu1 %v5394_v17  ;;  %v6872_v45 = vand.u32 4294901760, %v6851_v51 }
 0x397   :  { %4413 = vmatprep.subr.bf16.mxu1 %v6848_v50 }
 0x399   :  { %4076 = vmatmul.mubr.f32.gmra.mrb[2].mxu1 %v5952_v25  ;;  %v6875_v25 = vand.u32 4294901760, %v5738_v16  ;;  %v6882_v16 = vld [vmem:[#allocation17_spill] sm:$0xff] }
 0x39a   :  { %4078 = vmatprep.mubr.f32.mxu1 %v6849_v56  ;;  %4415 = vmatpush3.bf16.msra.mxu1 %v6848_v50 }
 0x39b   :  { %4417 = vmatprep.subr.bf16.mxu1 %v6850_v27  ;;  %v4456_v56 = vpack.c.bf16 %v6875_v25, %v6874_v59 }
 0x39d   :  { %4079 = vmatmul.mubr.f32.gmra.mrb[4].mxu1 %v6851_v51 }
 0x39e   :  { %4081 = vmatprep.mubr.f32.mxu1 %v6126_v39  ;;  %4419 = vmatpush3.bf16.msra.mxu1 %v6850_v27  ;;  %v6879_v39 = vand.u32 4294901760, %v5807_v19  ;;  %v6887_v19 = vld [vmem:[#allocation19_spill] sm:$0xff] }
 0x39f   :  { %4421 = vmatprep.subr.bf16.mxu1 %v6852_v38 }
 0x3a0   :  { %v4460_v51 = vpack.c.bf16 %v6879_v39, %v6878_v57 }
 0x3a1   :  { %4082 = vmatmul.mubr.f32.gmra.mrb[6].mxu1 %v6167_v46 }
 0x3a2   :  { %4084 = vmatprep.mubr.f32.mxu1 %v6190_v4  ;;  %4423 = vmatpush3.bf16.msra.mxu1 %v6852_v38  ;;  %v6885_v4 = vand.u32 4294901760, %v6884_v53 }
 0x3a3   :  { %4425 = vmatprep.subr.bf16.mxu1 %v6853_v18 }
 0x3a5   :  { %4085 = vmatmul.mubr.f32.gmra.mrb[8].mxu1 %v6192_v22 }
 0x3a6   :  { %4087 = vmatprep.mubr.f32.mxu1 %v6218_v63  ;;  %4427 = vmatpush3.bf16.msra.mxu1 %v6853_v18 }
 0x3a7   :  { %4429 = vmatprep.subr.bf16.mxu1 %v6854_v47 }
 0x3a9   :  { %4088 = vmatmul.mubr.f32.gmra.mrb[10].mxu1 %v6238_v44  ;;  %v6892_v44 = vand.u32 4294901760, %v6257_v20 }
 0x3aa   :  { %4090 = vmatprep.mubr.f32.mxu1 %v6240_v55  ;;  %4431 = vmatpush3.bf16.msra.mxu1 %v6854_v47 }
 0x3ab   :  { %4433 = vmatprep.subr.bf16.mxu1 %v6855_v10 }
 0x3ad   :  { %4091 = vmatmul.mubr.f32.gmra.mrb[12].mxu1 %v6253_v0  ;;  %v4704_v0 = vld [vmem:[%s6731_s0 + $0x18] sm:$0xff] }
 0x3ae   :  { %4093 = vmatprep.mubr.f32.mxu1 %v6255_v14  ;;  %4435 = vmatpush3.bf16.msra.mxu1 %v6855_v10 }
 0x3af   :  { %4437 = vmatprep.subr.bf16.mxu1 %v6856_v35 }
 0x3b1   :  { %4094 = vmatmul.mubr.f32.gmra.mrb[14].mxu1 %v6257_v20 }
 0x3b2   :  { %4439 = vmatpush3.bf16.msra.mxu1 %v6856_v35  ;;  %4128 = vmatprep.mubr.f32.mxu1 %v6861_v36  ;;  %v6880_v36 = vand.u32 4294901760, %v6192_v22  ;;  %v6888_v22 = vand.u32 4294901760, %v6887_v19 }
 0x3b3   :  { %4441 = vmatprep.subr.bf16.mxu1 %v4440_v60 }
 0x3b5   :  { %4129 = vmatmul.mubr.f32.vlgmr.msra.gmra.mrb[0].mxu1 %v6864_v52  ;;  %v4452_v52 = vpack.c.bf16 %v6871_v42, %v6870_v34  ;;  %v4707_v34 = vld [vmem:[%s6731_s0 + $0x20] sm:$0xff] }
 0x3b6   :  { %4131 = vmatprep.mubr.f32.mxu1 %v6865_v13  ;;  %4443 = vmatpush3.bf16.msra.mxu1 %v4440_v60  ;;  %v6876_v60 = vand.u32 4294901760, %v6167_v46  ;;  %v6883_v46 = vand.u32 4294901760, %v6882_v16  ;;  %v4709_v16 = vld [vmem:[%s6731_s0 + $0x30] sm:$0xff] }
 0x3b7   :  { %4445 = vmatprep.subr.bf16.mxu1 %v4444_v24 }
 0x3b8   :  { %v4464_v21 = vpack.c.bf16 %v6885_v4, %v6883_v46 }
 0x3b9   :  { %4132 = vmatmul.mubr.f32.gmra.mrb[2].mxu1 %v6868_v32 }
 0x3ba   :  { %4134 = vmatprep.mubr.f32.mxu1 %v6869_v9  ;;  %4447 = vmatpush3.bf16.msra.mxu1 %v4444_v24  ;;  %v6889_v24 = vld [vmem:[#allocation20_spill] sm:$0xff] }
 0x3bb   :  { %4449 = vmatprep.subr.bf16.mxu1 %v4448_v3  ;;  %v6890_v63 = vand.u32 4294901760, %v6889_v24 }
 0x3bd   :  { %4135 = vmatmul.mubr.f32.gmra.mrb[4].mxu1 %v6872_v45  ;;  %v4468_v13 = vpack.c.bf16 %v6890_v63, %v6888_v22  ;;  %v4711_v63 = vld [vmem:[%s6731_s0 + $0x40] sm:$0xff] }
 0x3be   :  { %4137 = vmatprep.mubr.f32.mxu1 %v6873_v41  ;;  %4451 = vmatpush3.bf16.msra.mxu1 %v4448_v3  ;;  %v4706_v3 = vld [vmem:[%s6731_s0 + $0x28] sm:$0xff] }
 0x3bf   :  { %4453 = vmatprep.subr.bf16.mxu1 %v4452_v52 }
 0x3c1   :  { %4138 = vmatmul.mubr.f32.gmra.mrb[6].mxu1 %v6876_v60 }
 0x3c2   :  { %4140 = vmatprep.mubr.f32.mxu1 %v6877_v12  ;;  %4455 = vmatpush3.bf16.msra.mxu1 %v4452_v52 }
 0x3c3   :  { %4457 = vmatprep.subr.bf16.mxu1 %v4456_v56 }
 0x3c5   :  { %4141 = vmatmul.mubr.f32.gmra.mrb[8].mxu1 %v6880_v36 }
 0x3c6   :  { %4143 = vmatprep.mubr.f32.mxu1 %v6881_v31  ;;  %4459 = vmatpush3.bf16.msra.mxu1 %v4456_v56 }
 0x3c7   :  { %4461 = vmatprep.subr.bf16.mxu1 %v4460_v51 }
 0x3c9   :  { %4144 = vmatmul.mubr.f32.gmra.mrb[10].mxu1 %v1777_v28  ;;  %v4705_v28 = vld [vmem:[%s6731_s0 + $0x10] sm:$0xff] }
 0x3ca   :  { %4146 = vmatprep.mubr.f32.mxu1 %v6886_v37  ;;  %4463 = vmatpush3.bf16.msra.mxu1 %v4460_v51  ;;  %v4708_v51 = vld [vmem:[%s6731_s0 + $0x38] sm:$0xff]  ;;  %v4710_v37 = vld [vmem:[%s6731_s0 + $0x48] sm:$0xff] }
 0x3cb   :  { %4465 = vmatprep.subr.bf16.mxu1 %v4464_v21 }
 0x3cd   :  { %4147 = vmatmul.mubr.f32.gmra.mrb[12].mxu1 %v6891_v49 }
 0x3ce   :  { %4149 = vmatprep.mubr.f32.mxu1 %v1807_v5  ;;  %4467 = vmatpush3.bf16.msra.mxu1 %v4464_v21 }
 0x3cf   :  { %4469 = vmatprep.subr.bf16.mxu1 %v4468_v13 }
 0x3d1   :  { %4150 = vmatmul.mubr.f32.gmra.mrb[14].mxu1 %v6892_v44 }
 0x3d2   :  { %4471 = vmatpush3.bf16.msra.mxu1 %v4468_v13  ;;  %4184 = vmatprep.mubr.msk.f32.mxu1 %vm1520_vm5, %v6839_v61  ;;  %vm6893_vm5 = vmmov %vm6845_vm3 }
 0x3d3   :  { %4504 = vmatprep.subr.bf16.mxu1 %v5394_v17 }
 0x3d5   :  { %4185 = vmatmul.mubr.msk.f32.vlgmr.msra.gmra.mrb[0].mxu1 %vm1521_vm6, %v6839_v61  ;;  %vm6894_vm6 = vmmov %vm6846_vm4 }
 0x3d6   :  { %4187 = vmatprep.mubr.msk.f32.mxu1 %vm1522_vm7, %v6839_v61  ;;  %4512 = vmatpush3.bf16.msra.mxu1 %v5394_v17  ;;  %vm6895_vm7 = vmmov %vm6845_vm3 }
 0x3d7   :  { %4505 = vmatprep.subr.bf16.mxu1 %v6848_v50 }
 0x3d9   :  { %4188 = vmatmul.mubr.msk.f32.gmra.mrb[2].mxu1 %vm1523_vm8, %v6839_v61  ;;  %vm6896_vm8 = vmmov %vm6846_vm4 }
 0x3da   :  { %4190 = vmatprep.mubr.msk.f32.mxu1 %vm1524_vm9, %v6839_v61  ;;  %4513 = vmatpush3.bf16.msra.mxu1 %v6848_v50  ;;  %vm6897_vm9 = vcmask 261120  }
 0x3db   :  { %4506 = vmatprep.subr.bf16.mxu1 %v6850_v27 }
 0x3dd   :  { %4191 = vmatmul.mubr.msk.f32.gmra.mrb[4].mxu1 %vm1525_vm11, %v6839_v61 }
 0x3de   :  { %4193 = vmatprep.mubr.msk.f32.mxu1 %vm1526_vm10, %v6839_v61  ;;  %4514 = vmatpush3.bf16.msra.mxu1 %v6850_v27 }
 0x3df   :  { %4507 = vmatprep.subr.bf16.mxu1 %v6852_v38 }
 0x3e1   :  { %4194 = vmatmul.mubr.msk.f32.gmra.mrb[6].mxu1 %vm1527_vm12, %v6839_v61 }
 0x3e2   :  { %4196 = vmatprep.mubr.msk.f32.mxu1 %vm1528_vm13, %v6839_v61  ;;  %4515 = vmatpush3.bf16.msra.mxu1 %v6852_v38 }
 0x3e3   :  { %4508 = vmatprep.subr.bf16.mxu1 %v6853_v18 }
 0x3e5   :  { %4197 = vmatmul.mubr.msk.f32.gmra.mrb[8].mxu1 %vm1529_vm14, %v6839_v61 }
 0x3e6   :  { %4199 = vmatprep.mubr.msk.f32.mxu1 %vm1530_vm15, %v6839_v61  ;;  %4516 = vmatpush3.bf16.msra.mxu1 %v6853_v18 }
 0x3e7   :  { %4509 = vmatprep.subr.bf16.mxu1 %v6854_v47 }
 0x3e9   :  { %4200 = vmatmul.mubr.msk.f32.gmra.mrb[10].mxu1 %vm1531_vm1, %v6839_v61 }
 0x3ea   :  { %4202 = vmatprep.mubr.msk.f32.mxu1 %vm6893_vm5, %v6839_v61  ;;  %4517 = vmatpush3.bf16.msra.mxu1 %v6854_v47 }
 0x3eb   :  { %4510 = vmatprep.subr.bf16.mxu1 %v6855_v10 }
 0x3ed   :  { %4203 = vmatmul.mubr.msk.f32.gmra.mrb[12].mxu1 %vm6894_vm6, %v6839_v61 }
 0x3ee   :  { %4205 = vmatprep.mubr.msk.f32.mxu1 %vm1534_vm0, %v6839_v61  ;;  %4518 = vmatpush3.bf16.msra.mxu1 %v6855_v10 }
 0x3ef   :  { %4511 = vmatprep.subr.bf16.mxu1 %v6856_v35 }
 0x3f1   :  { %4206 = vmatmul.mubr.msk.f32.gmra.mrb[14].mxu1 %vm1535_vm2, %v6839_v61 }
 0x3f2   :  { %4519 = vmatpush3.bf16.msra.mxu1 %v6856_v35  ;;  %4249 = vmatprep.mubr.msk.f32.mxu1 %vm1526_vm10, %v6839_v61 }
 0x3f5   :  { %4250 = vmatmul.mubr.msk.f32.vlgmr.msra.gmra.mrb[6].mxu1 %vm1527_vm12, %v6839_v61 }
 0x3f6   :  { %4252 = vmatprep.mubr.msk.f32.mxu1 %vm1528_vm13, %v6839_v61 }
 0x3f9   :  { %4253 = vmatmul.mubr.msk.f32.gmra.mrb[8].mxu1 %vm1529_vm14, %v6839_v61 }
 0x3fa   :  { %4255 = vmatprep.mubr.msk.f32.mxu1 %vm1530_vm15, %v6839_v61 }
 0x3fd   :  { %4256 = vmatmul.mubr.msk.f32.gmra.mrb[10].mxu1 %vm1531_vm1, %v6839_v61 }
 0x3fe   :  { %4258 = vmatprep.mubr.msk.f32.mxu1 %vm6895_vm7, %v6839_v61 }
 0x401   :  { %4259 = vmatmul.mubr.msk.f32.gmra.mrb[12].mxu1 %vm6896_vm8, %v6839_v61 }
 0x402   :  { %4261 = vmatprep.mubr.msk.f32.mxu1 %vm1534_vm0, %v6839_v61  ;;  %vm6898_vm0 = vmmov %vm6897_vm9 }
 0x403   :  { %vm6899_vm10 = vmmov %vm6898_vm0 }
 0x404   :  { %vm6900_vm11 = vmmov %vm6898_vm0 }
 0x405   :  { %4262 = vmatmul.mubr.msk.f32.gmra.mrb[14].mxu1 %vm1535_vm2, %v6839_v61  ;;  %vm6901_vm12 = vmmov %vm6898_vm0 }
 0x406   :  { %vm6902_vm13 = vmmov %vm6898_vm0 }
 0x407   :  { %vm6903_vm14 = vmmov %vm6898_vm0 }
 0x408   :  { %vm6904_vm15 = vmmov %vm6898_vm0 }
 0x409   :  { %vm6905_vm1 = vmmov %vm6898_vm0 }
 0x40a   :  { %vm6906_vm2 = vmmov %vm6898_vm0 }
 0x40b   :  { %vm6907_vm3 = vmmov %vm6898_vm0 }
 0x40c   :  { %vm6908_vm4 = vmmov %vm6898_vm0 }
 0x40d   :  { %vm6909_vm5 = vmmov %vm6898_vm0 }
 0x40e   :  { %vm6910_vm6 = vmmov %vm6898_vm0 }
 0x40f   :  { %vm6911_vm7 = vmmov %vm6898_vm0 }
 0x410   :  { %vm6912_vm8 = vmmov %vm6898_vm0 }
 0x414   :  { %v4242_v17 = vpop.f32.mrb[16].mxu0 }
 0x415   :  { %v2776_v7 = vpop.f32.mrb[17].mxu0 }
 0x418   :  { %v4245_v29 = vpop.f32.mrb[18].mxu0 }
 0x419   :  { %v2788_v15 = vpop.f32.mrb[19].mxu0 }
 0x41c   :  { %v4248_v23 = vpop.f32.mrb[20].mxu0 }
 0x41d   :  { %v2800_v11 = vpop.f32.mrb[21].mxu0 }
 0x4a8   :  { %v4186_v2 = vpop.f32.mrb[0].mxu1 }
 0x4a9   :  { %v4536_v48 = vadd.f32 %v4242_v17, %v4186_v2  ;;  %v2599_v30 = vpop.f32.mrb[1].mxu1 }
 0x4aa   :  { %v4537_v26 = vadd.f32 %v2776_v7, %v2599_v30  ;;  %v4713_v30 = vld [vmem:[%s6731_s0 + $0x50] sm:$0xff] }
 0x4ab   :  { %2871 = vst.msk [vmem:[%s6735_s4 + $0x8] sm:$0xff] %vm6897_vm9, %v4536_v48  ;;  %v2985_v61 = vsub.f32 %v4536_v48, %v4702_v40  ;;  %vm6913_vm9 = vmmov %vm6898_vm0 }
 0x4ac   :  { %2870 = vst.msk [vmem:[%s6735_s4] sm:$0xff] %vm6898_vm0, %v4537_v26  ;;  %v2984_v58 = vsub.f32 %v4537_v26, %v4703_v8  ;;  %v4189_v33 = vpop.f32.mrb[2].mxu1 }
 0x4ad   :  { %v3008_v6 = vmul.f32 %v2985_v61, %v2985_v61  ;;  %v4538_v43 = vadd.f32 %v4245_v29, %v4189_v33  ;;  %v2611_v54 = vpop.f32.mrb[3].mxu1 }
 0x4ae   :  { %v3007_v1 = vmul.f32 %v2984_v58, %v2984_v58  ;;  %v4539_v5 = vadd.f32 %v2788_v15, %v2611_v54 }
 0x4af   :  { %v3024_v55 = vsel %vm6899_vm10, %v3008_v6, 0.0  ;;  %2873 = vst.msk [vmem:[%s6735_s4 + $0x18] sm:$0xff] %vm6900_vm11, %v4538_v43  ;;  %v2987_v14 = vsub.f32 %v4538_v43, %v4704_v0  ;;  %vm6914_vm10 = vmmov %vm6898_vm0  ;;  %v4714_v43 = vld [vmem:[%s6731_s0 + $0x68] sm:$0xff] }
 0x4b0   :  { %v3023_v20 = vsel %vm6901_vm12, %v3007_v1, 0.0  ;;  %2872 = vst.msk [vmem:[%s6735_s4 + $0x10] sm:$0xff] %vm6902_vm13, %v4539_v5  ;;  %v2986_v50 = vsub.f32 %v4539_v5, %v4705_v28  ;;  %v4192_v27 = vpop.f32.mrb[4].mxu1  ;;  %vm6915_vm11 = vmmov %vm6898_vm0 }
 0x4b1   :  { %v3025_v38 = vadd.f32 %v3024_v55, %v3023_v20  ;;  %v4540_v18 = vadd.f32 %v4248_v23, %v4192_v27  ;;  %v2623_v47 = vpop.f32.mrb[5].mxu1  ;;  %v3010_v10 = vmul.f32 %v2987_v14, %v2987_v14  ;;  %v4712_v23 = vld [vmem:[%s6731_s0 + $0x58] sm:$0xff]  ;;  %vm6916_vm12 = vmmov %vm6898_vm0  ;;  %v4715_v55 = vld [vmem:[%s6731_s0 + $0x60] sm:$0xff] }
 0x4b2   :  { %v3009_v35 = vmul.f32 %v2986_v50, %v2986_v50  ;;  %v4541_v62 = vadd.f32 %v2800_v11, %v2623_v47  ;;  %vm6917_vm13 = vmmov %vm6898_vm0 }
 0x4b3   :  { %2875 = vst.msk [vmem:[%s6735_s4 + $0x28] sm:$0xff] %vm6903_vm14, %v4540_v18  ;;  %v2989_v32 = vsub.f32 %v4540_v18, %v4706_v3  ;;  %v3028_v45 = vsel %vm6906_vm2, %v3010_v10, 0.0  ;;  %vm6918_vm14 = vmmov %vm6898_vm0  ;;  %v4716_v18 = vld [vmem:[%s6731_s0 + $0x78] sm:$0xff] }
 0x4b4   :  { %v3026_v9 = vsel %vm6904_vm15, %v3009_v35, 0.0  ;;  %2874 = vst.msk [vmem:[%s6735_s4 + $0x20] sm:$0xff] %vm6905_vm1, %v4541_v62  ;;  %v2988_v42 = vsub.f32 %v4541_v62, %v4707_v34  ;;  %vm6919_vm15 = vmmov %vm6898_vm0  ;;  %v4717_v62 = vld [vmem:[%s6731_s0 + $0x70] sm:$0xff] }
 0x4b5   :  { %v3027_v52 = vadd.f32 %v3026_v9, %v3025_v38  ;;  %v3012_v41 = vmul.f32 %v2989_v32, %v2989_v32  ;;  %vm6920_vm1 = vmmov %vm6898_vm0 }
 0x4b6   :  { %v3011_v59 = vmul.f32 %v2988_v42, %v2988_v42  ;;  %vm6921_vm2 = vmmov %vm6898_vm0 }
 0x4b7   :  { %v3029_v25 = vadd.f32 %v3028_v45, %v3027_v52  ;;  %v3032_v12 = vsel %vm6908_vm4, %v3012_v41, 0.0  ;;  %vm6923_vm4 = vmmov %vm6898_vm0 }
 0x4b8   :  { %v3030_v56 = vsel %vm6907_vm3, %v3011_v59, 0.0  ;;  %vm6922_vm3 = vmmov %vm6898_vm0 }
 0x4b9   :  { %v3031_v60 = vadd.f32 %v3030_v56, %v3029_v25 }
 0x4bb   :  { %v3033_v57 = vadd.f32 %v3032_v12, %v3031_v60 }
 0x4c8   :  { %v4251_v39 = vpop.f32.mrb[6].mxu1 }
 0x4c9   :  { %2877 = vst.msk [vmem:[%s6735_s4 + $0x38] sm:$0xff] %vm6909_vm5, %v4251_v39  ;;  %v2991_v36 = vsub.f32 %v4251_v39, %v4708_v51  ;;  %v2812_v31 = vpop.f32.mrb[7].mxu1  ;;  %vm6924_vm5 = vmmov %vm6898_vm0 }
 0x4ca   :  { %2876 = vst.msk [vmem:[%s6735_s4 + $0x30] sm:$0xff] %vm6910_vm6, %v2812_v31  ;;  %v2990_v46 = vsub.f32 %v2812_v31, %v4709_v16  ;;  %vm6925_vm6 = vmmov %vm6898_vm0 }
 0x4cb   :  { %v3014_v53 = vmul.f32 %v2991_v36, %v2991_v36 }
 0x4cc   :  { %v3013_v4 = vmul.f32 %v2990_v46, %v2990_v46  ;;  %v4254_v21 = vpop.f32.mrb[8].mxu1 }
 0x4cd   :  { %2879 = vst.msk [vmem:[%s6735_s4 + $0x48] sm:$0xff] %vm6911_vm7, %v4254_v21  ;;  %v2993_v19 = vsub.f32 %v4254_v21, %v4710_v37  ;;  %v2824_v22 = vpop.f32.mrb[9].mxu1  ;;  %v3036_v44 = vsel %vm6898_vm0, %v3014_v53, 0.0  ;;  %vm6926_vm7 = vmmov %vm6898_vm0 }
 0x4ce   :  { %v3034_v24 = vsel %vm6912_vm8, %v3013_v4, 0.0  ;;  %2878 = vst.msk [vmem:[%s6735_s4 + $0x40] sm:$0xff] %vm6913_vm9, %v2824_v22  ;;  %v2992_v13 = vsub.f32 %v2824_v22, %v4711_v63  ;;  %vm6927_vm8 = vmmov %vm6898_vm0 }
 0x4cf   :  { %v3035_v49 = vadd.f32 %v3034_v24, %v3033_v57  ;;  %v3016_v17 = vmul.f32 %v2993_v19, %v2993_v19 }
 0x4d0   :  { %v3015_v7 = vmul.f32 %v2992_v13, %v2992_v13  ;;  %v4257_v29 = vpop.f32.mrb[10].mxu1 }
 0x4d1   :  { %v3037_v15 = vadd.f32 %v3036_v44, %v3035_v49  ;;  %2881 = vst.msk [vmem:[%s6735_s4 + $0x58] sm:$0xff] %vm6914_vm10, %v4257_v29  ;;  %v2995_v11 = vsub.f32 %v4257_v29, %v4712_v23  ;;  %v2836_v2 = vpop.f32.mrb[11].mxu1  ;;  %v3040_v61 = vsel %vm6917_vm13, %v3016_v17, 0.0 }
 0x4d2   :  { %v3038_v48 = vsel %vm6915_vm11, %v3015_v7, 0.0  ;;  %2880 = vst.msk [vmem:[%s6735_s4 + $0x50] sm:$0xff] %vm6916_vm12, %v2836_v2  ;;  %v2994_v26 = vsub.f32 %v2836_v2, %v4713_v30 }
 0x4d3   :  { %v3039_v40 = vadd.f32 %v3038_v48, %v3037_v15  ;;  %v3018_v8 = vmul.f32 %v2995_v11, %v2995_v11 }
 0x4d4   :  { %v3017_v58 = vmul.f32 %v2994_v26, %v2994_v26  ;;  %v4260_v33 = vpop.f32.mrb[12].mxu1 }
 0x4d5   :  { %v3041_v6 = vadd.f32 %v3040_v61, %v3039_v40  ;;  %2883 = vst.msk [vmem:[%s6735_s4 + $0x68] sm:$0xff] %vm6918_vm14, %v4260_v33  ;;  %v2997_v54 = vsub.f32 %v4260_v33, %v4714_v43  ;;  %v2848_v1 = vpop.f32.mrb[13].mxu1  ;;  %v3044_v20 = vsel %vm6921_vm2, %v3018_v8, 0.0 }
 0x4d6   :  { %v3042_v5 = vsel %vm6919_vm15, %v3017_v58, 0.0  ;;  %2882 = vst.msk [vmem:[%s6735_s4 + $0x60] sm:$0xff] %vm6920_vm1, %v2848_v1  ;;  %v2996_v0 = vsub.f32 %v2848_v1, %v4715_v55 }
 0x4d7   :  { %v3043_v14 = vadd.f32 %v3042_v5, %v3041_v6  ;;  %v3020_v28 = vmul.f32 %v2997_v54, %v2997_v54 }
 0x4d8   :  { %v3019_v50 = vmul.f32 %v2996_v0, %v2996_v0  ;;  %v4263_v27 = vpop.f32.mrb[14].mxu1 }
 0x4d9   :  { %v3045_v38 = vadd.f32 %v3044_v20, %v3043_v14  ;;  %2885 = vst.msk [vmem:[%s6735_s4 + $0x78] sm:$0xff] %vm6922_vm3, %v4263_v27  ;;  %v2999_v47 = vsub.f32 %v4263_v27, %v4716_v18  ;;  %v2860_v10 = vpop.f32.mrb[15].mxu1  ;;  %v3048_v9 = vsel %vm6925_vm6, %v3020_v28, 0.0 }
 0x4da   :  { %v3046_v35 = vsel %vm6923_vm4, %v3019_v50, 0.0  ;;  %2884 = vst.msk [vmem:[%s6735_s4 + $0x70] sm:$0xff] %vm6924_vm5, %v2860_v10  ;;  %v2998_v3 = vsub.f32 %v2860_v10, %v4717_v62  ;;  %s3309_s4 = sshll.u32 %s4768_s27, 4  ;;  %s3310_s4 = int_to_ptr.vmem [resolvable:$true] %s3309_s4 }
 0x4db   :  { %v3047_v32 = vadd.f32 %v3046_v35, %v3045_v38  ;;  %v3022_v34 = vmul.f32 %v2999_v47, %v2999_v47  ;;  %s4718_s28 = scalar_lea.vmem %s3310_s4, 16  ;;  %s4722_s0 = scalar_lea.vmem %s3310_s4, 32 }
 0x4dc   :  { %v3021_v42 = vmul.f32 %v2998_v3, %v2998_v3  ;;  %p4719_p0 = scmp.ne.s32.totalorder %s3310_s4, %s4718_s28  ;;  %p4723_p1 = scmp.lt.s32.totalorder %s3310_s4, %s3310_s4 }
 0x4dd   :  { %v3049_v52 = vadd.f32 %v3048_v9, %v3047_v32  ;;  %v3052_v59 = vsel %vm6927_vm8, %v3022_v34, 0.0  ;;  %p4724_p2 = scmp.lt.s32.totalorder %s4722_s0, %s4718_s28 }
 0x4de   :  { %v3050_v45 = vsel %vm6926_vm7, %v3021_v42, 0.0 }
 0x4df   :  { %v3051_v41 = vadd.f32 %v3050_v45, %v3049_v52  ;;  %p4725_p3 = por %p4724_p2, %p4723_p1 }
 0x4e1   :  { %v3053_v25 = vadd.f32 %v3052_v59, %v3051_v41  ;;  %p4726_p4 = pnand %p4725_p3, %p4719_p0 }
 0x4e3   :  { %3054 = vadd.xlane.f32.xlu0 %v3053_v25 }
 0x4e4   :  { %4729 = shalt.err (!%p4726_p4)
}
 0x4e5   :  { %s4730_s30 = scalar_lea.hbm %s6739_s8, 16 }
 0x4e6   :  { %p4731_p5 = scmp.ne.s32.totalorder %s6739_s8, %s4730_s30  ;;  %p4734_p6 = scmp.lt.u32.totalorder %s4730_s30, %s6739_s8 }
 0x4e8   :  { %p4736_p7 = pnand %p4734_p6, %p4731_p5 }
 0x4ea   :  { %4739 = shalt.err (!%p4736_p7)
}
 0x4eb   :  { %3312 = dma.vmem_to_hbm [thread:$0]  %s3310_s4, 16, %s6739_s8, [#allocation5]   ;;  %vm3064_vm9 = vcmask 0  }
 0x4ec   :  { %s4769_s15 = smov [#allocation2]  }
 0x4ed   :  { %s3299_s16 = sshll.u32 %s4769_s15, 4  ;;  %s3300_s16 = int_to_ptr.vmem [resolvable:$true] %s3299_s16 }
 0x4ee   :  { %s4740_s17 = scalar_lea.vmem %s3300_s16, 16  ;;  %s4744_s18 = scalar_lea.vmem %s3300_s16, 32 }
 0x4ef   :  { %p4741_p8 = scmp.ne.s32.totalorder %s3300_s16, %s4740_s17  ;;  %p4745_p9 = scmp.lt.s32.totalorder %s3300_s16, %s3300_s16 }
 0x4f0   :  { %p4746_p10 = scmp.lt.s32.totalorder %s4744_s18, %s4740_s17 }
 0x4f2   :  { %p4747_p11 = por %p4746_p10, %p4745_p9 }
 0x4f4   :  { %p4748_p12 = pnand %p4747_p11, %p4741_p8 }
 0x570   :  { %v3055_v56 = vpop.xlane.xlu0 %3054 }
 0x571   :  { %v3056_v60 = vrot.slane %v3055_v56, 4 }
 0x573   :  { %v3057_v12 = vadd.f32 %v3056_v60, %v3055_v56 }
 0x575   :  { %v3058_v57 = vrot.slane %v3057_v12, 2 }
 0x577   :  { %v3059_v39 = vadd.f32 %v3058_v57, %v3057_v12 }
 0x579   :  { %v3060_v51 = vrot.slane %v3059_v39, 1 }
 0x57b   :  { %v3061_v36 = vadd.f32 %v3060_v51, %v3059_v39 }
 0x57d   :  { %4696 = vpush %v3061_v36 }
 0x5ae   :  { %s4697_s6 = spop %4696 }
 0x5af   :  { %v3063_v31 = vstv %s4697_s6 }
 0x5b0   :  { %3065 = vst.msk [vmem:[#allocation2] sm:$0x1] %vm3064_vm9, %v3063_v31 }
 0x5b1   :  { %4751 = shalt.err (!%p4748_p12)
}
 0x5b2   :  { %s4752_s5 = scalar_lea.hbm %s6738_s7, 16 }
 0x5b3   :  { %p4753_p13 = scmp.ne.s32.totalorder %s6738_s7, %s4752_s5  ;;  %p4756_p0 = scmp.lt.u32.totalorder %s4752_s5, %s6738_s7 }
 0x5b5   :  { %p4758_p1 = pnand %p4756_p0, %p4753_p13 }
 0x5b7   :  { %4761 = shalt.err (!%p4758_p1)
}
 0x5b8   :  { %3302 = dma.vmem_to_hbm [thread:$0]  %s3300_s16, 16, %s6738_s7, [#allocation3]  }
 0x5b9   :  { %4762 = dma.done.wait [#allocation3], 16  }
 0x5ba   :  { %4763 = vsyncadd [#allocation3], 4294967280 }
 0x5bb   :  { %4764 = dma.done.wait [#allocation5], 16  }
 0x5bc   :  { %4765 = vsyncadd [#allocation5], 4294967280 }
 0x5bd   :  { %3325 = vsyncpa [#allocation3], 1 }
 0x5be   :  { %3326 = vsyncpa [#allocation5], 1 }

</bundles_post_ra>
